<compile_context>
chip_gen: v6e
topology: v6e:2x2x1
jax: 0.10.0
libtpu: 0.0.40
codegen_flags: <defaults>
</compile_context>

<pallas_src>
import jax
import jax.numpy as jnp
from jax import lax
from jax.experimental import pallas as pl
from jax.experimental.pallas import tpu as pltpu


# ----------------------------------------------------------------------------
# Branch enumeration (mirrors DilatedReparamBlock.__init__)
# ----------------------------------------------------------------------------
def branch_list(kernel_size):
    if kernel_size == 17:
        kernel_sizes, dilates = [5, 9, 3, 1], [1, 2, 4, 5, 7]
    elif kernel_size == 15:
        kernel_sizes, dilates = [5, 7, 3, 1], [1, 2, 3, 5, 7]
    elif kernel_size == 13:
        kernel_sizes, dilates = [11, 9, 5, 7, 3], [1, 2, 3, 4, 5, 6]
    elif kernel_size == 11:
        kernel_sizes, dilates = [5, 3, 1], [1, 2, 3, 4, 5]
    elif kernel_size == 9:
        kernel_sizes, dilates = [5, 3, 1], [1, 2, 3, 4]
    elif kernel_size == 7:
        kernel_sizes, dilates = [5, 3, 1], [1, 2, 3]
    elif kernel_size == 5:
        kernel_sizes, dilates = [3, 1], [1, 2]
    else:
        raise ValueError('Dilated Reparam Block requires kernel_size >= 5')
    ks, ds = [], []
    for k in kernel_sizes:
        for r in dilates:
            if 1 + (k - 1) * r <= kernel_size:
                if k == 1 and 1 in ks:
                    continue
                ks.append(k)
                ds.append(r)
    return ks, ds


# ----------------------------------------------------------------------------
# Pallas kernel factory: single merged KxK depthwise conv + per-channel shift
# ----------------------------------------------------------------------------
def _make_kernel(K, H, W, TH, hoist_j):
    """One grid step = one 128-channel tile of one image.

      x_ref     : (1, H+K-1, W+K-1, 128)  spatially padded NHWC input tile
      w_ref     : (K, K, 128)             merged effective depthwise weights (f32)
      shift_ref : (1, 128)                folded BN shifts + module bias (f32)
      out_ref   : (1, H, W, 128)

    TH is chosen so the f32 accumulator uses <= ~16 vregs; when `hoist_j` the
    sublane-unaligned W slice is done once per j on a (TH+K-1)-row slab and the
    i-shifts are free value slices along the (major) H axis.
    """

    def kernel(x_ref, w_ref, shift_ref, out_ref):
        CT = out_ref.shape[-1]
        shift = shift_ref[...].astype(jnp.float32).reshape(1, 1, 1, CT)

        def strip(h0, th):
            acc = jnp.broadcast_to(shift, (1, th, W, CT))
            if hoist_j:
                for j in range(K):
                    # One unaligned-W load per j (K per strip, not K^2).
                    xj = x_ref[:, pl.ds(h0, th + K - 1), pl.ds(j, W), :]
                    xj = xj.astype(jnp.float32)
                    for i in range(K):
                        wij = w_ref[i, j, :].astype(jnp.float32)  # streamed, vld slot
                        acc = acc + xj[:, i:i + th] * wij
            else:
                for i in range(K):
                    for j in range(K):
                        wij = w_ref[i, j, :].astype(jnp.float32)
                        xij = x_ref[:, pl.ds(h0 + i, th), pl.ds(j, W), :]
                        acc = acc + xij.astype(jnp.float32) * wij
            out_ref[:, pl.ds(h0, th), :, :] = acc.astype(out_ref.dtype)

        n_full = H // TH
        rem = H - n_full * TH

        if n_full == 1:
            strip(0, TH)
        elif n_full > 1:
            def body(s, carry):
                strip(pl.multiple_of(s * TH, TH), TH)
                return carry
            lax.fori_loop(0, n_full, body, 0)
        if rem > 0:
            strip(n_full * TH, rem)

    return kernel


# ----------------------------------------------------------------------------
# Parameter folding: BN + per-branch weights -> one KxK kernel + shift
# ----------------------------------------------------------------------------
def fold_params(params, kernel_size, channels):
    K = kernel_size
    P = K // 2
    eps = 1e-5

    def fold_bn(gamma, beta, mean, var, per_ch_weight):
        inv_std = 1.0 / jnp.sqrt(var + eps)
        scale = gamma * inv_std * per_ch_weight
        shift = (beta - mean * gamma * inv_std) * per_ch_weight
        return scale, shift

    w_eff = jnp.zeros((K, K, channels), jnp.float32)
    shift_total = params['bias'].astype(jnp.float32)

    go, bo, mo, vo = params['origin_bn']
    scale, shift = fold_bn(go, bo, mo, vo, params['origin_weight'])
    w_eff = w_eff + params['origin_w'].astype(jnp.float32) * scale
    shift_total = shift_total + shift

    ks, ds = branch_list(K)
    for (k, r) in zip(ks, ds):
        bw, gamma, beta, mean, var, pw = params['branches'][(k, r)]
        scale, shift = fold_bn(gamma, beta, mean, var, pw)
        pad = (r * (k - 1) + 1) // 2
        off = P - pad                       # static, >= 0 for all valid branches
        span = (k - 1) * r + 1
        w_eff = w_eff.at[off:off + span:r, off:off + span:r, :].add(
            bw.astype(jnp.float32) * scale)
        shift_total = shift_total + shift
    return w_eff, shift_total


# ----------------------------------------------------------------------------
# NHWC-native entry point (preferred: no layout round trips around the kernel)
# ----------------------------------------------------------------------------
def dilated_reparam_block_nhwc(x_nhwc, w_eff, shift, kernel_size,
                               activations_dtype=None):
    N, H, W, C = x_nhwc.shape
    K = kernel_size
    P = K // 2
    CT = 128
    C_pad = ((C + CT - 1) // CT) * CT

    out_dtype = x_nhwc.dtype
    if activations_dtype is not None:
        x_nhwc = x_nhwc.astype(activations_dtype)   # bf16 on v6e/v7x halves DMA

    x_pad = jnp.pad(x_nhwc, ((0, 0), (P, P), (P, P), (0, C_pad - C)))
    w_pad = jnp.pad(w_eff.astype(jnp.float32), ((0, 0), (0, 0), (0, C_pad - C)))
    s_pad = jnp.pad(shift.astype(jnp.float32), (0, C_pad - C)).reshape(1, C_pad)

    Hp, Wp = H + 2 * P, W + 2 * P

    # --- strip sizing from vreg budget (f32 acc = TH * ceil(W/8) vregs) ------
    cw = (W + 7) // 8
    th_acc = max(1, min(H, 16 // max(1, cw)))          # accumulator <= 16 vregs
    budget = 48                                        # acc + hoisted j-slab
    th_hoist = (budget // cw - (K - 1)) // 2
    hoist_j = th_hoist >= 1
    if hoist_j:
        TH = max(1, min(H, min(th_acc, th_hoist)))
    else:
        TH = max(1, min(H, th_acc))

    kernel = _make_kernel(K, H, W, TH, hoist_j)

    # --- scoped VMEM sized from the actual (double-buffered) blocks ----------
    isz = jnp.dtype(x_pad.dtype).itemsize
    osz = jnp.dtype(out_dtype).itemsize
    needed = 2 * (Hp * Wp * CT * isz + H * W * CT * osz
                  + K * K * CT * 4 + CT * 4) + (4 << 20)
    vmem_limit = int(min(64 << 20, max(needed, 32 << 20)))

    out = pl.pallas_call(
        kernel,
        out_shape=jax.ShapeDtypeStruct((N, H, W, C_pad), out_dtype),
        grid=(C_pad // CT, N),          # C outer -> weights/shift stay resident over N
        in_specs=[
            pl.BlockSpec((1, Hp, Wp, CT), lambda c, n: (n, 0, 0, c)),
            pl.BlockSpec((K, K, CT), lambda c, n: (0, 0, c)),
            pl.BlockSpec((1, CT), lambda c, n: (0, c)),
        ],
        out_specs=pl.BlockSpec((1, H, W, CT), lambda c, n: (n, 0, 0, c)),
        compiler_params=pltpu.CompilerParams(
            dimension_semantics=("parallel", "parallel"),
            vmem_limit_bytes=vmem_limit),
    )(x_pad, w_pad, s_pad)

    return out[..., :C]


# ----------------------------------------------------------------------------
# NCHW wrapper matching the PyTorch module interface.
# (The transposes/pads are full-tensor HBM round trips; in a full model keep
#  activations NHWC with pre-padded channels and call the NHWC entry point.)
# ----------------------------------------------------------------------------
def dilated_reparam_block(x_nchw, params, kernel_size, activations_dtype=None):
    N, C, H, W = x_nchw.shape
    w_eff, shift_total = fold_params(params, kernel_size, C)
    x_nhwc = jnp.transpose(x_nchw, (0, 2, 3, 1))
    out_nhwc = dilated_reparam_block_nhwc(
        x_nhwc, w_eff, shift_total, kernel_size,
        activations_dtype=activations_dtype)
    return jnp.transpose(out_nhwc, (0, 3, 1, 2))


# ----------------------------------------------------------------------------
# Pure-JAX reference (per-branch lax convs, eval-mode BN) for correctness
# ----------------------------------------------------------------------------
def reference_forward(x_nchw, params, kernel_size):
    N, C, H, W = x_nchw.shape
    eps = 1e-5
    x = jnp.transpose(x_nchw, (0, 2, 3, 1)).astype(jnp.float32)  # NHWC

    def dwconv(x, w_kkc, r, pad):
        return lax.conv_general_dilated(
            x, w_kkc[:, :, None, :],            # HWIO, I = 1 (depthwise)
            window_strides=(1, 1),
            padding=[(pad, pad), (pad, pad)],
            rhs_dilation=(r, r),
            dimension_numbers=('NHWC', 'HWIO', 'NHWC'),
            feature_group_count=C)

    def bn(y, gamma, beta, mean, var):
        return (y - mean) / jnp.sqrt(var + eps) * gamma + beta

    go, bo, mo, vo = params['origin_bn']
    out = bn(dwconv(x, params['origin_w'], 1, kernel_size // 2),
             go, bo, mo, vo) * params['origin_weight']
    ks, ds = branch_list(kernel_size)
    for (k, r) in zip(ks, ds):
        bw, gamma, beta, mean, var, pw = params['branches'][(k, r)]
        pad = (r * (k - 1) + 1) // 2
        out = out + bn(dwconv(x, bw, r, pad), gamma, beta, mean, var) * pw
    out = out + params['bias']
    return jnp.transpose(out, (0, 3, 1, 2))


# ----------------------------------------------------------------------------
# Deterministic parameter construction (shapes per module __init__)
# ----------------------------------------------------------------------------
def make_params(key, channels, kernel_size):
    ks, ds = branch_list(kernel_size)
    keys = jax.random.split(key, 2 + 2 * len(ks))
    it = iter(keys)

    def bn_params(k):
        k1, k2, k3, k4 = jax.random.split(k, 4)
        gamma = 1.0 + 0.1 * jax.random.normal(k1, (channels,), jnp.float32)
        beta = 0.1 * jax.random.normal(k2, (channels,), jnp.float32)
        mean = 0.05 * jax.random.normal(k3, (channels,), jnp.float32)
        var = 0.5 + jnp.abs(jax.random.normal(k4, (channels,), jnp.float32))
        return gamma, beta, mean, var

    params = {}
    # lk_origin: depthwise KxK conv, no bias (deploy=False). stored as (K, K, C)
    params['origin_w'] = 0.1 * jax.random.normal(
        next(it), (kernel_size, kernel_size, channels), jnp.float32)
    params['origin_bn'] = bn_params(next(it))
    params['origin_weight'] = jnp.ones((channels,), jnp.float32)   # init 1.0
    params['bias'] = jnp.zeros((channels,), jnp.float32)           # init 0.0
    params['branches'] = {}
    for (k, r) in zip(ks, ds):
        w = 0.1 * jax.random.normal(next(it), (k, k, channels), jnp.float32)
        gamma, beta, mean, var = bn_params(next(it))
        pw = jnp.ones((channels,), jnp.float32)                    # dil_weight init 1.0
        params['branches'][(k, r)] = (w, gamma, beta, mean, var, pw)
    return params


if __name__ == "__main__":
    key = jax.random.PRNGKey(0)
    kx, kp = jax.random.split(key)

    N, C, H, W = 2, 32, 16, 16
    kernel_size = 7   # -> branches (5,1),(3,1),(3,2),(3,3),(1,1)

    x = jax.random.normal(kx, (N, C, H, W), jnp.float32)   # NCHW, as in the module
    params = make_params(kp, C, kernel_size)

    out = dilated_reparam_block(x, params, kernel_size)
    out = jax.block_until_ready(out)

    ref = jax.block_until_ready(reference_forward(x, params, kernel_size))
    assert out.shape == (N, C, H, W)
    max_err = float(jnp.max(jnp.abs(out - ref)))
    assert jnp.allclose(out, ref, atol=2e-3, rtol=2e-3), max_err

    print("KERNEL_OK")
</pallas_src>

<mosaic_0001>
module attributes {stable_mosaic.version = 11 : i64} {
  func.func @kernel(%arg0: i32, %arg1: i32, %arg2: memref<1x22x22x128xf32, #tpu.memory_space<vmem>>, %arg3: memref<7x7x128xf32, #tpu.memory_space<vmem>>, %arg4: memref<1x128xf32, #tpu.memory_space<vmem>>, %arg5: memref<1x16x16x128xf32, #tpu.memory_space<vmem>>) attributes {dimension_semantics = [#tpu.dimension_semantics<parallel>, #tpu.dimension_semantics<parallel>], iteration_bounds = array<i64: 1, 2>, scalar_prefetch = 0 : i64, scratch_operands = 0 : i64, tpu.core_type = #tpu.core_type<tc>, window_params = [{transform_indices = @transform_0, window_bounds = array<i64: 1, 22, 22, 128>}, {transform_indices = @transform_1, window_bounds = array<i64: 7, 7, 128>}, {transform_indices = @transform_2, window_bounds = array<i64: 1, 128>}, {transform_indices = @transform_3, window_bounds = array<i64: 1, 16, 16, 128>}]} {
    %c0 = arith.constant 0 : index
    %c0_0 = arith.constant 0 : index
    %0 = vector.load %arg4[%c0, %c0_0] : memref<1x128xf32, #tpu.memory_space<vmem>>, vector<1x128xf32>
    %1 = vector.shape_cast %0 : vector<1x128xf32> to vector<1x1x1x128xf32>
    %c0_i32 = arith.constant 0 : i32
    %c2_i32 = arith.constant 2 : i32
    %2 = arith.addi %c0_i32, %c2_i32 : i32
    %c1_i32 = arith.constant 1 : i32
    scf.for %arg6 = %c0_i32 to %2 step %c1_i32  : i32 {
      %c8_i32 = arith.constant 8 : i32
      %3 = arith.muli %arg6, %c8_i32 : i32
      %4 = tpu.assume_multiple %3, 8 : i32
      %5 = vector.shape_cast %1 : vector<1x1x1x128xf32> to vector<1x1x1x128xf32>
      %6 = vector.broadcast %5 : vector<1x1x1x128xf32> to vector<1x8x16x128xf32>
      %c0_2 = arith.constant 0 : index
      %7 = arith.index_cast %4 : i32 to index
      %c0_3 = arith.constant 0 : index
      %c0_4 = arith.constant 0 : index
      %8 = vector.load %arg2[%c0_2, %7, %c0_3, %c0_4] : memref<1x22x22x128xf32, #tpu.memory_space<vmem>>, vector<1x14x16x128xf32>
      %c0_5 = arith.constant 0 : index
      %c0_6 = arith.constant 0 : index
      %c0_7 = arith.constant 0 : index
      %9 = vector.load %arg3[%c0_5, %c0_6, %c0_7] : memref<7x7x128xf32, #tpu.memory_space<vmem>>, vector<1x1x128xf32>
      %10 = vector.shape_cast %9 : vector<1x1x128xf32> to vector<128xf32>
      %11 = vector.extract_strided_slice %8 {offsets = [0, 0, 0, 0], sizes = [1, 8, 16, 128], strides = [1, 1, 1, 1]} : vector<1x14x16x128xf32> to vector<1x8x16x128xf32>
      %12 = vector.shape_cast %10 : vector<128xf32> to vector<1x1x1x128xf32>
      %13 = vector.broadcast %12 : vector<1x1x1x128xf32> to vector<1x8x16x128xf32>
      %14 = arith.mulf %11, %13 : vector<1x8x16x128xf32>
      %15 = arith.addf %6, %14 : vector<1x8x16x128xf32>
      %c1 = arith.constant 1 : index
      %c0_8 = arith.constant 0 : index
      %c0_9 = arith.constant 0 : index
      %16 = vector.load %arg3[%c1, %c0_8, %c0_9] : memref<7x7x128xf32, #tpu.memory_space<vmem>>, vector<1x1x128xf32>
      %17 = vector.shape_cast %16 : vector<1x1x128xf32> to vector<128xf32>
      %18 = vector.extract_strided_slice %8 {offsets = [0, 1, 0, 0], sizes = [1, 8, 16, 128], strides = [1, 1, 1, 1]} : vector<1x14x16x128xf32> to vector<1x8x16x128xf32>
      %19 = vector.shape_cast %17 : vector<128xf32> to vector<1x1x1x128xf32>
      %20 = vector.broadcast %19 : vector<1x1x1x128xf32> to vector<1x8x16x128xf32>
      %21 = arith.mulf %18, %20 : vector<1x8x16x128xf32>
      %22 = arith.addf %15, %21 : vector<1x8x16x128xf32>
      %c2 = arith.constant 2 : index
      %c0_10 = arith.constant 0 : index
      %c0_11 = arith.constant 0 : index
      %23 = vector.load %arg3[%c2, %c0_10, %c0_11] : memref<7x7x128xf32, #tpu.memory_space<vmem>>, vector<1x1x128xf32>
      %24 = vector.shape_cast %23 : vector<1x1x128xf32> to vector<128xf32>
      %25 = vector.extract_strided_slice %8 {offsets = [0, 2, 0, 0], sizes = [1, 8, 16, 128], strides = [1, 1, 1, 1]} : vector<1x14x16x128xf32> to vector<1x8x16x128xf32>
      %26 = vector.shape_cast %24 : vector<128xf32> to vector<1x1x1x128xf32>
      %27 = vector.broadcast %26 : vector<1x1x1x128xf32> to vector<1x8x16x128xf32>
      %28 = arith.mulf %25, %27 : vector<1x8x16x128xf32>
      %29 = arith.addf %22, %28 : vector<1x8x16x128xf32>
      %c3 = arith.constant 3 : index
      %c0_12 = arith.constant 0 : index
      %c0_13 = arith.constant 0 : index
      %30 = vector.load %arg3[%c3, %c0_12, %c0_13] : memref<7x7x128xf32, #tpu.memory_space<vmem>>, vector<1x1x128xf32>
      %31 = vector.shape_cast %30 : vector<1x1x128xf32> to vector<128xf32>
      %32 = vector.extract_strided_slice %8 {offsets = [0, 3, 0, 0], sizes = [1, 8, 16, 128], strides = [1, 1, 1, 1]} : vector<1x14x16x128xf32> to vector<1x8x16x128xf32>
      %33 = vector.shape_cast %31 : vector<128xf32> to vector<1x1x1x128xf32>
      %34 = vector.broadcast %33 : vector<1x1x1x128xf32> to vector<1x8x16x128xf32>
      %35 = arith.mulf %32, %34 : vector<1x8x16x128xf32>
      %36 = arith.addf %29, %35 : vector<1x8x16x128xf32>
      %c4 = arith.constant 4 : index
      %c0_14 = arith.constant 0 : index
      %c0_15 = arith.constant 0 : index
      %37 = vector.load %arg3[%c4, %c0_14, %c0_15] : memref<7x7x128xf32, #tpu.memory_space<vmem>>, vector<1x1x128xf32>
      %38 = vector.shape_cast %37 : vector<1x1x128xf32> to vector<128xf32>
      %39 = vector.extract_strided_slice %8 {offsets = [0, 4, 0, 0], sizes = [1, 8, 16, 128], strides = [1, 1, 1, 1]} : vector<1x14x16x128xf32> to vector<1x8x16x128xf32>
      %40 = vector.shape_cast %38 : vector<128xf32> to vector<1x1x1x128xf32>
      %41 = vector.broadcast %40 : vector<1x1x1x128xf32> to vector<1x8x16x128xf32>
      %42 = arith.mulf %39, %41 : vector<1x8x16x128xf32>
      %43 = arith.addf %36, %42 : vector<1x8x16x128xf32>
      %c5 = arith.constant 5 : index
      %c0_16 = arith.constant 0 : index
      %c0_17 = arith.constant 0 : index
      %44 = vector.load %arg3[%c5, %c0_16, %c0_17] : memref<7x7x128xf32, #tpu.memory_space<vmem>>, vector<1x1x128xf32>
      %45 = vector.shape_cast %44 : vector<1x1x128xf32> to vector<128xf32>
      %46 = vector.extract_strided_slice %8 {offsets = [0, 5, 0, 0], sizes = [1, 8, 16, 128], strides = [1, 1, 1, 1]} : vector<1x14x16x128xf32> to vector<1x8x16x128xf32>
      %47 = vector.shape_cast %45 : vector<128xf32> to vector<1x1x1x128xf32>
      %48 = vector.broadcast %47 : vector<1x1x1x128xf32> to vector<1x8x16x128xf32>
      %49 = arith.mulf %46, %48 : vector<1x8x16x128xf32>
      %50 = arith.addf %43, %49 : vector<1x8x16x128xf32>
      %c6 = arith.constant 6 : index
      %c0_18 = arith.constant 0 : index
      %c0_19 = arith.constant 0 : index
      %51 = vector.load %arg3[%c6, %c0_18, %c0_19] : memref<7x7x128xf32, #tpu.memory_space<vmem>>, vector<1x1x128xf32>
      %52 = vector.shape_cast %51 : vector<1x1x128xf32> to vector<128xf32>
      %53 = vector.extract_strided_slice %8 {offsets = [0, 6, 0, 0], sizes = [1, 8, 16, 128], strides = [1, 1, 1, 1]} : vector<1x14x16x128xf32> to vector<1x8x16x128xf32>
      %54 = vector.shape_cast %52 : vector<128xf32> to vector<1x1x1x128xf32>
      %55 = vector.broadcast %54 : vector<1x1x1x128xf32> to vector<1x8x16x128xf32>
      %56 = arith.mulf %53, %55 : vector<1x8x16x128xf32>
      %57 = arith.addf %50, %56 : vector<1x8x16x128xf32>
      %c0_20 = arith.constant 0 : index
      %58 = arith.index_cast %4 : i32 to index
      %c1_21 = arith.constant 1 : index
      %c0_22 = arith.constant 0 : index
      %59 = vector.load %arg2[%c0_20, %58, %c1_21, %c0_22] : memref<1x22x22x128xf32, #tpu.memory_space<vmem>>, vector<1x14x16x128xf32>
      %c0_23 = arith.constant 0 : index
      %c1_24 = arith.constant 1 : index
      %c0_25 = arith.constant 0 : index
      %60 = vector.load %arg3[%c0_23, %c1_24, %c0_25] : memref<7x7x128xf32, #tpu.memory_space<vmem>>, vector<1x1x128xf32>
      %61 = vector.shape_cast %60 : vector<1x1x128xf32> to vector<128xf32>
      %62 = vector.extract_strided_slice %59 {offsets = [0, 0, 0, 0], sizes = [1, 8, 16, 128], strides = [1, 1, 1, 1]} : vector<1x14x16x128xf32> to vector<1x8x16x128xf32>
      %63 = vector.shape_cast %61 : vector<128xf32> to vector<1x1x1x128xf32>
      %64 = vector.broadcast %63 : vector<1x1x1x128xf32> to vector<1x8x16x128xf32>
      %65 = arith.mulf %62, %64 : vector<1x8x16x128xf32>
      %66 = arith.addf %57, %65 : vector<1x8x16x128xf32>
      %c1_26 = arith.constant 1 : index
      %c1_27 = arith.constant 1 : index
      %c0_28 = arith.constant 0 : index
      %67 = vector.load %arg3[%c1_26, %c1_27, %c0_28] : memref<7x7x128xf32, #tpu.memory_space<vmem>>, vector<1x1x128xf32>
      %68 = vector.shape_cast %67 : vector<1x1x128xf32> to vector<128xf32>
      %69 = vector.extract_strided_slice %59 {offsets = [0, 1, 0, 0], sizes = [1, 8, 16, 128], strides = [1, 1, 1, 1]} : vector<1x14x16x128xf32> to vector<1x8x16x128xf32>
      %70 = vector.shape_cast %68 : vector<128xf32> to vector<1x1x1x128xf32>
      %71 = vector.broadcast %70 : vector<1x1x1x128xf32> to vector<1x8x16x128xf32>
      %72 = arith.mulf %69, %71 : vector<1x8x16x128xf32>
      %73 = arith.addf %66, %72 : vector<1x8x16x128xf32>
      %c2_29 = arith.constant 2 : index
      %c1_30 = arith.constant 1 : index
      %c0_31 = arith.constant 0 : index
      %74 = vector.load %arg3[%c2_29, %c1_30, %c0_31] : memref<7x7x128xf32, #tpu.memory_space<vmem>>, vector<1x1x128xf32>
      %75 = vector.shape_cast %74 : vector<1x1x128xf32> to vector<128xf32>
      %76 = vector.extract_strided_slice %59 {offsets = [0, 2, 0, 0], sizes = [1, 8, 16, 128], strides = [1, 1, 1, 1]} : vector<1x14x16x128xf32> to vector<1x8x16x128xf32>
      %77 = vector.shape_cast %75 : vector<128xf32> to vector<1x1x1x128xf32>
      %78 = vector.broadcast %77 : vector<1x1x1x128xf32> to vector<1x8x16x128xf32>
      %79 = arith.mulf %76, %78 : vector<1x8x16x128xf32>
      %80 = arith.addf %73, %79 : vector<1x8x16x128xf32>
      %c3_32 = arith.constant 3 : index
      %c1_33 = arith.constant 1 : index
      %c0_34 = arith.constant 0 : index
      %81 = vector.load %arg3[%c3_32, %c1_33, %c0_34] : memref<7x7x128xf32, #tpu.memory_space<vmem>>, vector<1x1x128xf32>
      %82 = vector.shape_cast %81 : vector<1x1x128xf32> to vector<128xf32>
      %83 = vector.extract_strided_slice %59 {offsets = [0, 3, 0, 0], sizes = [1, 8, 16, 128], strides = [1, 1, 1, 1]} : vector<1x14x16x128xf32> to vector<1x8x16x128xf32>
      %84 = vector.shape_cast %82 : vector<128xf32> to vector<1x1x1x128xf32>
      %85 = vector.broadcast %84 : vector<1x1x1x128xf32> to vector<1x8x16x128xf32>
      %86 = arith.mulf %83, %85 : vector<1x8x16x128xf32>
      %87 = arith.addf %80, %86 : vector<1x8x16x128xf32>
      %c4_35 = arith.constant 4 : index
      %c1_36 = arith.constant 1 : index
      %c0_37 = arith.constant 0 : index
      %88 = vector.load %arg3[%c4_35, %c1_36, %c0_37] : memref<7x7x128xf32, #tpu.memory_space<vmem>>, vector<1x1x128xf32>
      %89 = vector.shape_cast %88 : vector<1x1x128xf32> to vector<128xf32>
      %90 = vector.extract_strided_slice %59 {offsets = [0, 4, 0, 0], sizes = [1, 8, 16, 128], strides = [1, 1, 1, 1]} : vector<1x14x16x128xf32> to vector<1x8x16x128xf32>
      %91 = vector.shape_cast %89 : vector<128xf32> to vector<1x1x1x128xf32>
      %92 = vector.broadcast %91 : vector<1x1x1x128xf32> to vector<1x8x16x128xf32>
      %93 = arith.mulf %90, %92 : vector<1x8x16x128xf32>
      %94 = arith.addf %87, %93 : vector<1x8x16x128xf32>
      %c5_38 = arith.constant 5 : index
      %c1_39 = arith.constant 1 : index
      %c0_40 = arith.constant 0 : index
      %95 = vector.load %arg3[%c5_38, %c1_39, %c0_40] : memref<7x7x128xf32, #tpu.memory_space<vmem>>, vector<1x1x128xf32>
      %96 = vector.shape_cast %95 : vector<1x1x128xf32> to vector<128xf32>
      %97 = vector.extract_strided_slice %59 {offsets = [0, 5, 0, 0], sizes = [1, 8, 16, 128], strides = [1, 1, 1, 1]} : vector<1x14x16x128xf32> to vector<1x8x16x128xf32>
      %98 = vector.shape_cast %96 : vector<128xf32> to vector<1x1x1x128xf32>
      %99 = vector.broadcast %98 : vector<1x1x1x128xf32> to vector<1x8x16x128xf32>
      %100 = arith.mulf %97, %99 : vector<1x8x16x128xf32>
      %101 = arith.addf %94, %100 : vector<1x8x16x128xf32>
      %c6_41 = arith.constant 6 : index
      %c1_42 = arith.constant 1 : index
      %c0_43 = arith.constant 0 : index
      %102 = vector.load %arg3[%c6_41, %c1_42, %c0_43] : memref<7x7x128xf32, #tpu.memory_space<vmem>>, vector<1x1x128xf32>
      %103 = vector.shape_cast %102 : vector<1x1x128xf32> to vector<128xf32>
      %104 = vector.extract_strided_slice %59 {offsets = [0, 6, 0, 0], sizes = [1, 8, 16, 128], strides = [1, 1, 1, 1]} : vector<1x14x16x128xf32> to vector<1x8x16x128xf32>
      %105 = vector.shape_cast %103 : vector<128xf32> to vector<1x1x1x128xf32>
      %106 = vector.broadcast %105 : vector<1x1x1x128xf32> to vector<1x8x16x128xf32>
      %107 = arith.mulf %104, %106 : vector<1x8x16x128xf32>
      %108 = arith.addf %101, %107 : vector<1x8x16x128xf32>
      %c0_44 = arith.constant 0 : index
      %109 = arith.index_cast %4 : i32 to index
      %c2_45 = arith.constant 2 : index
      %c0_46 = arith.constant 0 : index
      %110 = vector.load %arg2[%c0_44, %109, %c2_45, %c0_46] : memref<1x22x22x128xf32, #tpu.memory_space<vmem>>, vector<1x14x16x128xf32>
      %c0_47 = arith.constant 0 : index
      %c2_48 = arith.constant 2 : index
      %c0_49 = arith.constant 0 : index
      %111 = vector.load %arg3[%c0_47, %c2_48, %c0_49] : memref<7x7x128xf32, #tpu.memory_space<vmem>>, vector<1x1x128xf32>
      %112 = vector.shape_cast %111 : vector<1x1x128xf32> to vector<128xf32>
      %113 = vector.extract_strided_slice %110 {offsets = [0, 0, 0, 0], sizes = [1, 8, 16, 128], strides = [1, 1, 1, 1]} : vector<1x14x16x128xf32> to vector<1x8x16x128xf32>
      %114 = vector.shape_cast %112 : vector<128xf32> to vector<1x1x1x128xf32>
      %115 = vector.broadcast %114 : vector<1x1x1x128xf32> to vector<1x8x16x128xf32>
      %116 = arith.mulf %113, %115 : vector<1x8x16x128xf32>
      %117 = arith.addf %108, %116 : vector<1x8x16x128xf32>
      %c1_50 = arith.constant 1 : index
      %c2_51 = arith.constant 2 : index
      %c0_52 = arith.constant 0 : index
      %118 = vector.load %arg3[%c1_50, %c2_51, %c0_52] : memref<7x7x128xf32, #tpu.memory_space<vmem>>, vector<1x1x128xf32>
      %119 = vector.shape_cast %118 : vector<1x1x128xf32> to vector<128xf32>
      %120 = vector.extract_strided_slice %110 {offsets = [0, 1, 0, 0], sizes = [1, 8, 16, 128], strides = [1, 1, 1, 1]} : vector<1x14x16x128xf32> to vector<1x8x16x128xf32>
      %121 = vector.shape_cast %119 : vector<128xf32> to vector<1x1x1x128xf32>
      %122 = vector.broadcast %121 : vector<1x1x1x128xf32> to vector<1x8x16x128xf32>
      %123 = arith.mulf %120, %122 : vector<1x8x16x128xf32>
      %124 = arith.addf %117, %123 : vector<1x8x16x128xf32>
      %c2_53 = arith.constant 2 : index
      %c2_54 = arith.constant 2 : index
      %c0_55 = arith.constant 0 : index
      %125 = vector.load %arg3[%c2_53, %c2_54, %c0_55] : memref<7x7x128xf32, #tpu.memory_space<vmem>>, vector<1x1x128xf32>
      %126 = vector.shape_cast %125 : vector<1x1x128xf32> to vector<128xf32>
      %127 = vector.extract_strided_slice %110 {offsets = [0, 2, 0, 0], sizes = [1, 8, 16, 128], strides = [1, 1, 1, 1]} : vector<1x14x16x128xf32> to vector<1x8x16x128xf32>
      %128 = vector.shape_cast %126 : vector<128xf32> to vector<1x1x1x128xf32>
      %129 = vector.broadcast %128 : vector<1x1x1x128xf32> to vector<1x8x16x128xf32>
      %130 = arith.mulf %127, %129 : vector<1x8x16x128xf32>
      %131 = arith.addf %124, %130 : vector<1x8x16x128xf32>
      %c3_56 = arith.constant 3 : index
      %c2_57 = arith.constant 2 : index
      %c0_58 = arith.constant 0 : index
      %132 = vector.load %arg3[%c3_56, %c2_57, %c0_58] : memref<7x7x128xf32, #tpu.memory_space<vmem>>, vector<1x1x128xf32>
      %133 = vector.shape_cast %132 : vector<1x1x128xf32> to vector<128xf32>
      %134 = vector.extract_strided_slice %110 {offsets = [0, 3, 0, 0], sizes = [1, 8, 16, 128], strides = [1, 1, 1, 1]} : vector<1x14x16x128xf32> to vector<1x8x16x128xf32>
      %135 = vector.shape_cast %133 : vector<128xf32> to vector<1x1x1x128xf32>
      %136 = vector.broadcast %135 : vector<1x1x1x128xf32> to vector<1x8x16x128xf32>
      %137 = arith.mulf %134, %136 : vector<1x8x16x128xf32>
      %138 = arith.addf %131, %137 : vector<1x8x16x128xf32>
      %c4_59 = arith.constant 4 : index
      %c2_60 = arith.constant 2 : index
      %c0_61 = arith.constant 0 : index
      %139 = vector.load %arg3[%c4_59, %c2_60, %c0_61] : memref<7x7x128xf32, #tpu.memory_space<vmem>>, vector<1x1x128xf32>
      %140 = vector.shape_cast %139 : vector<1x1x128xf32> to vector<128xf32>
      %141 = vector.extract_strided_slice %110 {offsets = [0, 4, 0, 0], sizes = [1, 8, 16, 128], strides = [1, 1, 1, 1]} : vector<1x14x16x128xf32> to vector<1x8x16x128xf32>
      %142 = vector.shape_cast %140 : vector<128xf32> to vector<1x1x1x128xf32>
      %143 = vector.broadcast %142 : vector<1x1x1x128xf32> to vector<1x8x16x128xf32>
      %144 = arith.mulf %141, %143 : vector<1x8x16x128xf32>
      %145 = arith.addf %138, %144 : vector<1x8x16x128xf32>
      %c5_62 = arith.constant 5 : index
      %c2_63 = arith.constant 2 : index
      %c0_64 = arith.constant 0 : index
      %146 = vector.load %arg3[%c5_62, %c2_63, %c0_64] : memref<7x7x128xf32, #tpu.memory_space<vmem>>, vector<1x1x128xf32>
      %147 = vector.shape_cast %146 : vector<1x1x128xf32> to vector<128xf32>
      %148 = vector.extract_strided_slice %110 {offsets = [0, 5, 0, 0], sizes = [1, 8, 16, 128], strides = [1, 1, 1, 1]} : vector<1x14x16x128xf32> to vector<1x8x16x128xf32>
      %149 = vector.shape_cast %147 : vector<128xf32> to vector<1x1x1x128xf32>
      %150 = vector.broadcast %149 : vector<1x1x1x128xf32> to vector<1x8x16x128xf32>
      %151 = arith.mulf %148, %150 : vector<1x8x16x128xf32>
      %152 = arith.addf %145, %151 : vector<1x8x16x128xf32>
      %c6_65 = arith.constant 6 : index
      %c2_66 = arith.constant 2 : index
      %c0_67 = arith.constant 0 : index
      %153 = vector.load %arg3[%c6_65, %c2_66, %c0_67] : memref<7x7x128xf32, #tpu.memory_space<vmem>>, vector<1x1x128xf32>
      %154 = vector.shape_cast %153 : vector<1x1x128xf32> to vector<128xf32>
      %155 = vector.extract_strided_slice %110 {offsets = [0, 6, 0, 0], sizes = [1, 8, 16, 128], strides = [1, 1, 1, 1]} : vector<1x14x16x128xf32> to vector<1x8x16x128xf32>
      %156 = vector.shape_cast %154 : vector<128xf32> to vector<1x1x1x128xf32>
      %157 = vector.broadcast %156 : vector<1x1x1x128xf32> to vector<1x8x16x128xf32>
      %158 = arith.mulf %155, %157 : vector<1x8x16x128xf32>
      %159 = arith.addf %152, %158 : vector<1x8x16x128xf32>
      %c0_68 = arith.constant 0 : index
      %160 = arith.index_cast %4 : i32 to index
      %c3_69 = arith.constant 3 : index
      %c0_70 = arith.constant 0 : index
      %161 = vector.load %arg2[%c0_68, %160, %c3_69, %c0_70] : memref<1x22x22x128xf32, #tpu.memory_space<vmem>>, vector<1x14x16x128xf32>
      %c0_71 = arith.constant 0 : index
      %c3_72 = arith.constant 3 : index
      %c0_73 = arith.constant 0 : index
      %162 = vector.load %arg3[%c0_71, %c3_72, %c0_73] : memref<7x7x128xf32, #tpu.memory_space<vmem>>, vector<1x1x128xf32>
      %163 = vector.shape_cast %162 : vector<1x1x128xf32> to vector<128xf32>
      %164 = vector.extract_strided_slice %161 {offsets = [0, 0, 0, 0], sizes = [1, 8, 16, 128], strides = [1, 1, 1, 1]} : vector<1x14x16x128xf32> to vector<1x8x16x128xf32>
      %165 = vector.shape_cast %163 : vector<128xf32> to vector<1x1x1x128xf32>
      %166 = vector.broadcast %165 : vector<1x1x1x128xf32> to vector<1x8x16x128xf32>
      %167 = arith.mulf %164, %166 : vector<1x8x16x128xf32>
      %168 = arith.addf %159, %167 : vector<1x8x16x128xf32>
      %c1_74 = arith.constant 1 : index
      %c3_75 = arith.constant 3 : index
      %c0_76 = arith.constant 0 : index
      %169 = vector.load %arg3[%c1_74, %c3_75, %c0_76] : memref<7x7x128xf32, #tpu.memory_space<vmem>>, vector<1x1x128xf32>
      %170 = vector.shape_cast %169 : vector<1x1x128xf32> to vector<128xf32>
      %171 = vector.extract_strided_slice %161 {offsets = [0, 1, 0, 0], sizes = [1, 8, 16, 128], strides = [1, 1, 1, 1]} : vector<1x14x16x128xf32> to vector<1x8x16x128xf32>
      %172 = vector.shape_cast %170 : vector<128xf32> to vector<1x1x1x128xf32>
      %173 = vector.broadcast %172 : vector<1x1x1x128xf32> to vector<1x8x16x128xf32>
      %174 = arith.mulf %171, %173 : vector<1x8x16x128xf32>
      %175 = arith.addf %168, %174 : vector<1x8x16x128xf32>
      %c2_77 = arith.constant 2 : index
      %c3_78 = arith.constant 3 : index
      %c0_79 = arith.constant 0 : index
      %176 = vector.load %arg3[%c2_77, %c3_78, %c0_79] : memref<7x7x128xf32, #tpu.memory_space<vmem>>, vector<1x1x128xf32>
      %177 = vector.shape_cast %176 : vector<1x1x128xf32> to vector<128xf32>
      %178 = vector.extract_strided_slice %161 {offsets = [0, 2, 0, 0], sizes = [1, 8, 16, 128], strides = [1, 1, 1, 1]} : vector<1x14x16x128xf32> to vector<1x8x16x128xf32>
      %179 = vector.shape_cast %177 : vector<128xf32> to vector<1x1x1x128xf32>
      %180 = vector.broadcast %179 : vector<1x1x1x128xf32> to vector<1x8x16x128xf32>
      %181 = arith.mulf %178, %180 : vector<1x8x16x128xf32>
      %182 = arith.addf %175, %181 : vector<1x8x16x128xf32>
      %c3_80 = arith.constant 3 : index
      %c3_81 = arith.constant 3 : index
      %c0_82 = arith.constant 0 : index
      %183 = vector.load %arg3[%c3_80, %c3_81, %c0_82] : memref<7x7x128xf32, #tpu.memory_space<vmem>>, vector<1x1x128xf32>
      %184 = vector.shape_cast %183 : vector<1x1x128xf32> to vector<128xf32>
      %185 = vector.extract_strided_slice %161 {offsets = [0, 3, 0, 0], sizes = [1, 8, 16, 128], strides = [1, 1, 1, 1]} : vector<1x14x16x128xf32> to vector<1x8x16x128xf32>
      %186 = vector.shape_cast %184 : vector<128xf32> to vector<1x1x1x128xf32>
      %187 = vector.broadcast %186 : vector<1x1x1x128xf32> to vector<1x8x16x128xf32>
      %188 = arith.mulf %185, %187 : vector<1x8x16x128xf32>
      %189 = arith.addf %182, %188 : vector<1x8x16x128xf32>
      %c4_83 = arith.constant 4 : index
      %c3_84 = arith.constant 3 : index
      %c0_85 = arith.constant 0 : index
      %190 = vector.load %arg3[%c4_83, %c3_84, %c0_85] : memref<7x7x128xf32, #tpu.memory_space<vmem>>, vector<1x1x128xf32>
      %191 = vector.shape_cast %190 : vector<1x1x128xf32> to vector<128xf32>
      %192 = vector.extract_strided_slice %161 {offsets = [0, 4, 0, 0], sizes = [1, 8, 16, 128], strides = [1, 1, 1, 1]} : vector<1x14x16x128xf32> to vector<1x8x16x128xf32>
      %193 = vector.shape_cast %191 : vector<128xf32> to vector<1x1x1x128xf32>
      %194 = vector.broadcast %193 : vector<1x1x1x128xf32> to vector<1x8x16x128xf32>
      %195 = arith.mulf %192, %194 : vector<1x8x16x128xf32>
      %196 = arith.addf %189, %195 : vector<1x8x16x128xf32>
      %c5_86 = arith.constant 5 : index
      %c3_87 = arith.constant 3 : index
      %c0_88 = arith.constant 0 : index
      %197 = vector.load %arg3[%c5_86, %c3_87, %c0_88] : memref<7x7x128xf32, #tpu.memory_space<vmem>>, vector<1x1x128xf32>
      %198 = vector.shape_cast %197 : vector<1x1x128xf32> to vector<128xf32>
      %199 = vector.extract_strided_slice %161 {offsets = [0, 5, 0, 0], sizes = [1, 8, 16, 128], strides = [1, 1, 1, 1]} : vector<1x14x16x128xf32> to vector<1x8x16x128xf32>
      %200 = vector.shape_cast %198 : vector<128xf32> to vector<1x1x1x128xf32>
      %201 = vector.broadcast %200 : vector<1x1x1x128xf32> to vector<1x8x16x128xf32>
      %202 = arith.mulf %199, %201 : vector<1x8x16x128xf32>
      %203 = arith.addf %196, %202 : vector<1x8x16x128xf32>
      %c6_89 = arith.constant 6 : index
      %c3_90 = arith.constant 3 : index
      %c0_91 = arith.constant 0 : index
      %204 = vector.load %arg3[%c6_89, %c3_90, %c0_91] : memref<7x7x128xf32, #tpu.memory_space<vmem>>, vector<1x1x128xf32>
      %205 = vector.shape_cast %204 : vector<1x1x128xf32> to vector<128xf32>
      %206 = vector.extract_strided_slice %161 {offsets = [0, 6, 0, 0], sizes = [1, 8, 16, 128], strides = [1, 1, 1, 1]} : vector<1x14x16x128xf32> to vector<1x8x16x128xf32>
      %207 = vector.shape_cast %205 : vector<128xf32> to vector<1x1x1x128xf32>
      %208 = vector.broadcast %207 : vector<1x1x1x128xf32> to vector<1x8x16x128xf32>
      %209 = arith.mulf %206, %208 : vector<1x8x16x128xf32>
      %210 = arith.addf %203, %209 : vector<1x8x16x128xf32>
      %c0_92 = arith.constant 0 : index
      %211 = arith.index_cast %4 : i32 to index
      %c4_93 = arith.constant 4 : index
      %c0_94 = arith.constant 0 : index
      %212 = vector.load %arg2[%c0_92, %211, %c4_93, %c0_94] : memref<1x22x22x128xf32, #tpu.memory_space<vmem>>, vector<1x14x16x128xf32>
      %c0_95 = arith.constant 0 : index
      %c4_96 = arith.constant 4 : index
      %c0_97 = arith.constant 0 : index
      %213 = vector.load %arg3[%c0_95, %c4_96, %c0_97] : memref<7x7x128xf32, #tpu.memory_space<vmem>>, vector<1x1x128xf32>
      %214 = vector.shape_cast %213 : vector<1x1x128xf32> to vector<128xf32>
      %215 = vector.extract_strided_slice %212 {offsets = [0, 0, 0, 0], sizes = [1, 8, 16, 128], strides = [1, 1, 1, 1]} : vector<1x14x16x128xf32> to vector<1x8x16x128xf32>
      %216 = vector.shape_cast %214 : vector<128xf32> to vector<1x1x1x128xf32>
      %217 = vector.broadcast %216 : vector<1x1x1x128xf32> to vector<1x8x16x128xf32>
      %218 = arith.mulf %215, %217 : vector<1x8x16x128xf32>
      %219 = arith.addf %210, %218 : vector<1x8x16x128xf32>
      %c1_98 = arith.constant 1 : index
      %c4_99 = arith.constant 4 : index
      %c0_100 = arith.constant 0 : index
      %220 = vector.load %arg3[%c1_98, %c4_99, %c0_100] : memref<7x7x128xf32, #tpu.memory_space<vmem>>, vector<1x1x128xf32>
      %221 = vector.shape_cast %220 : vector<1x1x128xf32> to vector<128xf32>
      %222 = vector.extract_strided_slice %212 {offsets = [0, 1, 0, 0], sizes = [1, 8, 16, 128], strides = [1, 1, 1, 1]} : vector<1x14x16x128xf32> to vector<1x8x16x128xf32>
      %223 = vector.shape_cast %221 : vector<128xf32> to vector<1x1x1x128xf32>
      %224 = vector.broadcast %223 : vector<1x1x1x128xf32> to vector<1x8x16x128xf32>
      %225 = arith.mulf %222, %224 : vector<1x8x16x128xf32>
      %226 = arith.addf %219, %225 : vector<1x8x16x128xf32>
      %c2_101 = arith.constant 2 : index
      %c4_102 = arith.constant 4 : index
      %c0_103 = arith.constant 0 : index
      %227 = vector.load %arg3[%c2_101, %c4_102, %c0_103] : memref<7x7x128xf32, #tpu.memory_space<vmem>>, vector<1x1x128xf32>
      %228 = vector.shape_cast %227 : vector<1x1x128xf32> to vector<128xf32>
      %229 = vector.extract_strided_slice %212 {offsets = [0, 2, 0, 0], sizes = [1, 8, 16, 128], strides = [1, 1, 1, 1]} : vector<1x14x16x128xf32> to vector<1x8x16x128xf32>
      %230 = vector.shape_cast %228 : vector<128xf32> to vector<1x1x1x128xf32>
      %231 = vector.broadcast %230 : vector<1x1x1x128xf32> to vector<1x8x16x128xf32>
      %232 = arith.mulf %229, %231 : vector<1x8x16x128xf32>
      %233 = arith.addf %226, %232 : vector<1x8x16x128xf32>
      %c3_104 = arith.constant 3 : index
      %c4_105 = arith.constant 4 : index
      %c0_106 = arith.constant 0 : index
      %234 = vector.load %arg3[%c3_104, %c4_105, %c0_106] : memref<7x7x128xf32, #tpu.memory_space<vmem>>, vector<1x1x128xf32>
      %235 = vector.shape_cast %234 : vector<1x1x128xf32> to vector<128xf32>
      %236 = vector.extract_strided_slice %212 {offsets = [0, 3, 0, 0], sizes = [1, 8, 16, 128], strides = [1, 1, 1, 1]} : vector<1x14x16x128xf32> to vector<1x8x16x128xf32>
      %237 = vector.shape_cast %235 : vector<128xf32> to vector<1x1x1x128xf32>
      %238 = vector.broadcast %237 : vector<1x1x1x128xf32> to vector<1x8x16x128xf32>
      %239 = arith.mulf %236, %238 : vector<1x8x16x128xf32>
      %240 = arith.addf %233, %239 : vector<1x8x16x128xf32>
      %c4_107 = arith.constant 4 : index
      %c4_108 = arith.constant 4 : index
      %c0_109 = arith.constant 0 : index
      %241 = vector.load %arg3[%c4_107, %c4_108, %c0_109] : memref<7x7x128xf32, #tpu.memory_space<vmem>>, vector<1x1x128xf32>
      %242 = vector.shape_cast %241 : vector<1x1x128xf32> to vector<128xf32>
      %243 = vector.extract_strided_slice %212 {offsets = [0, 4, 0, 0], sizes = [1, 8, 16, 128], strides = [1, 1, 1, 1]} : vector<1x14x16x128xf32> to vector<1x8x16x128xf32>
      %244 = vector.shape_cast %242 : vector<128xf32> to vector<1x1x1x128xf32>
      %245 = vector.broadcast %244 : vector<1x1x1x128xf32> to vector<1x8x16x128xf32>
      %246 = arith.mulf %243, %245 : vector<1x8x16x128xf32>
      %247 = arith.addf %240, %246 : vector<1x8x16x128xf32>
      %c5_110 = arith.constant 5 : index
      %c4_111 = arith.constant 4 : index
      %c0_112 = arith.constant 0 : index
      %248 = vector.load %arg3[%c5_110, %c4_111, %c0_112] : memref<7x7x128xf32, #tpu.memory_space<vmem>>, vector<1x1x128xf32>
      %249 = vector.shape_cast %248 : vector<1x1x128xf32> to vector<128xf32>
      %250 = vector.extract_strided_slice %212 {offsets = [0, 5, 0, 0], sizes = [1, 8, 16, 128], strides = [1, 1, 1, 1]} : vector<1x14x16x128xf32> to vector<1x8x16x128xf32>
      %251 = vector.shape_cast %249 : vector<128xf32> to vector<1x1x1x128xf32>
      %252 = vector.broadcast %251 : vector<1x1x1x128xf32> to vector<1x8x16x128xf32>
      %253 = arith.mulf %250, %252 : vector<1x8x16x128xf32>
      %254 = arith.addf %247, %253 : vector<1x8x16x128xf32>
      %c6_113 = arith.constant 6 : index
      %c4_114 = arith.constant 4 : index
      %c0_115 = arith.constant 0 : index
      %255 = vector.load %arg3[%c6_113, %c4_114, %c0_115] : memref<7x7x128xf32, #tpu.memory_space<vmem>>, vector<1x1x128xf32>
      %256 = vector.shape_cast %255 : vector<1x1x128xf32> to vector<128xf32>
      %257 = vector.extract_strided_slice %212 {offsets = [0, 6, 0, 0], sizes = [1, 8, 16, 128], strides = [1, 1, 1, 1]} : vector<1x14x16x128xf32> to vector<1x8x16x128xf32>
      %258 = vector.shape_cast %256 : vector<128xf32> to vector<1x1x1x128xf32>
      %259 = vector.broadcast %258 : vector<1x1x1x128xf32> to vector<1x8x16x128xf32>
      %260 = arith.mulf %257, %259 : vector<1x8x16x128xf32>
      %261 = arith.addf %254, %260 : vector<1x8x16x128xf32>
      %c0_116 = arith.constant 0 : index
      %262 = arith.index_cast %4 : i32 to index
      %c5_117 = arith.constant 5 : index
      %c0_118 = arith.constant 0 : index
      %263 = vector.load %arg2[%c0_116, %262, %c5_117, %c0_118] : memref<1x22x22x128xf32, #tpu.memory_space<vmem>>, vector<1x14x16x128xf32>
      %c0_119 = arith.constant 0 : index
      %c5_120 = arith.constant 5 : index
      %c0_121 = arith.constant 0 : index
      %264 = vector.load %arg3[%c0_119, %c5_120, %c0_121] : memref<7x7x128xf32, #tpu.memory_space<vmem>>, vector<1x1x128xf32>
      %265 = vector.shape_cast %264 : vector<1x1x128xf32> to vector<128xf32>
      %266 = vector.extract_strided_slice %263 {offsets = [0, 0, 0, 0], sizes = [1, 8, 16, 128], strides = [1, 1, 1, 1]} : vector<1x14x16x128xf32> to vector<1x8x16x128xf32>
      %267 = vector.shape_cast %265 : vector<128xf32> to vector<1x1x1x128xf32>
      %268 = vector.broadcast %267 : vector<1x1x1x128xf32> to vector<1x8x16x128xf32>
      %269 = arith.mulf %266, %268 : vector<1x8x16x128xf32>
      %270 = arith.addf %261, %269 : vector<1x8x16x128xf32>
      %c1_122 = arith.constant 1 : index
      %c5_123 = arith.constant 5 : index
      %c0_124 = arith.constant 0 : index
      %271 = vector.load %arg3[%c1_122, %c5_123, %c0_124] : memref<7x7x128xf32, #tpu.memory_space<vmem>>, vector<1x1x128xf32>
      %272 = vector.shape_cast %271 : vector<1x1x128xf32> to vector<128xf32>
      %273 = vector.extract_strided_slice %263 {offsets = [0, 1, 0, 0], sizes = [1, 8, 16, 128], strides = [1, 1, 1, 1]} : vector<1x14x16x128xf32> to vector<1x8x16x128xf32>
      %274 = vector.shape_cast %272 : vector<128xf32> to vector<1x1x1x128xf32>
      %275 = vector.broadcast %274 : vector<1x1x1x128xf32> to vector<1x8x16x128xf32>
      %276 = arith.mulf %273, %275 : vector<1x8x16x128xf32>
      %277 = arith.addf %270, %276 : vector<1x8x16x128xf32>
      %c2_125 = arith.constant 2 : index
      %c5_126 = arith.constant 5 : index
      %c0_127 = arith.constant 0 : index
      %278 = vector.load %arg3[%c2_125, %c5_126, %c0_127] : memref<7x7x128xf32, #tpu.memory_space<vmem>>, vector<1x1x128xf32>
      %279 = vector.shape_cast %278 : vector<1x1x128xf32> to vector<128xf32>
      %280 = vector.extract_strided_slice %263 {offsets = [0, 2, 0, 0], sizes = [1, 8, 16, 128], strides = [1, 1, 1, 1]} : vector<1x14x16x128xf32> to vector<1x8x16x128xf32>
      %281 = vector.shape_cast %279 : vector<128xf32> to vector<1x1x1x128xf32>
      %282 = vector.broadcast %281 : vector<1x1x1x128xf32> to vector<1x8x16x128xf32>
      %283 = arith.mulf %280, %282 : vector<1x8x16x128xf32>
      %284 = arith.addf %277, %283 : vector<1x8x16x128xf32>
      %c3_128 = arith.constant 3 : index
      %c5_129 = arith.constant 5 : index
      %c0_130 = arith.constant 0 : index
      %285 = vector.load %arg3[%c3_128, %c5_129, %c0_130] : memref<7x7x128xf32, #tpu.memory_space<vmem>>, vector<1x1x128xf32>
      %286 = vector.shape_cast %285 : vector<1x1x128xf32> to vector<128xf32>
      %287 = vector.extract_strided_slice %263 {offsets = [0, 3, 0, 0], sizes = [1, 8, 16, 128], strides = [1, 1, 1, 1]} : vector<1x14x16x128xf32> to vector<1x8x16x128xf32>
      %288 = vector.shape_cast %286 : vector<128xf32> to vector<1x1x1x128xf32>
      %289 = vector.broadcast %288 : vector<1x1x1x128xf32> to vector<1x8x16x128xf32>
      %290 = arith.mulf %287, %289 : vector<1x8x16x128xf32>
      %291 = arith.addf %284, %290 : vector<1x8x16x128xf32>
      %c4_131 = arith.constant 4 : index
      %c5_132 = arith.constant 5 : index
      %c0_133 = arith.constant 0 : index
      %292 = vector.load %arg3[%c4_131, %c5_132, %c0_133] : memref<7x7x128xf32, #tpu.memory_space<vmem>>, vector<1x1x128xf32>
      %293 = vector.shape_cast %292 : vector<1x1x128xf32> to vector<128xf32>
      %294 = vector.extract_strided_slice %263 {offsets = [0, 4, 0, 0], sizes = [1, 8, 16, 128], strides = [1, 1, 1, 1]} : vector<1x14x16x128xf32> to vector<1x8x16x128xf32>
      %295 = vector.shape_cast %293 : vector<128xf32> to vector<1x1x1x128xf32>
      %296 = vector.broadcast %295 : vector<1x1x1x128xf32> to vector<1x8x16x128xf32>
      %297 = arith.mulf %294, %296 : vector<1x8x16x128xf32>
      %298 = arith.addf %291, %297 : vector<1x8x16x128xf32>
      %c5_134 = arith.constant 5 : index
      %c5_135 = arith.constant 5 : index
      %c0_136 = arith.constant 0 : index
      %299 = vector.load %arg3[%c5_134, %c5_135, %c0_136] : memref<7x7x128xf32, #tpu.memory_space<vmem>>, vector<1x1x128xf32>
      %300 = vector.shape_cast %299 : vector<1x1x128xf32> to vector<128xf32>
      %301 = vector.extract_strided_slice %263 {offsets = [0, 5, 0, 0], sizes = [1, 8, 16, 128], strides = [1, 1, 1, 1]} : vector<1x14x16x128xf32> to vector<1x8x16x128xf32>
      %302 = vector.shape_cast %300 : vector<128xf32> to vector<1x1x1x128xf32>
      %303 = vector.broadcast %302 : vector<1x1x1x128xf32> to vector<1x8x16x128xf32>
      %304 = arith.mulf %301, %303 : vector<1x8x16x128xf32>
      %305 = arith.addf %298, %304 : vector<1x8x16x128xf32>
      %c6_137 = arith.constant 6 : index
      %c5_138 = arith.constant 5 : index
      %c0_139 = arith.constant 0 : index
      %306 = vector.load %arg3[%c6_137, %c5_138, %c0_139] : memref<7x7x128xf32, #tpu.memory_space<vmem>>, vector<1x1x128xf32>
      %307 = vector.shape_cast %306 : vector<1x1x128xf32> to vector<128xf32>
      %308 = vector.extract_strided_slice %263 {offsets = [0, 6, 0, 0], sizes = [1, 8, 16, 128], strides = [1, 1, 1, 1]} : vector<1x14x16x128xf32> to vector<1x8x16x128xf32>
      %309 = vector.shape_cast %307 : vector<128xf32> to vector<1x1x1x128xf32>
      %310 = vector.broadcast %309 : vector<1x1x1x128xf32> to vector<1x8x16x128xf32>
      %311 = arith.mulf %308, %310 : vector<1x8x16x128xf32>
      %312 = arith.addf %305, %311 : vector<1x8x16x128xf32>
      %c0_140 = arith.constant 0 : index
      %313 = arith.index_cast %4 : i32 to index
      %c6_141 = arith.constant 6 : index
      %c0_142 = arith.constant 0 : index
      %314 = vector.load %arg2[%c0_140, %313, %c6_141, %c0_142] : memref<1x22x22x128xf32, #tpu.memory_space<vmem>>, vector<1x14x16x128xf32>
      %c0_143 = arith.constant 0 : index
      %c6_144 = arith.constant 6 : index
      %c0_145 = arith.constant 0 : index
      %315 = vector.load %arg3[%c0_143, %c6_144, %c0_145] : memref<7x7x128xf32, #tpu.memory_space<vmem>>, vector<1x1x128xf32>
      %316 = vector.shape_cast %315 : vector<1x1x128xf32> to vector<128xf32>
      %317 = vector.extract_strided_slice %314 {offsets = [0, 0, 0, 0], sizes = [1, 8, 16, 128], strides = [1, 1, 1, 1]} : vector<1x14x16x128xf32> to vector<1x8x16x128xf32>
      %318 = vector.shape_cast %316 : vector<128xf32> to vector<1x1x1x128xf32>
      %319 = vector.broadcast %318 : vector<1x1x1x128xf32> to vector<1x8x16x128xf32>
      %320 = arith.mulf %317, %319 : vector<1x8x16x128xf32>
      %321 = arith.addf %312, %320 : vector<1x8x16x128xf32>
      %c1_146 = arith.constant 1 : index
      %c6_147 = arith.constant 6 : index
      %c0_148 = arith.constant 0 : index
      %322 = vector.load %arg3[%c1_146, %c6_147, %c0_148] : memref<7x7x128xf32, #tpu.memory_space<vmem>>, vector<1x1x128xf32>
      %323 = vector.shape_cast %322 : vector<1x1x128xf32> to vector<128xf32>
      %324 = vector.extract_strided_slice %314 {offsets = [0, 1, 0, 0], sizes = [1, 8, 16, 128], strides = [1, 1, 1, 1]} : vector<1x14x16x128xf32> to vector<1x8x16x128xf32>
      %325 = vector.shape_cast %323 : vector<128xf32> to vector<1x1x1x128xf32>
      %326 = vector.broadcast %325 : vector<1x1x1x128xf32> to vector<1x8x16x128xf32>
      %327 = arith.mulf %324, %326 : vector<1x8x16x128xf32>
      %328 = arith.addf %321, %327 : vector<1x8x16x128xf32>
      %c2_149 = arith.constant 2 : index
      %c6_150 = arith.constant 6 : index
      %c0_151 = arith.constant 0 : index
      %329 = vector.load %arg3[%c2_149, %c6_150, %c0_151] : memref<7x7x128xf32, #tpu.memory_space<vmem>>, vector<1x1x128xf32>
      %330 = vector.shape_cast %329 : vector<1x1x128xf32> to vector<128xf32>
      %331 = vector.extract_strided_slice %314 {offsets = [0, 2, 0, 0], sizes = [1, 8, 16, 128], strides = [1, 1, 1, 1]} : vector<1x14x16x128xf32> to vector<1x8x16x128xf32>
      %332 = vector.shape_cast %330 : vector<128xf32> to vector<1x1x1x128xf32>
      %333 = vector.broadcast %332 : vector<1x1x1x128xf32> to vector<1x8x16x128xf32>
      %334 = arith.mulf %331, %333 : vector<1x8x16x128xf32>
      %335 = arith.addf %328, %334 : vector<1x8x16x128xf32>
      %c3_152 = arith.constant 3 : index
      %c6_153 = arith.constant 6 : index
      %c0_154 = arith.constant 0 : index
      %336 = vector.load %arg3[%c3_152, %c6_153, %c0_154] : memref<7x7x128xf32, #tpu.memory_space<vmem>>, vector<1x1x128xf32>
      %337 = vector.shape_cast %336 : vector<1x1x128xf32> to vector<128xf32>
      %338 = vector.extract_strided_slice %314 {offsets = [0, 3, 0, 0], sizes = [1, 8, 16, 128], strides = [1, 1, 1, 1]} : vector<1x14x16x128xf32> to vector<1x8x16x128xf32>
      %339 = vector.shape_cast %337 : vector<128xf32> to vector<1x1x1x128xf32>
      %340 = vector.broadcast %339 : vector<1x1x1x128xf32> to vector<1x8x16x128xf32>
      %341 = arith.mulf %338, %340 : vector<1x8x16x128xf32>
      %342 = arith.addf %335, %341 : vector<1x8x16x128xf32>
      %c4_155 = arith.constant 4 : index
      %c6_156 = arith.constant 6 : index
      %c0_157 = arith.constant 0 : index
      %343 = vector.load %arg3[%c4_155, %c6_156, %c0_157] : memref<7x7x128xf32, #tpu.memory_space<vmem>>, vector<1x1x128xf32>
      %344 = vector.shape_cast %343 : vector<1x1x128xf32> to vector<128xf32>
      %345 = vector.extract_strided_slice %314 {offsets = [0, 4, 0, 0], sizes = [1, 8, 16, 128], strides = [1, 1, 1, 1]} : vector<1x14x16x128xf32> to vector<1x8x16x128xf32>
      %346 = vector.shape_cast %344 : vector<128xf32> to vector<1x1x1x128xf32>
      %347 = vector.broadcast %346 : vector<1x1x1x128xf32> to vector<1x8x16x128xf32>
      %348 = arith.mulf %345, %347 : vector<1x8x16x128xf32>
      %349 = arith.addf %342, %348 : vector<1x8x16x128xf32>
      %c5_158 = arith.constant 5 : index
      %c6_159 = arith.constant 6 : index
      %c0_160 = arith.constant 0 : index
      %350 = vector.load %arg3[%c5_158, %c6_159, %c0_160] : memref<7x7x128xf32, #tpu.memory_space<vmem>>, vector<1x1x128xf32>
      %351 = vector.shape_cast %350 : vector<1x1x128xf32> to vector<128xf32>
      %352 = vector.extract_strided_slice %314 {offsets = [0, 5, 0, 0], sizes = [1, 8, 16, 128], strides = [1, 1, 1, 1]} : vector<1x14x16x128xf32> to vector<1x8x16x128xf32>
      %353 = vector.shape_cast %351 : vector<128xf32> to vector<1x1x1x128xf32>
      %354 = vector.broadcast %353 : vector<1x1x1x128xf32> to vector<1x8x16x128xf32>
      %355 = arith.mulf %352, %354 : vector<1x8x16x128xf32>
      %356 = arith.addf %349, %355 : vector<1x8x16x128xf32>
      %c6_161 = arith.constant 6 : index
      %c6_162 = arith.constant 6 : index
      %c0_163 = arith.constant 0 : index
      %357 = vector.load %arg3[%c6_161, %c6_162, %c0_163] : memref<7x7x128xf32, #tpu.memory_space<vmem>>, vector<1x1x128xf32>
      %358 = vector.shape_cast %357 : vector<1x1x128xf32> to vector<128xf32>
      %359 = vector.extract_strided_slice %314 {offsets = [0, 6, 0, 0], sizes = [1, 8, 16, 128], strides = [1, 1, 1, 1]} : vector<1x14x16x128xf32> to vector<1x8x16x128xf32>
      %360 = vector.shape_cast %358 : vector<128xf32> to vector<1x1x1x128xf32>
      %361 = vector.broadcast %360 : vector<1x1x1x128xf32> to vector<1x8x16x128xf32>
      %362 = arith.mulf %359, %361 : vector<1x8x16x128xf32>
      %363 = arith.addf %356, %362 : vector<1x8x16x128xf32>
      %c0_164 = arith.constant 0 : index
      %364 = arith.index_cast %4 : i32 to index
      %c0_165 = arith.constant 0 : index
      %c0_166 = arith.constant 0 : index
      %365 = vector.load %arg5[%c0_164, %364, %c0_165, %c0_166] : memref<1x16x16x128xf32, #tpu.memory_space<vmem>>, vector<1x8x16x128xf32>
      tpu.vector_store %arg5[%c0_164, %364, %c0_165, %c0_166], %363 {strides = array<i32>} : memref<1x16x16x128xf32, #tpu.memory_space<vmem>>, vector<1x8x16x128xf32>,
    }
    %c2_i32_1 = arith.constant 2 : i32
    return
  }
  func.func @transform_0(%arg0: i32, %arg1: i32) -> (i32, i32, i32, i32) {
    %c0_i32 = arith.constant 0 : i32
    %c0_i32_0 = arith.constant 0 : i32
    %c0_i32_1 = arith.constant 0 : i32
    return %arg1, %c0_i32, %c0_i32_0, %arg0 : i32, i32, i32, i32
  }
  func.func @transform_1(%arg0: i32, %arg1: i32) -> (i32, i32, i32) {
    %c0_i32 = arith.constant 0 : i32
    %c0_i32_0 = arith.constant 0 : i32
    %c0_i32_1 = arith.constant 0 : i32
    return %c0_i32, %c0_i32_0, %arg0 : i32, i32, i32
  }
  func.func @transform_2(%arg0: i32, %arg1: i32) -> (i32, i32) {
    %c0_i32 = arith.constant 0 : i32
    %c0_i32_0 = arith.constant 0 : i32
    return %c0_i32, %arg0 : i32, i32
  }
  func.func @transform_3(%arg0: i32, %arg1: i32) -> (i32, i32, i32, i32) {
    %c0_i32 = arith.constant 0 : i32
    %c0_i32_0 = arith.constant 0 : i32
    %c0_i32_1 = arith.constant 0 : i32
    return %arg1, %c0_i32, %c0_i32_0, %arg0 : i32, i32, i32, i32
  }
}

</mosaic_0001>

<bundles_post_ra>
// kernel: tpu_custom_call.1
= control target key start
LH: loop header
LB: loop body
LE: loop exit
PB: predicated region body
PF: predicated region fallthrough
CT: control target
= control target key end

     0   :  { %8 = vsyncpa [#allocation3], 0  ;;  %s4209_s0 = inlined_call_operand.vmem [shape: f32[2,22,22,128], index: 0, kind: input, shape index: {}]   ;;  %s4210_s1 = inlined_call_operand.vmem [shape: f32[7,7,128], index: 1, kind: input, shape index: {}]   ;;  %s4211_s2 = inlined_call_operand.vmem [shape: f32[1,128], index: 2, kind: input, shape index: {}]   ;;  %s4212_s3 = inlined_call_operand.hbm [shape: f32[2,16,16,128], index: 3, kind: output, shape index: {}]  }
   0x1   :  { %10 = vsyncpa [#allocation3 + $0x1], 0  ;;  %s2689_s12 = smov 0   ;;  %s2691_s13 = smov 0  }
   0x2   :  { %s2693_s14 = smov 0   ;;  %s2695_s15 = smov 0  }
   0x3   :  { %s2697_s16 = smov 0   ;;  %s2699_s17 = smov 0  }
   0x4 LB: > { %s2403_s18 = sadd.s32 4294967295, %s2660_s17   ;;  %s2404_s19 = sadd.s32 4294967294, %s2660_s17   ;;  %s2660_s17 = sphi %s2699_s17, %s16_s17   ;;  %s2656_s16 = sphi %s2697_s16, %s4219_s16   ;;  %s2652_s15 = sphi %s2695_s15, %s4218_s15   ;;  %s2648_s14 = sphi %s2693_s14, %s4217_s14   ;;  %s2644_s13 = sphi %s2691_s13, %s4216_s13   ;;  %s2640_s12 = sphi %s2689_s12, %s4215_s12  }
   0x5   : > { %s25_s20 = sadd.s32 1, %s2656_s16  ;;  %s117_s21 = sadd.s32 1, %s2648_s14 }
   0x6   : > { %p26_p0 = scmp.ge.s32.totalorder %s25_s20, 2  ;;  %p127_p1 = scmp.ne.s32.totalorder %s2648_s14, %s2644_s13 }
   0x7   : > { %p128_p2 = scmp.eq.s32.totalorder %s2403_s18, 1  ;;  %p133_p3 = scmp.ne.s32.totalorder %s2644_s13, %s2640_s12 }
   0x8   : > { %s4221_s20 = smov (%p26_p0, %s25_s20), 0  ;;  %p134_p5 = scmp.eq.s32.totalorder %s2404_s19, 1 }
   0x9   : > { %p2729_p4 = por %p128_p2, %p127_p1  ;;  %s112_s23 = ssub.s32 %s2656_s16, %s4221_s20 }
   0xa   : > { %p2409_p6 = scmp.ge.s32.totalorder %s2660_s17, 1  ;;  %p115_p7 = scmp.eq.s32.totalorder %s112_s23, 0 }
   0xb   : > { %p2736_p8 = por %p134_p5, %p133_p3  ;;  %p176_p9 = scmp.lt.s32.totalorder %s2660_s17, 3 }
   0xc   : > { %s2742_s25 = scalar_select %p115_p7, %s2648_s14, %s117_s21  }
   0xd   : > { %p177_p10 = pnand %p2409_p6, %p176_p9 }
   0xe   : > { %s207_s26 = sand.u32 (!%p177_p10), 1, %s2644_s13   ;;  %p210_p11 = scmp.lt.s32.totalorder (!%p177_p10), %s2652_s15, 1 }
   0xf   : > { %180 = sbr.rel (%p177_p10) target bundleno = 441 (0x1b9), region = 32  ;;  %s2753_s29 = sshll.u32 (!%p177_p10), %s207_s26, 8 }
  0x10   : > { %s209_s8 = scalar_lea.vmem (!%p177_p10), [#allocation2], %s2753_s29  ;;  %s2762_s9 = smov (!%p177_p10), 0  }
  0x14   : > { %v2749_v0 = vld [vmem:[%s4211_s2] ss:$0 sm:$0xff]  ;;  %s211_s30 = scalar_select %p210_p11, %s2652_s15, 1 }
  0x16   : > { %s2514_s4 = smul.u32 528, %s211_s30 }
  0x18   : > { %s2759_s7 = scalar_lea.vmem %s4209_s0, %s2514_s4 }
  0x19 LB: >> { %s2414_s10 = smul.u32 192, %s2664_s9  ;;  %v2415_v1 = vld [vmem:[%s4210_s1] ss:$0 sm:$0xff]  ;;  %v2774_v2 = vld [vmem:[%s4210_s1 + $0x8] ss:$0 sm:$0xff]  ;;  %s2664_s9 = sphi %s2762_s9, %s231_s9  }
  0x1b   : >> { %s2777_s23 = scalar_lea.vmem %s2759_s7, %s2414_s10  ;;  %s2512_s10 = sshll.u32 %s2664_s9, 7 }
  0x1c   : >> { %v241_v3 = vld [vmem:[%s2777_s23] sm:$0xff]  ;;  %v242_v4 = vld [vmem:[%s2777_s23 + $0x8] sm:$0xff]  ;;  %v243_v5 = vld [vmem:[%s2777_s23 + $0x18] sm:$0xff]  ;;  %s231_s9 = sadd.s32 1, %s2664_s9  }
  0x1d   : >> { %v244_v6 = vld [vmem:[%s2777_s23 + $0x20] sm:$0xff]  ;;  %v2784_v7 = vld [vmem:[%s2777_s23 + $0x30] sm:$0xff]  ;;  %v2787_v8 = vld [vmem:[%s2777_s23 + $0x38] sm:$0xff]  ;;  %v274_v9 = vmul.f32 %v2415_v1, %v241_v3  ;;  %v275_v10 = vmul.f32 %v2415_v1, %v242_v4  ;;  %v276_v11 = vmul.f32 %v2415_v1, %v243_v5  ;;  %v312_v12 = vmul.f32 %v2774_v2, %v243_v5  ;;  %p228_p12 = scmp.ge.s32.totalorder %s231_s9, 2  }
  0x1e   : >> { %v2791_v13 = vld [vmem:[%s2777_s23 + $0x48] sm:$0xff]  ;;  %v2794_v14 = vld [vmem:[%s2777_s23 + $0x50] sm:$0xff]  ;;  %v2797_v15 = vld [vmem:[%s2777_s23 + $0x60] sm:$0xff]  ;;  %v277_v16 = vmul.f32 %v2415_v1, %v244_v6  ;;  %v278_v17 = vmul.f32 %v2415_v1, %v2784_v7  ;;  %v279_v18 = vmul.f32 %v2415_v1, %v2787_v8  ;;  %v313_v19 = vmul.f32 %v2774_v2, %v244_v6  ;;  %s2513_s11 = sshll.u32 (%p228_p12), %s2652_s15, 12  ;;  %s2289_s27 = sshll.u32 (%p228_p12), %s209_s8, 4  ;;  %s4160_s27 = int_to_ptr.vmem [resolvable:$true] %s2289_s27 }
  0x1f   : >> { %v2803_v20 = vld [vmem:[%s2777_s23 + $0x68] sm:$0xff]  ;;  %v2806_v21 = vld [vmem:[%s2777_s23 + $0x78] sm:$0xff]  ;;  %v2809_v22 = vld [vmem:[%s2777_s23 + $0x80] sm:$0xff]  ;;  %v280_v23 = vmul.f32 %v2415_v1, %v2791_v13  ;;  %v281_v24 = vmul.f32 %v2415_v1, %v2794_v14  ;;  %v282_v25 = vmul.f32 %v2415_v1, %v2797_v15  ;;  %v290_v26 = vadd.f32 %v2749_v0, %v274_v9  ;;  %s4156_s21 = scalar_lea.hbm (%p228_p12), %s4212_s3, %s2513_s11  ;;  %s4164_s9 = scalar_lea.sflag (%p228_p12), [#allocation3], %s207_s26 }
  0x20   : >> { %v2816_v27 = vld [vmem:[%s2777_s23 + $0x90] sm:$0xff]  ;;  %v2819_v28 = vld [vmem:[%s2777_s23 + $0x98] sm:$0xff]  ;;  %v2822_v29 = vld [vmem:[%s2777_s23 + $0xa8] sm:$0xff]  ;;  %v283_v30 = vmul.f32 %v2415_v1, %v2803_v20  ;;  %v284_v31 = vmul.f32 %v2415_v1, %v2806_v21  ;;  %v285_v32 = vmul.f32 %v2415_v1, %v2809_v22  ;;  %v291_v33 = vadd.f32 %v2749_v0, %v275_v10  ;;  %s2580_s7 = scalar_lea.vmem (%p228_p12), %s4160_s27, 4096  ;;  %s2666_s15 = smov (%p228_p12), [#allocation2]  }
  0x21   : >> { %v2829_v34 = vld [vmem:[%s2777_s23 + $0xb0] sm:$0xff]  ;;  %v286_v35 = vmul.f32 %v2415_v1, %v2816_v27  ;;  %v287_v36 = vmul.f32 %v2415_v1, %v2819_v28  ;;  %v288_v37 = vmul.f32 %v2415_v1, %v2822_v29  ;;  %v292_v38 = vadd.f32 %v2749_v0, %v276_v11  ;;  %v2848_v51 = vld [vmem:[%s2777_s23 + $0xc0] sm:$0xff]  ;;  %v2851_v52 = vld [vmem:[%s2777_s23 + $0xc8] sm:$0xff]  ;;  %p2581_p13 = scmp.ne.s32.totalorder (%p228_p12), %s4160_s27, %s2580_s7  ;;  %s2584_s28 = sshll.u32 (%p228_p12), %s2666_s15, 4  ;;  %s2585_s28 = int_to_ptr.vmem [resolvable:$false] %s2584_s28 }
  0x22   : >> { %v289_v39 = vmul.f32 %v2415_v1, %v2829_v34  ;;  %v293_v40 = vadd.f32 %v2749_v0, %v277_v16  ;;  %v294_v41 = vadd.f32 %v2749_v0, %v278_v17  ;;  %v295_v42 = vadd.f32 %v2749_v0, %v279_v18  ;;  %s2586_s30 = scalar_lea.vmem (%p228_p12), %s2585_s28, 8192  ;;  %p2587_p2 = scmp.lt.s32.totalorder (%p228_p12), %s4160_s27, %s2585_s28 }
  0x23   : >> { %v296_v43 = vadd.f32 %v2749_v0, %v280_v23  ;;  %v297_v44 = vadd.f32 %v2749_v0, %v281_v24  ;;  %v298_v45 = vadd.f32 %v2749_v0, %v282_v25  ;;  %v299_v46 = vadd.f32 %v2749_v0, %v283_v30  ;;  %v2419_v25 = vld [vmem:[%s4210_s1 + $0x10] ss:$0 sm:$0xff]  ;;  %p2582_p0 = pnand (%p228_p12), %p2581_p13, %p2729_p4  ;;  %p2588_p3 = scmp.lt.s32.totalorder (%p228_p12), %s2586_s30, %s2580_s7 }
  0x24   : >> { %v300_v47 = vadd.f32 %v2749_v0, %v284_v31  ;;  %v301_v48 = vadd.f32 %v2749_v0, %v285_v32  ;;  %v302_v49 = vadd.f32 %v2749_v0, %v286_v35  ;;  %v303_v50 = vadd.f32 %v2749_v0, %v287_v36 }
  0x25   : >> { %v304_v53 = vadd.f32 %v2749_v0, %v288_v37  ;;  %v305_v54 = vadd.f32 %v2749_v0, %v289_v39  ;;  %v314_v55 = vmul.f32 %v2774_v2, %v2784_v7  ;;  %v315_v56 = vmul.f32 %v2774_v2, %v2787_v8  ;;  %p2583_p1 = pneg (%p228_p12), %p2582_p0  ;;  %p2589_p5 = por (%p228_p12), %p2588_p3, %p2587_p2 }
  0x26   : >> { %v316_v57 = vmul.f32 %v2774_v2, %v2791_v13  ;;  %v317_v58 = vmul.f32 %v2774_v2, %v2794_v14  ;;  %v318_v59 = vmul.f32 %v2774_v2, %v2797_v15  ;;  %v319_v60 = vmul.f32 %v2774_v2, %v2803_v20 }
  0x27   : >> { %v320_v61 = vmul.f32 %v2774_v2, %v2806_v21  ;;  %v321_v62 = vmul.f32 %v2774_v2, %v2809_v22  ;;  %v322_v63 = vmul.f32 %v2774_v2, %v2816_v27  ;;  %v323_v1 = vmul.f32 %v2774_v2, %v2819_v28  ;;  %p2590_p6 = pnand (%p228_p12), %p2589_p5, %p2583_p1 }
  0x28   : >> { %v324_v3 = vmul.f32 %v2774_v2, %v2822_v29  ;;  %v325_v4 = vmul.f32 %v2774_v2, %v2829_v34  ;;  %v326_v5 = vmul.f32 %v2774_v2, %v2848_v51  ;;  %v327_v6 = vmul.f32 %v2774_v2, %v2851_v52 }
  0x29   : >> { %v328_v9 = vadd.f32 %v312_v12, %v290_v26  ;;  %v329_v10 = vadd.f32 %v313_v19, %v291_v33  ;;  %v330_v11 = vadd.f32 %v314_v55, %v292_v38  ;;  %v331_v16 = vadd.f32 %v315_v56, %v293_v40  ;;  %v2887_v26 = vld [vmem:[%s2777_s23 + $0xd8] sm:$0xff]  ;;  %v2890_v33 = vld [vmem:[%s2777_s23 + $0xe0] sm:$0xff] }
  0x2a   : >> { %v332_v17 = vadd.f32 %v316_v57, %v294_v41  ;;  %v333_v18 = vadd.f32 %v317_v58, %v295_v42  ;;  %v334_v23 = vadd.f32 %v318_v59, %v296_v43  ;;  %v335_v24 = vadd.f32 %v319_v60, %v297_v44 }
  0x2b   : >> { %v336_v30 = vadd.f32 %v320_v61, %v298_v45  ;;  %v337_v31 = vadd.f32 %v321_v62, %v299_v46  ;;  %v338_v32 = vadd.f32 %v322_v63, %v300_v47  ;;  %v339_v35 = vadd.f32 %v323_v1, %v301_v48  ;;  %v2421_v61 = vld [vmem:[%s4210_s1 + $0x18] ss:$0 sm:$0xff] }
  0x2c   : >> { %v340_v36 = vadd.f32 %v324_v3, %v302_v49  ;;  %v341_v2 = vadd.f32 %v325_v4, %v303_v50  ;;  %v342_v12 = vadd.f32 %v326_v5, %v304_v53  ;;  %v343_v19 = vadd.f32 %v327_v6, %v305_v54 }
  0x2d   : >> { %v350_v37 = vmul.f32 %v2419_v25, %v2784_v7  ;;  %v351_v38 = vmul.f32 %v2419_v25, %v2787_v8  ;;  %v352_v39 = vmul.f32 %v2419_v25, %v2791_v13  ;;  %v353_v40 = vmul.f32 %v2419_v25, %v2794_v14 }
  0x2e   : >> { %v354_v41 = vmul.f32 %v2419_v25, %v2797_v15  ;;  %v355_v42 = vmul.f32 %v2419_v25, %v2803_v20  ;;  %v356_v43 = vmul.f32 %v2419_v25, %v2806_v21  ;;  %v357_v44 = vmul.f32 %v2419_v25, %v2809_v22 }
  0x2f   : >> { %v358_v45 = vmul.f32 %v2419_v25, %v2816_v27  ;;  %v359_v46 = vmul.f32 %v2419_v25, %v2819_v28  ;;  %v360_v7 = vmul.f32 %v2419_v25, %v2822_v29  ;;  %v361_v8 = vmul.f32 %v2419_v25, %v2829_v34 }
  0x30   : >> { %v362_v47 = vmul.f32 %v2419_v25, %v2848_v51  ;;  %v363_v48 = vmul.f32 %v2419_v25, %v2851_v52  ;;  %v364_v49 = vmul.f32 %v2419_v25, %v2887_v26  ;;  %v365_v50 = vmul.f32 %v2419_v25, %v2890_v33 }
  0x31   : >> { %v366_v53 = vadd.f32 %v350_v37, %v328_v9  ;;  %v367_v54 = vadd.f32 %v351_v38, %v329_v10  ;;  %v368_v55 = vadd.f32 %v352_v39, %v330_v11  ;;  %v369_v56 = vadd.f32 %v353_v40, %v331_v16  ;;  %v2912_v10 = vld [vmem:[%s2777_s23 + $0xf0] sm:$0xff]  ;;  %v2915_v11 = vld [vmem:[%s2777_s23 + $0xf8] sm:$0xff] }
  0x32   : >> { %v370_v57 = vadd.f32 %v354_v41, %v332_v17  ;;  %v371_v58 = vadd.f32 %v355_v42, %v333_v18  ;;  %v372_v59 = vadd.f32 %v356_v43, %v334_v23  ;;  %v373_v60 = vadd.f32 %v357_v44, %v335_v24 }
  0x33   : >> { %v374_v62 = vadd.f32 %v358_v45, %v336_v30  ;;  %v375_v63 = vadd.f32 %v359_v46, %v337_v31  ;;  %v376_v1 = vadd.f32 %v360_v7, %v338_v32  ;;  %v377_v3 = vadd.f32 %v361_v8, %v339_v35  ;;  %v2423_v45 = vld [vmem:[%s4210_s1 + $0x20] ss:$0 sm:$0xff] }
  0x34   : >> { %v378_v4 = vadd.f32 %v362_v47, %v340_v36  ;;  %v379_v5 = vadd.f32 %v363_v48, %v341_v2  ;;  %v380_v6 = vadd.f32 %v364_v49, %v342_v12  ;;  %v381_v9 = vadd.f32 %v365_v50, %v343_v19 }
  0x35   : >> { %v388_v16 = vmul.f32 %v2421_v61, %v2791_v13  ;;  %v389_v17 = vmul.f32 %v2421_v61, %v2794_v14  ;;  %v390_v18 = vmul.f32 %v2421_v61, %v2797_v15  ;;  %v391_v23 = vmul.f32 %v2421_v61, %v2803_v20 }
  0x36   : >> { %v392_v24 = vmul.f32 %v2421_v61, %v2806_v21  ;;  %v393_v25 = vmul.f32 %v2421_v61, %v2809_v22  ;;  %v394_v30 = vmul.f32 %v2421_v61, %v2816_v27  ;;  %v395_v31 = vmul.f32 %v2421_v61, %v2819_v28 }
  0x37   : >> { %v396_v32 = vmul.f32 %v2421_v61, %v2822_v29  ;;  %v397_v35 = vmul.f32 %v2421_v61, %v2829_v34  ;;  %v398_v13 = vmul.f32 %v2421_v61, %v2848_v51  ;;  %v399_v14 = vmul.f32 %v2421_v61, %v2851_v52 }
  0x38   : >> { %v400_v36 = vmul.f32 %v2421_v61, %v2887_v26  ;;  %v401_v2 = vmul.f32 %v2421_v61, %v2890_v33  ;;  %v402_v12 = vmul.f32 %v2421_v61, %v2912_v10  ;;  %v403_v19 = vmul.f32 %v2421_v61, %v2915_v11 }
  0x39   : >> { %v404_v37 = vadd.f32 %v388_v16, %v366_v53  ;;  %v405_v38 = vadd.f32 %v389_v17, %v367_v54  ;;  %v406_v39 = vadd.f32 %v390_v18, %v368_v55  ;;  %v407_v40 = vadd.f32 %v391_v23, %v369_v56  ;;  %v2937_v54 = vld [vmem:[%s2777_s23 + $0x108] sm:$0xff]  ;;  %v2940_v55 = vld [vmem:[%s2777_s23 + $0x110] sm:$0xff] }
  0x3a   : >> { %v408_v41 = vadd.f32 %v392_v24, %v370_v57  ;;  %v409_v42 = vadd.f32 %v393_v25, %v371_v58  ;;  %v410_v43 = vadd.f32 %v394_v30, %v372_v59  ;;  %v411_v44 = vadd.f32 %v395_v31, %v373_v60 }
  0x3b   : >> { %v412_v46 = vadd.f32 %v396_v32, %v374_v62  ;;  %v413_v7 = vadd.f32 %v397_v35, %v375_v63  ;;  %v414_v8 = vadd.f32 %v398_v13, %v376_v1  ;;  %v415_v47 = vadd.f32 %v399_v14, %v377_v3  ;;  %v2425_v32 = vld [vmem:[%s4210_s1 + $0x28] ss:$0 sm:$0xff] }
  0x3c   : >> { %v416_v48 = vadd.f32 %v400_v36, %v378_v4  ;;  %v417_v49 = vadd.f32 %v401_v2, %v379_v5  ;;  %v418_v50 = vadd.f32 %v402_v12, %v380_v6  ;;  %v419_v53 = vadd.f32 %v403_v19, %v381_v9 }
  0x3d   : >> { %v426_v56 = vmul.f32 %v2423_v45, %v2797_v15  ;;  %v427_v57 = vmul.f32 %v2423_v45, %v2803_v20  ;;  %v428_v58 = vmul.f32 %v2423_v45, %v2806_v21  ;;  %v429_v59 = vmul.f32 %v2423_v45, %v2809_v22 }
  0x3e   : >> { %v430_v60 = vmul.f32 %v2423_v45, %v2816_v27  ;;  %v431_v61 = vmul.f32 %v2423_v45, %v2819_v28  ;;  %v432_v62 = vmul.f32 %v2423_v45, %v2822_v29  ;;  %v433_v63 = vmul.f32 %v2423_v45, %v2829_v34 }
  0x3f   : >> { %v434_v1 = vmul.f32 %v2423_v45, %v2848_v51  ;;  %v435_v3 = vmul.f32 %v2423_v45, %v2851_v52  ;;  %v436_v15 = vmul.f32 %v2423_v45, %v2887_v26  ;;  %v437_v20 = vmul.f32 %v2423_v45, %v2890_v33 }
  0x40   : >> { %v438_v4 = vmul.f32 %v2423_v45, %v2912_v10  ;;  %v439_v5 = vmul.f32 %v2423_v45, %v2915_v11  ;;  %v440_v6 = vmul.f32 %v2423_v45, %v2937_v54  ;;  %v441_v9 = vmul.f32 %v2423_v45, %v2940_v55 }
  0x41   : >> { %v442_v16 = vadd.f32 %v426_v56, %v404_v37  ;;  %v443_v17 = vadd.f32 %v427_v57, %v405_v38  ;;  %v444_v18 = vadd.f32 %v428_v58, %v406_v39  ;;  %v445_v23 = vadd.f32 %v429_v59, %v407_v40  ;;  %v265_v38 = vld [vmem:[%s2777_s23 + $0x120] sm:$0xff]  ;;  %v266_v39 = vld [vmem:[%s2777_s23 + $0x128] sm:$0xff] }
  0x42   : >> { %v446_v24 = vadd.f32 %v430_v60, %v408_v41  ;;  %v447_v25 = vadd.f32 %v431_v61, %v409_v42  ;;  %v448_v30 = vadd.f32 %v432_v62, %v410_v43  ;;  %v449_v31 = vadd.f32 %v433_v63, %v411_v44 }
  0x43   : >> { %v450_v35 = vadd.f32 %v434_v1, %v412_v46  ;;  %v451_v13 = vadd.f32 %v435_v3, %v413_v7  ;;  %v452_v14 = vadd.f32 %v436_v15, %v414_v8  ;;  %v453_v36 = vadd.f32 %v437_v20, %v415_v47  ;;  %v2427_v1 = vld [vmem:[%s4210_s1 + $0x30] ss:$0 sm:$0xff] }
  0x44   : >> { %v454_v2 = vadd.f32 %v438_v4, %v416_v48  ;;  %v455_v12 = vadd.f32 %v439_v5, %v417_v49  ;;  %v456_v19 = vadd.f32 %v440_v6, %v418_v50  ;;  %v457_v37 = vadd.f32 %v441_v9, %v419_v53 }
  0x45   : >> { %v464_v40 = vmul.f32 %v2425_v32, %v2806_v21  ;;  %v465_v41 = vmul.f32 %v2425_v32, %v2809_v22  ;;  %v466_v42 = vmul.f32 %v2425_v32, %v2816_v27  ;;  %v467_v43 = vmul.f32 %v2425_v32, %v2819_v28 }
  0x46   : >> { %v468_v44 = vmul.f32 %v2425_v32, %v2822_v29  ;;  %v469_v45 = vmul.f32 %v2425_v32, %v2829_v34  ;;  %v470_v46 = vmul.f32 %v2425_v32, %v2848_v51  ;;  %v471_v7 = vmul.f32 %v2425_v32, %v2851_v52 }
  0x47   : >> { %v472_v8 = vmul.f32 %v2425_v32, %v2887_v26  ;;  %v473_v47 = vmul.f32 %v2425_v32, %v2890_v33  ;;  %v474_v21 = vmul.f32 %v2425_v32, %v2912_v10  ;;  %v475_v22 = vmul.f32 %v2425_v32, %v2915_v11 }
  0x48   : >> { %v476_v48 = vmul.f32 %v2425_v32, %v2937_v54  ;;  %v477_v49 = vmul.f32 %v2425_v32, %v2940_v55  ;;  %v478_v50 = vmul.f32 %v2425_v32, %v265_v38  ;;  %v479_v53 = vmul.f32 %v2425_v32, %v266_v39 }
  0x49   : >> { %v480_v56 = vadd.f32 %v464_v40, %v442_v16  ;;  %v481_v57 = vadd.f32 %v465_v41, %v443_v17  ;;  %v482_v58 = vadd.f32 %v466_v42, %v444_v18  ;;  %v483_v59 = vadd.f32 %v467_v43, %v445_v23  ;;  %v267_v17 = vld [vmem:[%s2777_s23 + $0x138] sm:$0xff]  ;;  %v268_v18 = vld [vmem:[%s2777_s23 + $0x140] sm:$0xff]  ;;  %v3008_v43 = vld [vmem:[%s2777_s23 + $0x49] sm:$0xff] }
  0x4a   : >> { %v484_v60 = vadd.f32 %v468_v44, %v446_v24  ;;  %v485_v61 = vadd.f32 %v469_v45, %v447_v25  ;;  %v486_v62 = vadd.f32 %v470_v46, %v448_v30  ;;  %v487_v63 = vadd.f32 %v471_v7, %v449_v31  ;;  %v3002_v41 = vld [vmem:[%s2777_s23 + $0x31] sm:$0xff]  ;;  %v3005_v42 = vld [vmem:[%s2777_s23 + $0x39] sm:$0xff] }
  0x4b   : >> { %v488_v3 = vadd.f32 %v472_v8, %v450_v35  ;;  %v489_v15 = vadd.f32 %v473_v47, %v451_v13  ;;  %v490_v20 = vadd.f32 %v474_v21, %v452_v14  ;;  %v491_v4 = vadd.f32 %v475_v22, %v453_v36  ;;  %v3011_v8 = vld [vmem:[%s2777_s23 + $0x51] sm:$0xff]  ;;  %v3014_v47 = vld [vmem:[%s2777_s23 + $0x61] sm:$0xff]  ;;  %v3017_v21 = vld [vmem:[%s2777_s23 + $0x69] sm:$0xff] }
  0x4c   : >> { %v492_v5 = vadd.f32 %v476_v48, %v454_v2  ;;  %v493_v6 = vadd.f32 %v477_v49, %v455_v12  ;;  %v494_v9 = vadd.f32 %v478_v50, %v456_v19  ;;  %v495_v16 = vadd.f32 %v479_v53, %v457_v37  ;;  %v537_v19 = vld [vmem:[%s2777_s23 + $0x21] sm:$0xff]  ;;  %v3020_v53 = vld [vmem:[%s2777_s23 + $0x79] sm:$0xff] }
  0x4d   : >> { %v502_v23 = vmul.f32 %v2427_v1, %v2816_v27  ;;  %v503_v24 = vmul.f32 %v2427_v1, %v2819_v28  ;;  %v504_v25 = vmul.f32 %v2427_v1, %v2822_v29  ;;  %v505_v30 = vmul.f32 %v2427_v1, %v2829_v34 }
  0x4e   : >> { %v506_v31 = vmul.f32 %v2427_v1, %v2848_v51  ;;  %v507_v32 = vmul.f32 %v2427_v1, %v2851_v52  ;;  %v508_v35 = vmul.f32 %v2427_v1, %v2887_v26  ;;  %v509_v13 = vmul.f32 %v2427_v1, %v2890_v33  ;;  %v534_v26 = vld [vmem:[%s2777_s23 + $0x1] sm:$0xff] }
  0x4f   : >> { %v510_v14 = vmul.f32 %v2427_v1, %v2912_v10  ;;  %v511_v27 = vmul.f32 %v2427_v1, %v2915_v11  ;;  %v512_v28 = vmul.f32 %v2427_v1, %v2937_v54  ;;  %v513_v29 = vmul.f32 %v2427_v1, %v2940_v55  ;;  %v2428_v33 = vld [vmem:[%s4210_s1 + $0x1] ss:$0 sm:$0xff]  ;;  %v535_v54 = vld [vmem:[%s2777_s23 + $0x9] sm:$0xff]  ;;  %v536_v55 = vld [vmem:[%s2777_s23 + $0x19] sm:$0xff] }
  0x50   : >> { %v514_v34 = vmul.f32 %v2427_v1, %v265_v38  ;;  %v515_v36 = vmul.f32 %v2427_v1, %v266_v39  ;;  %v516_v51 = vmul.f32 %v2427_v1, %v267_v17  ;;  %v517_v52 = vmul.f32 %v2427_v1, %v268_v18 }
  0x51   : >> { %v518_v10 = vadd.f32 %v502_v23, %v480_v56  ;;  %v519_v2 = vadd.f32 %v503_v24, %v481_v57  ;;  %v520_v12 = vadd.f32 %v504_v25, %v482_v58  ;;  %v521_v11 = vadd.f32 %v505_v30, %v483_v59  ;;  %v3023_v56 = vld [vmem:[%s2777_s23 + $0x81] sm:$0xff]  ;;  %v3026_v57 = vld [vmem:[%s2777_s23 + $0x91] sm:$0xff]  ;;  %v3029_v58 = vld [vmem:[%s2777_s23 + $0x99] sm:$0xff] }
  0x52   : >> { %v522_v37 = vadd.f32 %v506_v31, %v484_v60  ;;  %v523_v38 = vadd.f32 %v507_v32, %v485_v61  ;;  %v524_v39 = vadd.f32 %v508_v35, %v486_v62  ;;  %v525_v40 = vadd.f32 %v509_v13, %v487_v63  ;;  %v3032_v59 = vld [vmem:[%s2777_s23 + $0xa9] sm:$0xff]  ;;  %v3035_v60 = vld [vmem:[%s2777_s23 + $0xb1] sm:$0xff] }
  0x53   : >> { %v526_v44 = vadd.f32 %v510_v14, %v488_v3  ;;  %v527_v45 = vadd.f32 %v511_v27, %v489_v15  ;;  %v528_v46 = vadd.f32 %v512_v28, %v490_v20  ;;  %v529_v7 = vadd.f32 %v513_v29, %v491_v4  ;;  %v2430_v28 = vld [vmem:[%s4210_s1 + $0x9] ss:$0 sm:$0xff] }
  0x54   : >> { %v530_v22 = vadd.f32 %v514_v34, %v492_v5  ;;  %v531_v48 = vadd.f32 %v515_v36, %v493_v6  ;;  %v532_v49 = vadd.f32 %v516_v51, %v494_v9  ;;  %v533_v50 = vadd.f32 %v517_v52, %v495_v16 }
  0x55   : >> { %v567_v61 = vmul.f32 %v2428_v33, %v534_v26  ;;  %v568_v62 = vmul.f32 %v2428_v33, %v535_v54  ;;  %v569_v63 = vmul.f32 %v2428_v33, %v536_v55  ;;  %v570_v1 = vmul.f32 %v2428_v33, %v537_v19 }
  0x56   : >> { %v571_v3 = vmul.f32 %v2428_v33, %v3002_v41  ;;  %v572_v15 = vmul.f32 %v2428_v33, %v3005_v42  ;;  %v573_v20 = vmul.f32 %v2428_v33, %v3008_v43  ;;  %v574_v4 = vmul.f32 %v2428_v33, %v3011_v8 }
  0x57   : >> { %v575_v5 = vmul.f32 %v2428_v33, %v3014_v47  ;;  %v576_v6 = vmul.f32 %v2428_v33, %v3017_v21  ;;  %v577_v9 = vmul.f32 %v2428_v33, %v3020_v53  ;;  %v578_v16 = vmul.f32 %v2428_v33, %v3023_v56 }
  0x58   : >> { %v579_v17 = vmul.f32 %v2428_v33, %v3026_v57  ;;  %v580_v18 = vmul.f32 %v2428_v33, %v3029_v58  ;;  %v581_v23 = vmul.f32 %v2428_v33, %v3032_v59  ;;  %v582_v24 = vmul.f32 %v2428_v33, %v3035_v60 }
  0x59   : >> { %v583_v25 = vadd.f32 %v567_v61, %v518_v10  ;;  %v584_v30 = vadd.f32 %v568_v62, %v519_v2  ;;  %v585_v31 = vadd.f32 %v569_v63, %v520_v12  ;;  %v586_v32 = vadd.f32 %v570_v1, %v521_v11  ;;  %v3053_v2 = vld [vmem:[%s2777_s23 + $0xc1] sm:$0xff]  ;;  %v3056_v12 = vld [vmem:[%s2777_s23 + $0xc9] sm:$0xff] }
  0x5a   : >> { %v587_v35 = vadd.f32 %v571_v3, %v522_v37  ;;  %v588_v13 = vadd.f32 %v572_v15, %v523_v38  ;;  %v589_v14 = vadd.f32 %v573_v20, %v524_v39  ;;  %v590_v27 = vadd.f32 %v574_v4, %v525_v40 }
  0x5b   : >> { %v591_v29 = vadd.f32 %v575_v5, %v526_v44  ;;  %v592_v34 = vadd.f32 %v576_v6, %v527_v45  ;;  %v593_v36 = vadd.f32 %v577_v9, %v528_v46  ;;  %v594_v51 = vadd.f32 %v578_v16, %v529_v7  ;;  %v2432_v5 = vld [vmem:[%s4210_s1 + $0x11] ss:$0 sm:$0xff] }
  0x5c   : >> { %v595_v52 = vadd.f32 %v579_v17, %v530_v22  ;;  %v596_v26 = vadd.f32 %v580_v18, %v531_v48  ;;  %v597_v33 = vadd.f32 %v581_v23, %v532_v49  ;;  %v598_v10 = vadd.f32 %v582_v24, %v533_v50 }
  0x5d   : >> { %v604_v11 = vmul.f32 %v2430_v28, %v536_v55  ;;  %v605_v54 = vmul.f32 %v2430_v28, %v537_v19  ;;  %v606_v37 = vmul.f32 %v2430_v28, %v3002_v41  ;;  %v607_v38 = vmul.f32 %v2430_v28, %v3005_v42 }
  0x5e   : >> { %v608_v39 = vmul.f32 %v2430_v28, %v3008_v43  ;;  %v609_v40 = vmul.f32 %v2430_v28, %v3011_v8  ;;  %v610_v44 = vmul.f32 %v2430_v28, %v3014_v47  ;;  %v611_v45 = vmul.f32 %v2430_v28, %v3017_v21 }
  0x5f   : >> { %v612_v46 = vmul.f32 %v2430_v28, %v3020_v53  ;;  %v613_v7 = vmul.f32 %v2430_v28, %v3023_v56  ;;  %v614_v22 = vmul.f32 %v2430_v28, %v3026_v57  ;;  %v615_v55 = vmul.f32 %v2430_v28, %v3029_v58 }
  0x60   : >> { %v616_v19 = vmul.f32 %v2430_v28, %v3032_v59  ;;  %v617_v48 = vmul.f32 %v2430_v28, %v3035_v60  ;;  %v618_v49 = vmul.f32 %v2430_v28, %v3053_v2  ;;  %v619_v50 = vmul.f32 %v2430_v28, %v3056_v12 }
  0x61   : >> { %v620_v61 = vadd.f32 %v604_v11, %v583_v25  ;;  %v621_v62 = vadd.f32 %v605_v54, %v584_v30  ;;  %v622_v63 = vadd.f32 %v606_v37, %v585_v31  ;;  %v623_v1 = vadd.f32 %v607_v38, %v586_v32  ;;  %v3076_v30 = vld [vmem:[%s2777_s23 + $0xd9] sm:$0xff]  ;;  %v3079_v31 = vld [vmem:[%s2777_s23 + $0xe1] sm:$0xff] }
  0x62   : >> { %v624_v3 = vadd.f32 %v608_v39, %v587_v35  ;;  %v625_v15 = vadd.f32 %v609_v40, %v588_v13  ;;  %v626_v20 = vadd.f32 %v610_v44, %v589_v14  ;;  %v627_v4 = vadd.f32 %v611_v45, %v590_v27 }
  0x63   : >> { %v628_v6 = vadd.f32 %v612_v46, %v591_v29  ;;  %v629_v9 = vadd.f32 %v613_v7, %v592_v34  ;;  %v630_v16 = vadd.f32 %v614_v22, %v593_v36  ;;  %v631_v17 = vadd.f32 %v615_v55, %v594_v51  ;;  %v2434_v46 = vld [vmem:[%s4210_s1 + $0x19] ss:$0 sm:$0xff] }
  0x64   : >> { %v632_v18 = vadd.f32 %v616_v19, %v595_v52  ;;  %v633_v23 = vadd.f32 %v617_v48, %v596_v26  ;;  %v634_v24 = vadd.f32 %v618_v49, %v597_v33  ;;  %v635_v25 = vadd.f32 %v619_v50, %v598_v10 }
  0x65   : >> { %v641_v32 = vmul.f32 %v2432_v5, %v3002_v41  ;;  %v642_v35 = vmul.f32 %v2432_v5, %v3005_v42  ;;  %v643_v13 = vmul.f32 %v2432_v5, %v3008_v43  ;;  %v644_v14 = vmul.f32 %v2432_v5, %v3011_v8 }
  0x66   : >> { %v645_v27 = vmul.f32 %v2432_v5, %v3014_v47  ;;  %v646_v28 = vmul.f32 %v2432_v5, %v3017_v21  ;;  %v647_v29 = vmul.f32 %v2432_v5, %v3020_v53  ;;  %v648_v34 = vmul.f32 %v2432_v5, %v3023_v56 }
  0x67   : >> { %v649_v36 = vmul.f32 %v2432_v5, %v3026_v57  ;;  %v650_v51 = vmul.f32 %v2432_v5, %v3029_v58  ;;  %v651_v41 = vmul.f32 %v2432_v5, %v3032_v59  ;;  %v652_v42 = vmul.f32 %v2432_v5, %v3035_v60 }
  0x68   : >> { %v653_v52 = vmul.f32 %v2432_v5, %v3053_v2  ;;  %v654_v26 = vmul.f32 %v2432_v5, %v3056_v12  ;;  %v655_v33 = vmul.f32 %v2432_v5, %v3076_v30  ;;  %v656_v10 = vmul.f32 %v2432_v5, %v3079_v31 }
  0x69   : >> { %v657_v11 = vadd.f32 %v641_v32, %v620_v61  ;;  %v658_v54 = vadd.f32 %v642_v35, %v621_v62  ;;  %v659_v37 = vadd.f32 %v643_v13, %v622_v63  ;;  %v660_v38 = vadd.f32 %v644_v14, %v623_v1  ;;  %v3101_v62 = vld [vmem:[%s2777_s23 + $0xf1] sm:$0xff]  ;;  %v3104_v63 = vld [vmem:[%s2777_s23 + $0xf9] sm:$0xff] }
  0x6a   : >> { %v661_v39 = vadd.f32 %v645_v27, %v624_v3  ;;  %v662_v40 = vadd.f32 %v646_v28, %v625_v15  ;;  %v663_v44 = vadd.f32 %v647_v29, %v626_v20  ;;  %v664_v45 = vadd.f32 %v648_v34, %v627_v4 }
  0x6b   : >> { %v665_v7 = vadd.f32 %v649_v36, %v628_v6  ;;  %v666_v22 = vadd.f32 %v650_v51, %v629_v9  ;;  %v667_v55 = vadd.f32 %v651_v41, %v630_v16  ;;  %v668_v19 = vadd.f32 %v652_v42, %v631_v17  ;;  %v2436_v36 = vld [vmem:[%s4210_s1 + $0x21] ss:$0 sm:$0xff] }
  0x6c   : >> { %v669_v48 = vadd.f32 %v653_v52, %v632_v18  ;;  %v670_v49 = vadd.f32 %v654_v26, %v633_v23  ;;  %v671_v50 = vadd.f32 %v655_v33, %v634_v24  ;;  %v672_v61 = vadd.f32 %v656_v10, %v635_v25 }
  0x6d   : >> { %v678_v1 = vmul.f32 %v2434_v46, %v3008_v43  ;;  %v679_v3 = vmul.f32 %v2434_v46, %v3011_v8  ;;  %v680_v15 = vmul.f32 %v2434_v46, %v3014_v47  ;;  %v681_v20 = vmul.f32 %v2434_v46, %v3017_v21 }
  0x6e   : >> { %v682_v4 = vmul.f32 %v2434_v46, %v3020_v53  ;;  %v683_v5 = vmul.f32 %v2434_v46, %v3023_v56  ;;  %v684_v6 = vmul.f32 %v2434_v46, %v3026_v57  ;;  %v685_v9 = vmul.f32 %v2434_v46, %v3029_v58 }
  0x6f   : >> { %v686_v16 = vmul.f32 %v2434_v46, %v3032_v59  ;;  %v687_v17 = vmul.f32 %v2434_v46, %v3035_v60  ;;  %v688_v43 = vmul.f32 %v2434_v46, %v3053_v2  ;;  %v689_v8 = vmul.f32 %v2434_v46, %v3056_v12 }
  0x70   : >> { %v690_v18 = vmul.f32 %v2434_v46, %v3076_v30  ;;  %v691_v23 = vmul.f32 %v2434_v46, %v3079_v31  ;;  %v692_v24 = vmul.f32 %v2434_v46, %v3101_v62  ;;  %v693_v25 = vmul.f32 %v2434_v46, %v3104_v63 }
  0x71   : >> { %v694_v32 = vadd.f32 %v678_v1, %v657_v11  ;;  %v695_v35 = vadd.f32 %v679_v3, %v658_v54  ;;  %v696_v13 = vadd.f32 %v680_v15, %v659_v37  ;;  %v697_v14 = vadd.f32 %v681_v20, %v660_v38  ;;  %v3126_v54 = vld [vmem:[%s2777_s23 + $0x109] sm:$0xff]  ;;  %v3129_v37 = vld [vmem:[%s2777_s23 + $0x111] sm:$0xff] }
  0x72   : >> { %v698_v27 = vadd.f32 %v682_v4, %v661_v39  ;;  %v699_v28 = vadd.f32 %v683_v5, %v662_v40  ;;  %v700_v29 = vadd.f32 %v684_v6, %v663_v44  ;;  %v701_v34 = vadd.f32 %v685_v9, %v664_v45 }
  0x73   : >> { %v702_v51 = vadd.f32 %v686_v16, %v665_v7  ;;  %v703_v41 = vadd.f32 %v687_v17, %v666_v22  ;;  %v704_v42 = vadd.f32 %v688_v43, %v667_v55  ;;  %v705_v52 = vadd.f32 %v689_v8, %v668_v19  ;;  %v2438_v16 = vld [vmem:[%s4210_s1 + $0x29] ss:$0 sm:$0xff] }
  0x74   : >> { %v706_v26 = vadd.f32 %v690_v18, %v669_v48  ;;  %v707_v33 = vadd.f32 %v691_v23, %v670_v49  ;;  %v708_v10 = vadd.f32 %v692_v24, %v671_v50  ;;  %v709_v11 = vadd.f32 %v693_v25, %v672_v61 }
  0x75   : >> { %v715_v38 = vmul.f32 %v2436_v36, %v3014_v47  ;;  %v716_v39 = vmul.f32 %v2436_v36, %v3017_v21  ;;  %v717_v40 = vmul.f32 %v2436_v36, %v3020_v53  ;;  %v718_v44 = vmul.f32 %v2436_v36, %v3023_v56 }
  0x76   : >> { %v719_v45 = vmul.f32 %v2436_v36, %v3026_v57  ;;  %v720_v46 = vmul.f32 %v2436_v36, %v3029_v58  ;;  %v721_v7 = vmul.f32 %v2436_v36, %v3032_v59  ;;  %v722_v22 = vmul.f32 %v2436_v36, %v3035_v60 }
  0x77   : >> { %v723_v55 = vmul.f32 %v2436_v36, %v3053_v2  ;;  %v724_v19 = vmul.f32 %v2436_v36, %v3056_v12  ;;  %v725_v47 = vmul.f32 %v2436_v36, %v3076_v30  ;;  %v726_v21 = vmul.f32 %v2436_v36, %v3079_v31 }
  0x78   : >> { %v727_v48 = vmul.f32 %v2436_v36, %v3101_v62  ;;  %v728_v49 = vmul.f32 %v2436_v36, %v3104_v63  ;;  %v729_v50 = vmul.f32 %v2436_v36, %v3126_v54  ;;  %v730_v61 = vmul.f32 %v2436_v36, %v3129_v37 }
  0x79   : >> { %v731_v1 = vadd.f32 %v715_v38, %v694_v32  ;;  %v732_v3 = vadd.f32 %v716_v39, %v695_v35  ;;  %v733_v15 = vadd.f32 %v717_v40, %v696_v13  ;;  %v734_v20 = vadd.f32 %v718_v44, %v697_v14  ;;  %v558_v35 = vld [vmem:[%s2777_s23 + $0x121] sm:$0xff]  ;;  %v559_v13 = vld [vmem:[%s2777_s23 + $0x129] sm:$0xff] }
  0x7a   : >> { %v735_v4 = vadd.f32 %v719_v45, %v698_v27  ;;  %v736_v5 = vadd.f32 %v720_v46, %v699_v28  ;;  %v737_v6 = vadd.f32 %v721_v7, %v700_v29  ;;  %v738_v9 = vadd.f32 %v722_v22, %v701_v34 }
  0x7b   : >> { %v739_v17 = vadd.f32 %v723_v55, %v702_v51  ;;  %v740_v43 = vadd.f32 %v724_v19, %v703_v41  ;;  %v741_v8 = vadd.f32 %v725_v47, %v704_v42  ;;  %v742_v18 = vadd.f32 %v726_v21, %v705_v52  ;;  %v2440_v55 = vld [vmem:[%s4210_s1 + $0x31] ss:$0 sm:$0xff] }
  0x7c   : >> { %v743_v23 = vadd.f32 %v727_v48, %v706_v26  ;;  %v744_v24 = vadd.f32 %v728_v49, %v707_v33  ;;  %v745_v25 = vadd.f32 %v729_v50, %v708_v10  ;;  %v746_v32 = vadd.f32 %v730_v61, %v709_v11 }
  0x7d   : >> { %v752_v14 = vmul.f32 %v2438_v16, %v3020_v53  ;;  %v753_v27 = vmul.f32 %v2438_v16, %v3023_v56  ;;  %v754_v28 = vmul.f32 %v2438_v16, %v3026_v57  ;;  %v755_v29 = vmul.f32 %v2438_v16, %v3029_v58 }
  0x7e   : >> { %v756_v34 = vmul.f32 %v2438_v16, %v3032_v59  ;;  %v757_v36 = vmul.f32 %v2438_v16, %v3035_v60  ;;  %v758_v51 = vmul.f32 %v2438_v16, %v3053_v2  ;;  %v759_v41 = vmul.f32 %v2438_v16, %v3056_v12 }
  0x7f   : >> { %v760_v42 = vmul.f32 %v2438_v16, %v3076_v30  ;;  %v761_v52 = vmul.f32 %v2438_v16, %v3079_v31  ;;  %v762_v53 = vmul.f32 %v2438_v16, %v3101_v62  ;;  %v763_v56 = vmul.f32 %v2438_v16, %v3104_v63 }
  0x80   : >> { %v764_v26 = vmul.f32 %v2438_v16, %v3126_v54  ;;  %v765_v33 = vmul.f32 %v2438_v16, %v3129_v37  ;;  %v766_v10 = vmul.f32 %v2438_v16, %v558_v35  ;;  %v767_v11 = vmul.f32 %v2438_v16, %v559_v13 }
  0x81   : >> { %v768_v38 = vadd.f32 %v752_v14, %v731_v1  ;;  %v769_v39 = vadd.f32 %v753_v27, %v732_v3  ;;  %v770_v40 = vadd.f32 %v754_v28, %v733_v15  ;;  %v771_v44 = vadd.f32 %v755_v29, %v734_v20  ;;  %v560_v3 = vld [vmem:[%s2777_s23 + $0x139] sm:$0xff]  ;;  %v561_v15 = vld [vmem:[%s2777_s23 + $0x141] sm:$0xff]  ;;  %v3194_v28 = vld [vmem:[%s2777_s23 + $0x4a] sm:$0xff] }
  0x82   : >> { %v772_v45 = vadd.f32 %v756_v34, %v735_v4  ;;  %v773_v46 = vadd.f32 %v757_v36, %v736_v5  ;;  %v774_v7 = vadd.f32 %v758_v51, %v737_v6  ;;  %v775_v22 = vadd.f32 %v759_v41, %v738_v9  ;;  %v3191_v27 = vld [vmem:[%s2777_s23 + $0x3a] sm:$0xff]  ;;  %v2441_v29 = vld [vmem:[%s4210_s1 + $0x2] ss:$0 sm:$0xff] }
  0x83   : >> { %v776_v19 = vadd.f32 %v760_v42, %v739_v17  ;;  %v777_v47 = vadd.f32 %v761_v52, %v740_v43  ;;  %v778_v21 = vadd.f32 %v762_v53, %v741_v8  ;;  %v779_v48 = vadd.f32 %v763_v56, %v742_v18  ;;  %v3200_v42 = vld [vmem:[%s2777_s23 + $0x52] sm:$0xff]  ;;  %v3203_v52 = vld [vmem:[%s2777_s23 + $0x62] sm:$0xff]  ;;  %v3206_v53 = vld [vmem:[%s2777_s23 + $0x6a] sm:$0xff] }
  0x84   : >> { %v780_v49 = vadd.f32 %v764_v26, %v743_v23  ;;  %v781_v50 = vadd.f32 %v765_v33, %v744_v24  ;;  %v782_v61 = vadd.f32 %v766_v10, %v745_v25  ;;  %v783_v1 = vadd.f32 %v767_v11, %v746_v32  ;;  %v822_v23 = vld [vmem:[%s2777_s23 + $0xa] sm:$0xff]  ;;  %v823_v32 = vld [vmem:[%s2777_s23 + $0x1a] sm:$0xff] }
  0x85   : >> { %v789_v20 = vmul.f32 %v2440_v55, %v3026_v57  ;;  %v790_v4 = vmul.f32 %v2440_v55, %v3029_v58  ;;  %v791_v5 = vmul.f32 %v2440_v55, %v3032_v59  ;;  %v792_v6 = vmul.f32 %v2440_v55, %v3035_v60  ;;  %v3209_v11 = vld [vmem:[%s2777_s23 + $0x7a] sm:$0xff] }
  0x86   : >> { %v793_v9 = vmul.f32 %v2440_v55, %v3053_v2  ;;  %v794_v16 = vmul.f32 %v2440_v55, %v3056_v12  ;;  %v795_v17 = vmul.f32 %v2440_v55, %v3076_v30  ;;  %v796_v43 = vmul.f32 %v2440_v55, %v3079_v31  ;;  %v821_v30 = vld [vmem:[%s2777_s23 + $0x2] sm:$0xff] }
  0x87   : >> { %v797_v57 = vmul.f32 %v2440_v55, %v3101_v62  ;;  %v798_v58 = vmul.f32 %v2440_v55, %v3104_v63  ;;  %v799_v8 = vmul.f32 %v2440_v55, %v3126_v54  ;;  %v800_v59 = vmul.f32 %v2440_v55, %v3129_v37  ;;  %v824_v63 = vld [vmem:[%s2777_s23 + $0x22] sm:$0xff]  ;;  %v3188_v54 = vld [vmem:[%s2777_s23 + $0x32] sm:$0xff] }
  0x88   : >> { %v801_v60 = vmul.f32 %v2440_v55, %v558_v35  ;;  %v802_v18 = vmul.f32 %v2440_v55, %v559_v13  ;;  %v803_v2 = vmul.f32 %v2440_v55, %v560_v3  ;;  %v804_v12 = vmul.f32 %v2440_v55, %v561_v15 }
  0x89   : >> { %v805_v24 = vadd.f32 %v789_v20, %v768_v38  ;;  %v806_v31 = vadd.f32 %v790_v4, %v769_v39  ;;  %v807_v25 = vadd.f32 %v791_v5, %v770_v40  ;;  %v808_v62 = vadd.f32 %v792_v6, %v771_v44  ;;  %v3212_v38 = vld [vmem:[%s2777_s23 + $0x82] sm:$0xff]  ;;  %v3215_v39 = vld [vmem:[%s2777_s23 + $0x92] sm:$0xff]  ;;  %v3218_v40 = vld [vmem:[%s2777_s23 + $0x9a] sm:$0xff] }
  0x8a   : >> { %v809_v37 = vadd.f32 %v793_v9, %v772_v45  ;;  %v810_v35 = vadd.f32 %v794_v16, %v773_v46  ;;  %v811_v13 = vadd.f32 %v795_v17, %v774_v7  ;;  %v812_v14 = vadd.f32 %v796_v43, %v775_v22  ;;  %v3221_v44 = vld [vmem:[%s2777_s23 + $0xaa] sm:$0xff]  ;;  %v3224_v45 = vld [vmem:[%s2777_s23 + $0xb2] sm:$0xff] }
  0x8b   : >> { %v813_v34 = vadd.f32 %v797_v57, %v776_v19  ;;  %v814_v36 = vadd.f32 %v798_v58, %v777_v47  ;;  %v815_v51 = vadd.f32 %v799_v8, %v778_v21  ;;  %v816_v41 = vadd.f32 %v800_v59, %v779_v48  ;;  %v2443_v8 = vld [vmem:[%s4210_s1 + $0xa] ss:$0 sm:$0xff] }
  0x8c   : >> { %v817_v56 = vadd.f32 %v801_v60, %v780_v49  ;;  %v818_v26 = vadd.f32 %v802_v18, %v781_v50  ;;  %v819_v33 = vadd.f32 %v803_v2, %v782_v61  ;;  %v820_v10 = vadd.f32 %v804_v12, %v783_v1 }
  0x8d   : >> { %v854_v46 = vmul.f32 %v2441_v29, %v821_v30  ;;  %v855_v7 = vmul.f32 %v2441_v29, %v822_v23  ;;  %v856_v22 = vmul.f32 %v2441_v29, %v823_v32  ;;  %v857_v55 = vmul.f32 %v2441_v29, %v824_v63 }
  0x8e   : >> { %v858_v19 = vmul.f32 %v2441_v29, %v3188_v54  ;;  %v859_v47 = vmul.f32 %v2441_v29, %v3191_v27  ;;  %v860_v21 = vmul.f32 %v2441_v29, %v3194_v28  ;;  %v861_v48 = vmul.f32 %v2441_v29, %v3200_v42 }
  0x8f   : >> { %v862_v49 = vmul.f32 %v2441_v29, %v3203_v52  ;;  %v863_v50 = vmul.f32 %v2441_v29, %v3206_v53  ;;  %v864_v61 = vmul.f32 %v2441_v29, %v3209_v11  ;;  %v865_v1 = vmul.f32 %v2441_v29, %v3212_v38 }
  0x90   : >> { %v866_v3 = vmul.f32 %v2441_v29, %v3215_v39  ;;  %v867_v15 = vmul.f32 %v2441_v29, %v3218_v40  ;;  %v868_v20 = vmul.f32 %v2441_v29, %v3221_v44  ;;  %v869_v4 = vmul.f32 %v2441_v29, %v3224_v45 }
  0x91   : >> { %v870_v5 = vadd.f32 %v854_v46, %v805_v24  ;;  %v871_v6 = vadd.f32 %v855_v7, %v806_v31  ;;  %v872_v9 = vadd.f32 %v856_v22, %v807_v25  ;;  %v873_v16 = vadd.f32 %v857_v55, %v808_v62  ;;  %v3242_v31 = vld [vmem:[%s2777_s23 + $0xc2] sm:$0xff]  ;;  %v3245_v25 = vld [vmem:[%s2777_s23 + $0xca] sm:$0xff] }
  0x92   : >> { %v874_v17 = vadd.f32 %v858_v19, %v809_v37  ;;  %v875_v43 = vadd.f32 %v859_v47, %v810_v35  ;;  %v876_v57 = vadd.f32 %v860_v21, %v811_v13  ;;  %v877_v58 = vadd.f32 %v861_v48, %v812_v14 }
  0x93   : >> { %v878_v59 = vadd.f32 %v862_v49, %v813_v34  ;;  %v879_v60 = vadd.f32 %v863_v50, %v814_v36  ;;  %v880_v18 = vadd.f32 %v864_v61, %v815_v51  ;;  %v881_v2 = vadd.f32 %v865_v1, %v816_v41  ;;  %v2445_v49 = vld [vmem:[%s4210_s1 + $0x12] ss:$0 sm:$0xff] }
  0x94   : >> { %v882_v12 = vadd.f32 %v866_v3, %v817_v56  ;;  %v883_v30 = vadd.f32 %v867_v15, %v818_v26  ;;  %v884_v23 = vadd.f32 %v868_v20, %v819_v33  ;;  %v885_v24 = vadd.f32 %v869_v4, %v820_v10 }
  0x95   : >> { %v891_v62 = vmul.f32 %v2443_v8, %v823_v32  ;;  %v892_v37 = vmul.f32 %v2443_v8, %v824_v63  ;;  %v893_v35 = vmul.f32 %v2443_v8, %v3188_v54  ;;  %v894_v13 = vmul.f32 %v2443_v8, %v3191_v27 }
  0x96   : >> { %v895_v14 = vmul.f32 %v2443_v8, %v3194_v28  ;;  %v896_v29 = vmul.f32 %v2443_v8, %v3200_v42  ;;  %v897_v34 = vmul.f32 %v2443_v8, %v3203_v52  ;;  %v898_v36 = vmul.f32 %v2443_v8, %v3206_v53 }
  0x97   : >> { %v899_v51 = vmul.f32 %v2443_v8, %v3209_v11  ;;  %v900_v41 = vmul.f32 %v2443_v8, %v3212_v38  ;;  %v901_v56 = vmul.f32 %v2443_v8, %v3215_v39  ;;  %v902_v32 = vmul.f32 %v2443_v8, %v3218_v40 }
  0x98   : >> { %v903_v63 = vmul.f32 %v2443_v8, %v3221_v44  ;;  %v904_v26 = vmul.f32 %v2443_v8, %v3224_v45  ;;  %v905_v33 = vmul.f32 %v2443_v8, %v3242_v31  ;;  %v906_v10 = vmul.f32 %v2443_v8, %v3245_v25 }
  0x99   : >> { %v907_v46 = vadd.f32 %v891_v62, %v870_v5  ;;  %v908_v7 = vadd.f32 %v892_v37, %v871_v6  ;;  %v909_v22 = vadd.f32 %v893_v35, %v872_v9  ;;  %v910_v55 = vadd.f32 %v894_v13, %v873_v16  ;;  %v3265_v6 = vld [vmem:[%s2777_s23 + $0xda] sm:$0xff]  ;;  %v3268_v9 = vld [vmem:[%s2777_s23 + $0xe2] sm:$0xff] }
  0x9a   : >> { %v911_v19 = vadd.f32 %v895_v14, %v874_v17  ;;  %v912_v47 = vadd.f32 %v896_v29, %v875_v43  ;;  %v913_v21 = vadd.f32 %v897_v34, %v876_v57  ;;  %v914_v48 = vadd.f32 %v898_v36, %v877_v58 }
  0x9b   : >> { %v915_v50 = vadd.f32 %v899_v51, %v878_v59  ;;  %v916_v61 = vadd.f32 %v900_v41, %v879_v60  ;;  %v917_v1 = vadd.f32 %v901_v56, %v880_v18  ;;  %v918_v3 = vadd.f32 %v902_v32, %v881_v2  ;;  %v2447_v51 = vld [vmem:[%s4210_s1 + $0x1a] ss:$0 sm:$0xff] }
  0x9c   : >> { %v919_v15 = vadd.f32 %v903_v63, %v882_v12  ;;  %v920_v20 = vadd.f32 %v904_v26, %v883_v30  ;;  %v921_v4 = vadd.f32 %v905_v33, %v884_v23  ;;  %v922_v5 = vadd.f32 %v906_v10, %v885_v24 }
  0x9d   : >> { %v928_v16 = vmul.f32 %v2445_v49, %v3188_v54  ;;  %v929_v17 = vmul.f32 %v2445_v49, %v3191_v27  ;;  %v930_v43 = vmul.f32 %v2445_v49, %v3194_v28  ;;  %v931_v57 = vmul.f32 %v2445_v49, %v3200_v42 }
  0x9e   : >> { %v932_v58 = vmul.f32 %v2445_v49, %v3203_v52  ;;  %v933_v8 = vmul.f32 %v2445_v49, %v3206_v53  ;;  %v934_v59 = vmul.f32 %v2445_v49, %v3209_v11  ;;  %v935_v60 = vmul.f32 %v2445_v49, %v3212_v38 }
  0x9f   : >> { %v936_v18 = vmul.f32 %v2445_v49, %v3215_v39  ;;  %v937_v2 = vmul.f32 %v2445_v49, %v3218_v40  ;;  %v938_v54 = vmul.f32 %v2445_v49, %v3221_v44  ;;  %v939_v27 = vmul.f32 %v2445_v49, %v3224_v45 }
  0xa0   : >> { %v940_v12 = vmul.f32 %v2445_v49, %v3242_v31  ;;  %v941_v30 = vmul.f32 %v2445_v49, %v3245_v25  ;;  %v942_v23 = vmul.f32 %v2445_v49, %v3265_v6  ;;  %v943_v24 = vmul.f32 %v2445_v49, %v3268_v9 }
  0xa1   : >> { %v944_v62 = vadd.f32 %v928_v16, %v907_v46  ;;  %v945_v37 = vadd.f32 %v929_v17, %v908_v7  ;;  %v946_v35 = vadd.f32 %v930_v43, %v909_v22  ;;  %v947_v13 = vadd.f32 %v931_v57, %v910_v55  ;;  %v3290_v7 = vld [vmem:[%s2777_s23 + $0xf2] sm:$0xff]  ;;  %v3293_v22 = vld [vmem:[%s2777_s23 + $0xfa] sm:$0xff] }
  0xa2   : >> { %v948_v14 = vadd.f32 %v932_v58, %v911_v19  ;;  %v949_v29 = vadd.f32 %v933_v8, %v912_v47  ;;  %v950_v34 = vadd.f32 %v934_v59, %v913_v21  ;;  %v951_v36 = vadd.f32 %v935_v60, %v914_v48 }
  0xa3   : >> { %v952_v41 = vadd.f32 %v936_v18, %v915_v50  ;;  %v953_v56 = vadd.f32 %v937_v2, %v916_v61  ;;  %v954_v32 = vadd.f32 %v938_v54, %v917_v1  ;;  %v955_v63 = vadd.f32 %v939_v27, %v918_v3  ;;  %v2449_v18 = vld [vmem:[%s4210_s1 + $0x22] ss:$0 sm:$0xff] }
  0xa4   : >> { %v956_v26 = vadd.f32 %v940_v12, %v919_v15  ;;  %v957_v33 = vadd.f32 %v941_v30, %v920_v20  ;;  %v958_v10 = vadd.f32 %v942_v23, %v921_v4  ;;  %v959_v46 = vadd.f32 %v943_v24, %v922_v5 }
  0xa5   : >> { %v965_v55 = vmul.f32 %v2447_v51, %v3194_v28  ;;  %v966_v19 = vmul.f32 %v2447_v51, %v3200_v42  ;;  %v967_v47 = vmul.f32 %v2447_v51, %v3203_v52  ;;  %v968_v21 = vmul.f32 %v2447_v51, %v3206_v53 }
  0xa6   : >> { %v969_v48 = vmul.f32 %v2447_v51, %v3209_v11  ;;  %v970_v49 = vmul.f32 %v2447_v51, %v3212_v38  ;;  %v971_v50 = vmul.f32 %v2447_v51, %v3215_v39  ;;  %v972_v61 = vmul.f32 %v2447_v51, %v3218_v40 }
  0xa7   : >> { %v973_v1 = vmul.f32 %v2447_v51, %v3221_v44  ;;  %v974_v3 = vmul.f32 %v2447_v51, %v3224_v45  ;;  %v975_v28 = vmul.f32 %v2447_v51, %v3242_v31  ;;  %v976_v42 = vmul.f32 %v2447_v51, %v3245_v25 }
  0xa8   : >> { %v977_v15 = vmul.f32 %v2447_v51, %v3265_v6  ;;  %v978_v20 = vmul.f32 %v2447_v51, %v3268_v9  ;;  %v979_v4 = vmul.f32 %v2447_v51, %v3290_v7  ;;  %v980_v5 = vmul.f32 %v2447_v51, %v3293_v22 }
  0xa9   : >> { %v981_v16 = vadd.f32 %v965_v55, %v944_v62  ;;  %v982_v17 = vadd.f32 %v966_v19, %v945_v37  ;;  %v983_v43 = vadd.f32 %v967_v47, %v946_v35  ;;  %v984_v57 = vadd.f32 %v968_v21, %v947_v13  ;;  %v3315_v37 = vld [vmem:[%s2777_s23 + $0x10a] sm:$0xff]  ;;  %v3318_v35 = vld [vmem:[%s2777_s23 + $0x112] sm:$0xff] }
  0xaa   : >> { %v985_v58 = vadd.f32 %v969_v48, %v948_v14  ;;  %v986_v8 = vadd.f32 %v970_v49, %v949_v29  ;;  %v987_v59 = vadd.f32 %v971_v50, %v950_v34  ;;  %v988_v60 = vadd.f32 %v972_v61, %v951_v36 }
  0xab   : >> { %v989_v2 = vadd.f32 %v973_v1, %v952_v41  ;;  %v990_v54 = vadd.f32 %v974_v3, %v953_v56  ;;  %v991_v27 = vadd.f32 %v975_v28, %v954_v32  ;;  %v992_v12 = vadd.f32 %v976_v42, %v955_v63  ;;  %v2451_v1 = vld [vmem:[%s4210_s1 + $0x2a] ss:$0 sm:$0xff] }
  0xac   : >> { %v993_v30 = vadd.f32 %v977_v15, %v956_v26  ;;  %v994_v23 = vadd.f32 %v978_v20, %v957_v33  ;;  %v995_v24 = vadd.f32 %v979_v4, %v958_v10  ;;  %v996_v62 = vadd.f32 %v980_v5, %v959_v46 }
  0xad   : >> { %v1002_v13 = vmul.f32 %v2449_v18, %v3203_v52  ;;  %v1003_v14 = vmul.f32 %v2449_v18, %v3206_v53  ;;  %v1004_v29 = vmul.f32 %v2449_v18, %v3209_v11  ;;  %v1005_v34 = vmul.f32 %v2449_v18, %v3212_v38 }
  0xae   : >> { %v1006_v36 = vmul.f32 %v2449_v18, %v3215_v39  ;;  %v1007_v51 = vmul.f32 %v2449_v18, %v3218_v40  ;;  %v1008_v41 = vmul.f32 %v2449_v18, %v3221_v44  ;;  %v1009_v56 = vmul.f32 %v2449_v18, %v3224_v45 }
  0xaf   : >> { %v1010_v32 = vmul.f32 %v2449_v18, %v3242_v31  ;;  %v1011_v63 = vmul.f32 %v2449_v18, %v3245_v25  ;;  %v1012_v52 = vmul.f32 %v2449_v18, %v3265_v6  ;;  %v1013_v53 = vmul.f32 %v2449_v18, %v3268_v9 }
  0xb0   : >> { %v1014_v26 = vmul.f32 %v2449_v18, %v3290_v7  ;;  %v1015_v33 = vmul.f32 %v2449_v18, %v3293_v22  ;;  %v1016_v10 = vmul.f32 %v2449_v18, %v3315_v37  ;;  %v1017_v46 = vmul.f32 %v2449_v18, %v3318_v35 }
  0xb1   : >> { %v1018_v55 = vadd.f32 %v1002_v13, %v981_v16  ;;  %v1019_v19 = vadd.f32 %v1003_v14, %v982_v17  ;;  %v1020_v47 = vadd.f32 %v1004_v29, %v983_v43  ;;  %v1021_v21 = vadd.f32 %v1005_v34, %v984_v57  ;;  %v845_v17 = vld [vmem:[%s2777_s23 + $0x122] sm:$0xff]  ;;  %v846_v43 = vld [vmem:[%s2777_s23 + $0x12a] sm:$0xff] }
  0xb2   : >> { %v1022_v48 = vadd.f32 %v1006_v36, %v985_v58  ;;  %v1023_v49 = vadd.f32 %v1007_v51, %v986_v8  ;;  %v1024_v50 = vadd.f32 %v1008_v41, %v987_v59  ;;  %v1025_v61 = vadd.f32 %v1009_v56, %v988_v60 }
  0xb3   : >> { %v1026_v3 = vadd.f32 %v1010_v32, %v989_v2  ;;  %v1027_v28 = vadd.f32 %v1011_v63, %v990_v54  ;;  %v1028_v42 = vadd.f32 %v1012_v52, %v991_v27  ;;  %v1029_v15 = vadd.f32 %v1013_v53, %v992_v12  ;;  %v2453_v32 = vld [vmem:[%s4210_s1 + $0x32] ss:$0 sm:$0xff] }
  0xb4   : >> { %v1030_v20 = vadd.f32 %v1014_v26, %v993_v30  ;;  %v1031_v4 = vadd.f32 %v1015_v33, %v994_v23  ;;  %v1032_v5 = vadd.f32 %v1016_v10, %v995_v24  ;;  %v1033_v16 = vadd.f32 %v1017_v46, %v996_v62 }
  0xb5   : >> { %v1039_v57 = vmul.f32 %v2451_v1, %v3209_v11  ;;  %v1040_v58 = vmul.f32 %v2451_v1, %v3212_v38  ;;  %v1041_v8 = vmul.f32 %v2451_v1, %v3215_v39  ;;  %v1042_v59 = vmul.f32 %v2451_v1, %v3218_v40 }
  0xb6   : >> { %v1043_v60 = vmul.f32 %v2451_v1, %v3221_v44  ;;  %v1044_v18 = vmul.f32 %v2451_v1, %v3224_v45  ;;  %v1045_v2 = vmul.f32 %v2451_v1, %v3242_v31  ;;  %v1046_v54 = vmul.f32 %v2451_v1, %v3245_v25 }
  0xb7   : >> { %v1047_v27 = vmul.f32 %v2451_v1, %v3265_v6  ;;  %v1048_v12 = vmul.f32 %v2451_v1, %v3268_v9  ;;  %v1049_v11 = vmul.f32 %v2451_v1, %v3290_v7  ;;  %v1050_v38 = vmul.f32 %v2451_v1, %v3293_v22 }
  0xb8   : >> { %v1051_v30 = vmul.f32 %v2451_v1, %v3315_v37  ;;  %v1052_v23 = vmul.f32 %v2451_v1, %v3318_v35  ;;  %v1053_v24 = vmul.f32 %v2451_v1, %v845_v17  ;;  %v1054_v62 = vmul.f32 %v2451_v1, %v846_v43 }
  0xb9   : >> { %v1055_v13 = vadd.f32 %v1039_v57, %v1018_v55  ;;  %v1056_v14 = vadd.f32 %v1040_v58, %v1019_v19  ;;  %v1057_v29 = vadd.f32 %v1041_v8, %v1020_v47  ;;  %v1058_v34 = vadd.f32 %v1042_v59, %v1021_v21  ;;  %v847_v19 = vld [vmem:[%s2777_s23 + $0x13a] sm:$0xff]  ;;  %v848_v47 = vld [vmem:[%s2777_s23 + $0x142] sm:$0xff]  ;;  %v3383_v8 = vld [vmem:[%s2777_s23 + $0x4b] sm:$0xff] }
  0xba   : >> { %v1059_v36 = vadd.f32 %v1043_v60, %v1022_v48  ;;  %v1060_v51 = vadd.f32 %v1044_v18, %v1023_v49  ;;  %v1061_v41 = vadd.f32 %v1045_v2, %v1024_v50  ;;  %v1062_v56 = vadd.f32 %v1046_v54, %v1025_v61  ;;  %v3380_v58 = vld [vmem:[%s2777_s23 + $0x3b] sm:$0xff]  ;;  %v2454_v59 = vld [vmem:[%s4210_s1 + $0x3] ss:$0 sm:$0xff] }
  0xbb   : >> { %v1063_v63 = vadd.f32 %v1047_v27, %v1026_v3  ;;  %v1064_v52 = vadd.f32 %v1048_v12, %v1027_v28  ;;  %v1065_v53 = vadd.f32 %v1049_v11, %v1028_v42  ;;  %v1066_v26 = vadd.f32 %v1050_v38, %v1029_v15  ;;  %v3389_v27 = vld [vmem:[%s2777_s23 + $0x53] sm:$0xff]  ;;  %v3392_v12 = vld [vmem:[%s2777_s23 + $0x63] sm:$0xff]  ;;  %v3395_v11 = vld [vmem:[%s2777_s23 + $0x6b] sm:$0xff] }
  0xbc   : >> { %v1067_v33 = vadd.f32 %v1051_v30, %v1030_v20  ;;  %v1068_v10 = vadd.f32 %v1052_v23, %v1031_v4  ;;  %v1069_v46 = vadd.f32 %v1053_v24, %v1032_v5  ;;  %v1070_v55 = vadd.f32 %v1054_v62, %v1033_v16  ;;  %v1109_v20 = vld [vmem:[%s2777_s23 + $0xb] sm:$0xff]  ;;  %v1110_v16 = vld [vmem:[%s2777_s23 + $0x1b] sm:$0xff] }
  0xbd   : >> { %v1076_v21 = vmul.f32 %v2453_v32, %v3215_v39  ;;  %v1077_v48 = vmul.f32 %v2453_v32, %v3218_v40  ;;  %v1078_v49 = vmul.f32 %v2453_v32, %v3221_v44  ;;  %v1079_v50 = vmul.f32 %v2453_v32, %v3224_v45  ;;  %v3398_v62 = vld [vmem:[%s2777_s23 + $0x7b] sm:$0xff] }
  0xbe   : >> { %v1080_v61 = vmul.f32 %v2453_v32, %v3242_v31  ;;  %v1081_v1 = vmul.f32 %v2453_v32, %v3245_v25  ;;  %v1082_v3 = vmul.f32 %v2453_v32, %v3265_v6  ;;  %v1083_v28 = vmul.f32 %v2453_v32, %v3268_v9  ;;  %v1108_v6 = vld [vmem:[%s2777_s23 + $0x3] sm:$0xff] }
  0xbf   : >> { %v1084_v39 = vmul.f32 %v2453_v32, %v3290_v7  ;;  %v1085_v40 = vmul.f32 %v2453_v32, %v3293_v22  ;;  %v1086_v42 = vmul.f32 %v2453_v32, %v3315_v37  ;;  %v1087_v44 = vmul.f32 %v2453_v32, %v3318_v35  ;;  %v1111_v22 = vld [vmem:[%s2777_s23 + $0x23] sm:$0xff]  ;;  %v3377_v37 = vld [vmem:[%s2777_s23 + $0x33] sm:$0xff] }
  0xc0   : >> { %v1088_v45 = vmul.f32 %v2453_v32, %v845_v17  ;;  %v1089_v15 = vmul.f32 %v2453_v32, %v846_v43  ;;  %v1090_v31 = vmul.f32 %v2453_v32, %v847_v19  ;;  %v1091_v25 = vmul.f32 %v2453_v32, %v848_v47 }
  0xc1   : >> { %v1092_v4 = vadd.f32 %v1076_v21, %v1055_v13  ;;  %v1093_v9 = vadd.f32 %v1077_v48, %v1056_v14  ;;  %v1094_v5 = vadd.f32 %v1078_v49, %v1057_v29  ;;  %v1095_v7 = vadd.f32 %v1079_v50, %v1058_v34  ;;  %v3401_v13 = vld [vmem:[%s2777_s23 + $0x83] sm:$0xff]  ;;  %v3404_v14 = vld [vmem:[%s2777_s23 + $0x93] sm:$0xff]  ;;  %v3407_v29 = vld [vmem:[%s2777_s23 + $0x9b] sm:$0xff] }
  0xc2   : >> { %v1096_v35 = vadd.f32 %v1080_v61, %v1059_v36  ;;  %v1097_v17 = vadd.f32 %v1081_v1, %v1060_v51  ;;  %v1098_v43 = vadd.f32 %v1082_v3, %v1061_v41  ;;  %v1099_v57 = vadd.f32 %v1083_v28, %v1062_v56  ;;  %v3410_v34 = vld [vmem:[%s2777_s23 + $0xab] sm:$0xff]  ;;  %v3413_v36 = vld [vmem:[%s2777_s23 + $0xb3] sm:$0xff] }
  0xc3   : >> { %v1100_v60 = vadd.f32 %v1084_v39, %v1063_v63  ;;  %v1101_v18 = vadd.f32 %v1085_v40, %v1064_v52  ;;  %v1102_v2 = vadd.f32 %v1086_v42, %v1065_v53  ;;  %v1103_v54 = vadd.f32 %v1087_v44, %v1066_v26  ;;  %v2456_v42 = vld [vmem:[%s4210_s1 + $0xb] ss:$0 sm:$0xff] }
  0xc4   : >> { %v1104_v38 = vadd.f32 %v1088_v45, %v1067_v33  ;;  %v1105_v30 = vadd.f32 %v1089_v15, %v1068_v10  ;;  %v1106_v23 = vadd.f32 %v1090_v31, %v1069_v46  ;;  %v1107_v24 = vadd.f32 %v1091_v25, %v1070_v55 }
  0xc5   : >> { %v1141_v51 = vmul.f32 %v2454_v59, %v1108_v6  ;;  %v1142_v41 = vmul.f32 %v2454_v59, %v1109_v20  ;;  %v1143_v56 = vmul.f32 %v2454_v59, %v1110_v16  ;;  %v1144_v32 = vmul.f32 %v2454_v59, %v1111_v22 }
  0xc6   : >> { %v1145_v63 = vmul.f32 %v2454_v59, %v3377_v37  ;;  %v1146_v52 = vmul.f32 %v2454_v59, %v3380_v58  ;;  %v1147_v53 = vmul.f32 %v2454_v59, %v3383_v8  ;;  %v1148_v26 = vmul.f32 %v2454_v59, %v3389_v27 }
  0xc7   : >> { %v1149_v33 = vmul.f32 %v2454_v59, %v3392_v12  ;;  %v1150_v10 = vmul.f32 %v2454_v59, %v3395_v11  ;;  %v1151_v46 = vmul.f32 %v2454_v59, %v3398_v62  ;;  %v1152_v55 = vmul.f32 %v2454_v59, %v3401_v13 }
  0xc8   : >> { %v1153_v19 = vmul.f32 %v2454_v59, %v3404_v14  ;;  %v1154_v47 = vmul.f32 %v2454_v59, %v3407_v29  ;;  %v1155_v21 = vmul.f32 %v2454_v59, %v3410_v34  ;;  %v1156_v48 = vmul.f32 %v2454_v59, %v3413_v36 }
  0xc9   : >> { %v1157_v49 = vadd.f32 %v1141_v51, %v1092_v4  ;;  %v1158_v50 = vadd.f32 %v1142_v41, %v1093_v9  ;;  %v1159_v61 = vadd.f32 %v1143_v56, %v1094_v5  ;;  %v1160_v1 = vadd.f32 %v1144_v32, %v1095_v7  ;;  %v3431_v9 = vld [vmem:[%s2777_s23 + $0xc3] sm:$0xff]  ;;  %v3434_v5 = vld [vmem:[%s2777_s23 + $0xcb] sm:$0xff] }
  0xca   : >> { %v1161_v3 = vadd.f32 %v1145_v63, %v1096_v35  ;;  %v1162_v28 = vadd.f32 %v1146_v52, %v1097_v17  ;;  %v1163_v39 = vadd.f32 %v1147_v53, %v1098_v43  ;;  %v1164_v40 = vadd.f32 %v1148_v26, %v1099_v57 }
  0xcb   : >> { %v1165_v44 = vadd.f32 %v1149_v33, %v1100_v60  ;;  %v1166_v45 = vadd.f32 %v1150_v10, %v1101_v18  ;;  %v1167_v15 = vadd.f32 %v1151_v46, %v1102_v2  ;;  %v1168_v31 = vadd.f32 %v1152_v55, %v1103_v54  ;;  %v2458_v33 = vld [vmem:[%s4210_s1 + $0x13] ss:$0 sm:$0xff] }
  0xcc   : >> { %v1169_v25 = vadd.f32 %v1153_v19, %v1104_v38  ;;  %v1170_v6 = vadd.f32 %v1154_v47, %v1105_v30  ;;  %v1171_v20 = vadd.f32 %v1155_v21, %v1106_v23  ;;  %v1172_v4 = vadd.f32 %v1156_v48, %v1107_v24 }
  0xcd   : >> { %v1178_v7 = vmul.f32 %v2456_v42, %v1110_v16  ;;  %v1179_v35 = vmul.f32 %v2456_v42, %v1111_v22  ;;  %v1180_v17 = vmul.f32 %v2456_v42, %v3377_v37  ;;  %v1181_v43 = vmul.f32 %v2456_v42, %v3380_v58 }
  0xce   : >> { %v1182_v57 = vmul.f32 %v2456_v42, %v3383_v8  ;;  %v1183_v59 = vmul.f32 %v2456_v42, %v3389_v27  ;;  %v1184_v60 = vmul.f32 %v2456_v42, %v3392_v12  ;;  %v1185_v18 = vmul.f32 %v2456_v42, %v3395_v11 }
  0xcf   : >> { %v1186_v2 = vmul.f32 %v2456_v42, %v3398_v62  ;;  %v1187_v54 = vmul.f32 %v2456_v42, %v3401_v13  ;;  %v1188_v38 = vmul.f32 %v2456_v42, %v3404_v14  ;;  %v1189_v16 = vmul.f32 %v2456_v42, %v3407_v29 }
  0xd0   : >> { %v1190_v22 = vmul.f32 %v2456_v42, %v3410_v34  ;;  %v1191_v30 = vmul.f32 %v2456_v42, %v3413_v36  ;;  %v1192_v23 = vmul.f32 %v2456_v42, %v3431_v9  ;;  %v1193_v24 = vmul.f32 %v2456_v42, %v3434_v5 }
  0xd1   : >> { %v1194_v51 = vadd.f32 %v1178_v7, %v1157_v49  ;;  %v1195_v41 = vadd.f32 %v1179_v35, %v1158_v50  ;;  %v1196_v56 = vadd.f32 %v1180_v17, %v1159_v61  ;;  %v1197_v32 = vadd.f32 %v1181_v43, %v1160_v1  ;;  %v3454_v50 = vld [vmem:[%s2777_s23 + $0xdb] sm:$0xff]  ;;  %v3457_v61 = vld [vmem:[%s2777_s23 + $0xe3] sm:$0xff] }
  0xd2   : >> { %v1198_v63 = vadd.f32 %v1182_v57, %v1161_v3  ;;  %v1199_v52 = vadd.f32 %v1183_v59, %v1162_v28  ;;  %v1200_v53 = vadd.f32 %v1184_v60, %v1163_v39  ;;  %v1201_v26 = vadd.f32 %v1185_v18, %v1164_v40 }
  0xd3   : >> { %v1202_v10 = vadd.f32 %v1186_v2, %v1165_v44  ;;  %v1203_v46 = vadd.f32 %v1187_v54, %v1166_v45  ;;  %v1204_v55 = vadd.f32 %v1188_v38, %v1167_v15  ;;  %v1205_v19 = vadd.f32 %v1189_v16, %v1168_v31  ;;  %v2460_v2 = vld [vmem:[%s4210_s1 + $0x1b] ss:$0 sm:$0xff] }
  0xd4   : >> { %v1206_v47 = vadd.f32 %v1190_v22, %v1169_v25  ;;  %v1207_v21 = vadd.f32 %v1191_v30, %v1170_v6  ;;  %v1208_v48 = vadd.f32 %v1192_v23, %v1171_v20  ;;  %v1209_v49 = vadd.f32 %v1193_v24, %v1172_v4 }
  0xd5   : >> { %v1215_v1 = vmul.f32 %v2458_v33, %v3377_v37  ;;  %v1216_v3 = vmul.f32 %v2458_v33, %v3380_v58  ;;  %v1217_v28 = vmul.f32 %v2458_v33, %v3383_v8  ;;  %v1218_v39 = vmul.f32 %v2458_v33, %v3389_v27 }
  0xd6   : >> { %v1219_v40 = vmul.f32 %v2458_v33, %v3392_v12  ;;  %v1220_v42 = vmul.f32 %v2458_v33, %v3395_v11  ;;  %v1221_v44 = vmul.f32 %v2458_v33, %v3398_v62  ;;  %v1222_v45 = vmul.f32 %v2458_v33, %v3401_v13 }
  0xd7   : >> { %v1223_v15 = vmul.f32 %v2458_v33, %v3404_v14  ;;  %v1224_v31 = vmul.f32 %v2458_v33, %v3407_v29  ;;  %v1225_v37 = vmul.f32 %v2458_v33, %v3410_v34  ;;  %v1226_v58 = vmul.f32 %v2458_v33, %v3413_v36 }
  0xd8   : >> { %v1227_v25 = vmul.f32 %v2458_v33, %v3431_v9  ;;  %v1228_v6 = vmul.f32 %v2458_v33, %v3434_v5  ;;  %v1229_v20 = vmul.f32 %v2458_v33, %v3454_v50  ;;  %v1230_v4 = vmul.f32 %v2458_v33, %v3457_v61 }
  0xd9   : >> { %v1231_v7 = vadd.f32 %v1215_v1, %v1194_v51  ;;  %v1232_v35 = vadd.f32 %v1216_v3, %v1195_v41  ;;  %v1233_v17 = vadd.f32 %v1217_v28, %v1196_v56  ;;  %v1234_v43 = vadd.f32 %v1218_v39, %v1197_v32  ;;  %v3479_v41 = vld [vmem:[%s2777_s23 + $0xf3] sm:$0xff]  ;;  %v3482_v56 = vld [vmem:[%s2777_s23 + $0xfb] sm:$0xff] }
  0xda   : >> { %v1235_v57 = vadd.f32 %v1219_v40, %v1198_v63  ;;  %v1236_v59 = vadd.f32 %v1220_v42, %v1199_v52  ;;  %v1237_v60 = vadd.f32 %v1221_v44, %v1200_v53  ;;  %v1238_v18 = vadd.f32 %v1222_v45, %v1201_v26 }
  0xdb   : >> { %v1239_v54 = vadd.f32 %v1223_v15, %v1202_v10  ;;  %v1240_v38 = vadd.f32 %v1224_v31, %v1203_v46  ;;  %v1241_v16 = vadd.f32 %v1225_v37, %v1204_v55  ;;  %v1242_v22 = vadd.f32 %v1226_v58, %v1205_v19  ;;  %v2462_v15 = vld [vmem:[%s4210_s1 + $0x23] ss:$0 sm:$0xff] }
  0xdc   : >> { %v1243_v30 = vadd.f32 %v1227_v25, %v1206_v47  ;;  %v1244_v23 = vadd.f32 %v1228_v6, %v1207_v21  ;;  %v1245_v24 = vadd.f32 %v1229_v20, %v1208_v48  ;;  %v1246_v51 = vadd.f32 %v1230_v4, %v1209_v49 }
  0xdd   : >> { %v1252_v32 = vmul.f32 %v2460_v2, %v3383_v8  ;;  %v1253_v63 = vmul.f32 %v2460_v2, %v3389_v27  ;;  %v1254_v52 = vmul.f32 %v2460_v2, %v3392_v12  ;;  %v1255_v53 = vmul.f32 %v2460_v2, %v3395_v11 }
  0xde   : >> { %v1256_v26 = vmul.f32 %v2460_v2, %v3398_v62  ;;  %v1257_v33 = vmul.f32 %v2460_v2, %v3401_v13  ;;  %v1258_v10 = vmul.f32 %v2460_v2, %v3404_v14  ;;  %v1259_v46 = vmul.f32 %v2460_v2, %v3407_v29 }
  0xdf   : >> { %v1260_v55 = vmul.f32 %v2460_v2, %v3410_v34  ;;  %v1261_v19 = vmul.f32 %v2460_v2, %v3413_v36  ;;  %v1262_v8 = vmul.f32 %v2460_v2, %v3431_v9  ;;  %v1263_v27 = vmul.f32 %v2460_v2, %v3434_v5 }
  0xe0   : >> { %v1264_v47 = vmul.f32 %v2460_v2, %v3454_v50  ;;  %v1265_v21 = vmul.f32 %v2460_v2, %v3457_v61  ;;  %v1266_v48 = vmul.f32 %v2460_v2, %v3479_v41  ;;  %v1267_v49 = vmul.f32 %v2460_v2, %v3482_v56 }
  0xe1   : >> { %v1268_v1 = vadd.f32 %v1252_v32, %v1231_v7  ;;  %v1269_v3 = vadd.f32 %v1253_v63, %v1232_v35  ;;  %v1270_v28 = vadd.f32 %v1254_v52, %v1233_v17  ;;  %v1271_v39 = vadd.f32 %v1255_v53, %v1234_v43  ;;  %v3504_v35 = vld [vmem:[%s2777_s23 + $0x10b] sm:$0xff]  ;;  %v3507_v17 = vld [vmem:[%s2777_s23 + $0x113] sm:$0xff] }
  0xe2   : >> { %v1272_v40 = vadd.f32 %v1256_v26, %v1235_v57  ;;  %v1273_v42 = vadd.f32 %v1257_v33, %v1236_v59  ;;  %v1274_v44 = vadd.f32 %v1258_v10, %v1237_v60  ;;  %v1275_v45 = vadd.f32 %v1259_v46, %v1238_v18 }
  0xe3   : >> { %v1276_v31 = vadd.f32 %v1260_v55, %v1239_v54  ;;  %v1277_v37 = vadd.f32 %v1261_v19, %v1240_v38  ;;  %v1278_v58 = vadd.f32 %v1262_v8, %v1241_v16  ;;  %v1279_v25 = vadd.f32 %v1263_v27, %v1242_v22  ;;  %v2464_v55 = vld [vmem:[%s4210_s1 + $0x2b] ss:$0 sm:$0xff] }
  0xe4   : >> { %v1280_v6 = vadd.f32 %v1264_v47, %v1243_v30  ;;  %v1281_v20 = vadd.f32 %v1265_v21, %v1244_v23  ;;  %v1282_v4 = vadd.f32 %v1266_v48, %v1245_v24  ;;  %v1283_v7 = vadd.f32 %v1267_v49, %v1246_v51 }
  0xe5   : >> { %v1289_v43 = vmul.f32 %v2462_v15, %v3392_v12  ;;  %v1290_v57 = vmul.f32 %v2462_v15, %v3395_v11  ;;  %v1291_v59 = vmul.f32 %v2462_v15, %v3398_v62  ;;  %v1292_v60 = vmul.f32 %v2462_v15, %v3401_v13 }
  0xe6   : >> { %v1293_v18 = vmul.f32 %v2462_v15, %v3404_v14  ;;  %v1294_v2 = vmul.f32 %v2462_v15, %v3407_v29  ;;  %v1295_v54 = vmul.f32 %v2462_v15, %v3410_v34  ;;  %v1296_v38 = vmul.f32 %v2462_v15, %v3413_v36 }
  0xe7   : >> { %v1297_v16 = vmul.f32 %v2462_v15, %v3431_v9  ;;  %v1298_v22 = vmul.f32 %v2462_v15, %v3434_v5  ;;  %v1299_v12 = vmul.f32 %v2462_v15, %v3454_v50  ;;  %v1300_v11 = vmul.f32 %v2462_v15, %v3457_v61 }
  0xe8   : >> { %v1301_v30 = vmul.f32 %v2462_v15, %v3479_v41  ;;  %v1302_v23 = vmul.f32 %v2462_v15, %v3482_v56  ;;  %v1303_v24 = vmul.f32 %v2462_v15, %v3504_v35  ;;  %v1304_v51 = vmul.f32 %v2462_v15, %v3507_v17 }
  0xe9   : >> { %v1305_v32 = vadd.f32 %v1289_v43, %v1268_v1  ;;  %v1306_v63 = vadd.f32 %v1290_v57, %v1269_v3  ;;  %v1307_v52 = vadd.f32 %v1291_v59, %v1270_v28  ;;  %v1308_v53 = vadd.f32 %v1292_v60, %v1271_v39  ;;  %v1132_v3 = vld [vmem:[%s2777_s23 + $0x123] sm:$0xff]  ;;  %v1133_v28 = vld [vmem:[%s2777_s23 + $0x12b] sm:$0xff] }
  0xea   : >> { %v1309_v26 = vadd.f32 %v1293_v18, %v1272_v40  ;;  %v1310_v33 = vadd.f32 %v1294_v2, %v1273_v42  ;;  %v1311_v10 = vadd.f32 %v1295_v54, %v1274_v44  ;;  %v1312_v46 = vadd.f32 %v1296_v38, %v1275_v45 }
  0xeb   : >> { %v1313_v19 = vadd.f32 %v1297_v16, %v1276_v31  ;;  %v1314_v8 = vadd.f32 %v1298_v22, %v1277_v37  ;;  %v1315_v27 = vadd.f32 %v1299_v12, %v1278_v58  ;;  %v1316_v47 = vadd.f32 %v1300_v11, %v1279_v25  ;;  %v2466_v16 = vld [vmem:[%s4210_s1 + $0x33] ss:$0 sm:$0xff] }
  0xec   : >> { %v1317_v21 = vadd.f32 %v1301_v30, %v1280_v6  ;;  %v1318_v48 = vadd.f32 %v1302_v23, %v1281_v20  ;;  %v1319_v49 = vadd.f32 %v1303_v24, %v1282_v4  ;;  %v1320_v1 = vadd.f32 %v1304_v51, %v1283_v7 }
  0xed   : >> { %v1326_v39 = vmul.f32 %v2464_v55, %v3398_v62  ;;  %v1327_v40 = vmul.f32 %v2464_v55, %v3401_v13  ;;  %v1328_v42 = vmul.f32 %v2464_v55, %v3404_v14  ;;  %v1329_v44 = vmul.f32 %v2464_v55, %v3407_v29 }
  0xee   : >> { %v1330_v45 = vmul.f32 %v2464_v55, %v3410_v34  ;;  %v1331_v15 = vmul.f32 %v2464_v55, %v3413_v36  ;;  %v1332_v31 = vmul.f32 %v2464_v55, %v3431_v9  ;;  %v1333_v37 = vmul.f32 %v2464_v55, %v3434_v5 }
  0xef   : >> { %v1334_v58 = vmul.f32 %v2464_v55, %v3454_v50  ;;  %v1335_v25 = vmul.f32 %v2464_v55, %v3457_v61  ;;  %v1336_v62 = vmul.f32 %v2464_v55, %v3479_v41  ;;  %v1337_v13 = vmul.f32 %v2464_v55, %v3482_v56 }
  0xf0   : >> { %v1338_v6 = vmul.f32 %v2464_v55, %v3504_v35  ;;  %v1339_v20 = vmul.f32 %v2464_v55, %v3507_v17  ;;  %v1340_v4 = vmul.f32 %v2464_v55, %v1132_v3  ;;  %v1341_v7 = vmul.f32 %v2464_v55, %v1133_v28 }
  0xf1   : >> { %v1342_v43 = vadd.f32 %v1326_v39, %v1305_v32  ;;  %v1343_v57 = vadd.f32 %v1327_v40, %v1306_v63  ;;  %v1344_v59 = vadd.f32 %v1328_v42, %v1307_v52  ;;  %v1345_v60 = vadd.f32 %v1329_v44, %v1308_v53  ;;  %v1134_v63 = vld [vmem:[%s2777_s23 + $0x13b] sm:$0xff]  ;;  %v1135_v52 = vld [vmem:[%s2777_s23 + $0x143] sm:$0xff]  ;;  %v3572_v42 = vld [vmem:[%s2777_s23 + $0x4c] sm:$0xff] }
  0xf2   : >> { %v1346_v18 = vadd.f32 %v1330_v45, %v1309_v26  ;;  %v1347_v2 = vadd.f32 %v1331_v15, %v1310_v33  ;;  %v1348_v54 = vadd.f32 %v1332_v31, %v1311_v10  ;;  %v1349_v38 = vadd.f32 %v1333_v37, %v1312_v46  ;;  %v3569_v40 = vld [vmem:[%s2777_s23 + $0x3c] sm:$0xff]  ;;  %v2467_v44 = vld [vmem:[%s4210_s1 + $0x4] ss:$0 sm:$0xff] }
  0xf3   : >> { %v1350_v22 = vadd.f32 %v1334_v58, %v1313_v19  ;;  %v1351_v12 = vadd.f32 %v1335_v25, %v1314_v8  ;;  %v1352_v11 = vadd.f32 %v1336_v62, %v1315_v27  ;;  %v1353_v30 = vadd.f32 %v1337_v13, %v1316_v47  ;;  %v3578_v58 = vld [vmem:[%s2777_s23 + $0x54] sm:$0xff]  ;;  %v3581_v25 = vld [vmem:[%s2777_s23 + $0x64] sm:$0xff]  ;;  %v3584_v62 = vld [vmem:[%s2777_s23 + $0x6c] sm:$0xff] }
  0xf4   : >> { %v1354_v23 = vadd.f32 %v1338_v6, %v1317_v21  ;;  %v1355_v24 = vadd.f32 %v1339_v20, %v1318_v48  ;;  %v1356_v51 = vadd.f32 %v1340_v4, %v1319_v49  ;;  %v1357_v32 = vadd.f32 %v1341_v7, %v1320_v1  ;;  %v1396_v21 = vld [vmem:[%s2777_s23 + $0xc] sm:$0xff]  ;;  %v1397_v1 = vld [vmem:[%s2777_s23 + $0x1c] sm:$0xff] }
  0xf5   : >> { %v1363_v53 = vmul.f32 %v2466_v16, %v3404_v14  ;;  %v1364_v26 = vmul.f32 %v2466_v16, %v3407_v29  ;;  %v1365_v33 = vmul.f32 %v2466_v16, %v3410_v34  ;;  %v1366_v10 = vmul.f32 %v2466_v16, %v3413_v36  ;;  %v3587_v7 = vld [vmem:[%s2777_s23 + $0x7c] sm:$0xff] }
  0xf6   : >> { %v1367_v46 = vmul.f32 %v2466_v16, %v3431_v9  ;;  %v1368_v55 = vmul.f32 %v2466_v16, %v3434_v5  ;;  %v1369_v19 = vmul.f32 %v2466_v16, %v3454_v50  ;;  %v1370_v8 = vmul.f32 %v2466_v16, %v3457_v61  ;;  %v1395_v50 = vld [vmem:[%s2777_s23 + $0x4] sm:$0xff] }
  0xf7   : >> { %v1371_v14 = vmul.f32 %v2466_v16, %v3479_v41  ;;  %v1372_v29 = vmul.f32 %v2466_v16, %v3482_v56  ;;  %v1373_v27 = vmul.f32 %v2466_v16, %v3504_v35  ;;  %v1374_v34 = vmul.f32 %v2466_v16, %v3507_v17  ;;  %v1398_v56 = vld [vmem:[%s2777_s23 + $0x24] sm:$0xff]  ;;  %v3566_v35 = vld [vmem:[%s2777_s23 + $0x34] sm:$0xff] }
  0xf8   : >> { %v1375_v36 = vmul.f32 %v2466_v16, %v1132_v3  ;;  %v1376_v47 = vmul.f32 %v2466_v16, %v1133_v28  ;;  %v1377_v9 = vmul.f32 %v2466_v16, %v1134_v63  ;;  %v1378_v5 = vmul.f32 %v2466_v16, %v1135_v52 }
  0xf9   : >> { %v1379_v48 = vadd.f32 %v1363_v53, %v1342_v43  ;;  %v1380_v61 = vadd.f32 %v1364_v26, %v1343_v57  ;;  %v1381_v49 = vadd.f32 %v1365_v33, %v1344_v59  ;;  %v1382_v41 = vadd.f32 %v1366_v10, %v1345_v60  ;;  %v3590_v43 = vld [vmem:[%s2777_s23 + $0x84] sm:$0xff]  ;;  %v3593_v57 = vld [vmem:[%s2777_s23 + $0x94] sm:$0xff]  ;;  %v3596_v59 = vld [vmem:[%s2777_s23 + $0x9c] sm:$0xff] }
  0xfa   : >> { %v1383_v17 = vadd.f32 %v1367_v46, %v1346_v18  ;;  %v1384_v3 = vadd.f32 %v1368_v55, %v1347_v2  ;;  %v1385_v28 = vadd.f32 %v1369_v19, %v1348_v54  ;;  %v1386_v39 = vadd.f32 %v1370_v8, %v1349_v38  ;;  %v3599_v60 = vld [vmem:[%s2777_s23 + $0xac] sm:$0xff]  ;;  %v3602_v18 = vld [vmem:[%s2777_s23 + $0xb4] sm:$0xff] }
  0xfb   : >> { %v1387_v45 = vadd.f32 %v1371_v14, %v1350_v22  ;;  %v1388_v15 = vadd.f32 %v1372_v29, %v1351_v12  ;;  %v1389_v31 = vadd.f32 %v1373_v27, %v1352_v11  ;;  %v1390_v37 = vadd.f32 %v1374_v34, %v1353_v30  ;;  %v2469_v27 = vld [vmem:[%s4210_s1 + $0xc] ss:$0 sm:$0xff] }
  0xfc   : >> { %v1391_v13 = vadd.f32 %v1375_v36, %v1354_v23  ;;  %v1392_v6 = vadd.f32 %v1376_v47, %v1355_v24  ;;  %v1393_v20 = vadd.f32 %v1377_v9, %v1356_v51  ;;  %v1394_v4 = vadd.f32 %v1378_v5, %v1357_v32 }
  0xfd   : >> { %v1428_v2 = vmul.f32 %v2467_v44, %v1395_v50  ;;  %v1429_v54 = vmul.f32 %v2467_v44, %v1396_v21  ;;  %v1430_v38 = vmul.f32 %v2467_v44, %v1397_v1  ;;  %v1431_v16 = vmul.f32 %v2467_v44, %v1398_v56 }
  0xfe   : >> { %v1432_v22 = vmul.f32 %v2467_v44, %v3566_v35  ;;  %v1433_v12 = vmul.f32 %v2467_v44, %v3569_v40  ;;  %v1434_v11 = vmul.f32 %v2467_v44, %v3572_v42  ;;  %v1435_v30 = vmul.f32 %v2467_v44, %v3578_v58 }
  0xff   : >> { %v1436_v23 = vmul.f32 %v2467_v44, %v3581_v25  ;;  %v1437_v24 = vmul.f32 %v2467_v44, %v3584_v62  ;;  %v1438_v51 = vmul.f32 %v2467_v44, %v3587_v7  ;;  %v1439_v32 = vmul.f32 %v2467_v44, %v3590_v43 }
 0x100   : >> { %v1440_v63 = vmul.f32 %v2467_v44, %v3593_v57  ;;  %v1441_v52 = vmul.f32 %v2467_v44, %v3596_v59  ;;  %v1442_v53 = vmul.f32 %v2467_v44, %v3599_v60  ;;  %v1443_v26 = vmul.f32 %v2467_v44, %v3602_v18 }
 0x101   : >> { %v1444_v33 = vadd.f32 %v1428_v2, %v1379_v48  ;;  %v1445_v10 = vadd.f32 %v1429_v54, %v1380_v61  ;;  %v1446_v46 = vadd.f32 %v1430_v38, %v1381_v49  ;;  %v1447_v55 = vadd.f32 %v1431_v16, %v1382_v41  ;;  %v3620_v61 = vld [vmem:[%s2777_s23 + $0xc4] sm:$0xff]  ;;  %v3623_v49 = vld [vmem:[%s2777_s23 + $0xcc] sm:$0xff] }
 0x102   : >> { %v1448_v19 = vadd.f32 %v1432_v22, %v1383_v17  ;;  %v1449_v8 = vadd.f32 %v1433_v12, %v1384_v3  ;;  %v1450_v14 = vadd.f32 %v1434_v11, %v1385_v28  ;;  %v1451_v29 = vadd.f32 %v1435_v30, %v1386_v39 }
 0x103   : >> { %v1452_v34 = vadd.f32 %v1436_v23, %v1387_v45  ;;  %v1453_v36 = vadd.f32 %v1437_v24, %v1388_v15  ;;  %v1454_v47 = vadd.f32 %v1438_v51, %v1389_v31  ;;  %v1455_v9 = vadd.f32 %v1439_v32, %v1390_v37  ;;  %v2471_v23 = vld [vmem:[%s4210_s1 + $0x14] ss:$0 sm:$0xff] }
 0x104   : >> { %v1456_v5 = vadd.f32 %v1440_v63, %v1391_v13  ;;  %v1457_v50 = vadd.f32 %v1441_v52, %v1392_v6  ;;  %v1458_v21 = vadd.f32 %v1442_v53, %v1393_v20  ;;  %v1459_v48 = vadd.f32 %v1443_v26, %v1394_v4 }
 0x105   : >> { %v1465_v41 = vmul.f32 %v2469_v27, %v1397_v1  ;;  %v1466_v17 = vmul.f32 %v2469_v27, %v1398_v56  ;;  %v1467_v3 = vmul.f32 %v2469_v27, %v3566_v35  ;;  %v1468_v28 = vmul.f32 %v2469_v27, %v3569_v40 }
 0x106   : >> { %v1469_v39 = vmul.f32 %v2469_v27, %v3572_v42  ;;  %v1470_v44 = vmul.f32 %v2469_v27, %v3578_v58  ;;  %v1471_v45 = vmul.f32 %v2469_v27, %v3581_v25  ;;  %v1472_v15 = vmul.f32 %v2469_v27, %v3584_v62 }
 0x107   : >> { %v1473_v31 = vmul.f32 %v2469_v27, %v3587_v7  ;;  %v1474_v37 = vmul.f32 %v2469_v27, %v3590_v43  ;;  %v1475_v13 = vmul.f32 %v2469_v27, %v3593_v57  ;;  %v1476_v1 = vmul.f32 %v2469_v27, %v3596_v59 }
 0x108   : >> { %v1477_v56 = vmul.f32 %v2469_v27, %v3599_v60  ;;  %v1478_v6 = vmul.f32 %v2469_v27, %v3602_v18  ;;  %v1479_v20 = vmul.f32 %v2469_v27, %v3620_v61  ;;  %v1480_v4 = vmul.f32 %v2469_v27, %v3623_v49 }
 0x109   : >> { %v1481_v2 = vadd.f32 %v1465_v41, %v1444_v33  ;;  %v1482_v54 = vadd.f32 %v1466_v17, %v1445_v10  ;;  %v1483_v38 = vadd.f32 %v1467_v3, %v1446_v46  ;;  %v1484_v16 = vadd.f32 %v1468_v28, %v1447_v55  ;;  %v3643_v10 = vld [vmem:[%s2777_s23 + $0xdc] sm:$0xff]  ;;  %v3646_v46 = vld [vmem:[%s2777_s23 + $0xe4] sm:$0xff] }
 0x10a   : >> { %v1485_v22 = vadd.f32 %v1469_v39, %v1448_v19  ;;  %v1486_v12 = vadd.f32 %v1470_v44, %v1449_v8  ;;  %v1487_v11 = vadd.f32 %v1471_v45, %v1450_v14  ;;  %v1488_v30 = vadd.f32 %v1472_v15, %v1451_v29 }
 0x10b   : >> { %v1489_v24 = vadd.f32 %v1473_v31, %v1452_v34  ;;  %v1490_v51 = vadd.f32 %v1474_v37, %v1453_v36  ;;  %v1491_v32 = vadd.f32 %v1475_v13, %v1454_v47  ;;  %v1492_v63 = vadd.f32 %v1476_v1, %v1455_v9  ;;  %v2473_v31 = vld [vmem:[%s4210_s1 + $0x1c] ss:$0 sm:$0xff] }
 0x10c   : >> { %v1493_v52 = vadd.f32 %v1477_v56, %v1456_v5  ;;  %v1494_v53 = vadd.f32 %v1478_v6, %v1457_v50  ;;  %v1495_v26 = vadd.f32 %v1479_v20, %v1458_v21  ;;  %v1496_v33 = vadd.f32 %v1480_v4, %v1459_v48 }
 0x10d   : >> { %v1502_v55 = vmul.f32 %v2471_v23, %v3566_v35  ;;  %v1503_v19 = vmul.f32 %v2471_v23, %v3569_v40  ;;  %v1504_v8 = vmul.f32 %v2471_v23, %v3572_v42  ;;  %v1505_v14 = vmul.f32 %v2471_v23, %v3578_v58 }
 0x10e   : >> { %v1506_v29 = vmul.f32 %v2471_v23, %v3581_v25  ;;  %v1507_v27 = vmul.f32 %v2471_v23, %v3584_v62  ;;  %v1508_v34 = vmul.f32 %v2471_v23, %v3587_v7  ;;  %v1509_v36 = vmul.f32 %v2471_v23, %v3590_v43 }
 0x10f   : >> { %v1510_v47 = vmul.f32 %v2471_v23, %v3593_v57  ;;  %v1511_v9 = vmul.f32 %v2471_v23, %v3596_v59  ;;  %v1512_v35 = vmul.f32 %v2471_v23, %v3599_v60  ;;  %v1513_v40 = vmul.f32 %v2471_v23, %v3602_v18 }
 0x110   : >> { %v1514_v5 = vmul.f32 %v2471_v23, %v3620_v61  ;;  %v1515_v50 = vmul.f32 %v2471_v23, %v3623_v49  ;;  %v1516_v21 = vmul.f32 %v2471_v23, %v3643_v10  ;;  %v1517_v48 = vmul.f32 %v2471_v23, %v3646_v46 }
 0x111   : >> { %v1518_v41 = vadd.f32 %v1502_v55, %v1481_v2  ;;  %v1519_v17 = vadd.f32 %v1503_v19, %v1482_v54  ;;  %v1520_v3 = vadd.f32 %v1504_v8, %v1483_v38  ;;  %v1521_v28 = vadd.f32 %v1505_v14, %v1484_v16  ;;  %v3668_v54 = vld [vmem:[%s2777_s23 + $0xf4] sm:$0xff]  ;;  %v3671_v38 = vld [vmem:[%s2777_s23 + $0xfc] sm:$0xff] }
 0x112   : >> { %v1522_v39 = vadd.f32 %v1506_v29, %v1485_v22  ;;  %v1523_v44 = vadd.f32 %v1507_v27, %v1486_v12  ;;  %v1524_v45 = vadd.f32 %v1508_v34, %v1487_v11  ;;  %v1525_v15 = vadd.f32 %v1509_v36, %v1488_v30 }
 0x113   : >> { %v1526_v37 = vadd.f32 %v1510_v47, %v1489_v24  ;;  %v1527_v13 = vadd.f32 %v1511_v9, %v1490_v51  ;;  %v1528_v1 = vadd.f32 %v1512_v35, %v1491_v32  ;;  %v1529_v56 = vadd.f32 %v1513_v40, %v1492_v63  ;;  %v2475_v47 = vld [vmem:[%s4210_s1 + $0x24] ss:$0 sm:$0xff] }
 0x114   : >> { %v1530_v6 = vadd.f32 %v1514_v5, %v1493_v52  ;;  %v1531_v20 = vadd.f32 %v1515_v50, %v1494_v53  ;;  %v1532_v4 = vadd.f32 %v1516_v21, %v1495_v26  ;;  %v1533_v2 = vadd.f32 %v1517_v48, %v1496_v33 }
 0x115   : >> { %v1539_v16 = vmul.f32 %v2473_v31, %v3572_v42  ;;  %v1540_v22 = vmul.f32 %v2473_v31, %v3578_v58  ;;  %v1541_v12 = vmul.f32 %v2473_v31, %v3581_v25  ;;  %v1542_v11 = vmul.f32 %v2473_v31, %v3584_v62 }
 0x116   : >> { %v1543_v30 = vmul.f32 %v2473_v31, %v3587_v7  ;;  %v1544_v23 = vmul.f32 %v2473_v31, %v3590_v43  ;;  %v1545_v24 = vmul.f32 %v2473_v31, %v3593_v57  ;;  %v1546_v51 = vmul.f32 %v2473_v31, %v3596_v59 }
 0x117   : >> { %v1547_v32 = vmul.f32 %v2473_v31, %v3599_v60  ;;  %v1548_v63 = vmul.f32 %v2473_v31, %v3602_v18  ;;  %v1549_v42 = vmul.f32 %v2473_v31, %v3620_v61  ;;  %v1550_v58 = vmul.f32 %v2473_v31, %v3623_v49 }
 0x118   : >> { %v1551_v52 = vmul.f32 %v2473_v31, %v3643_v10  ;;  %v1552_v53 = vmul.f32 %v2473_v31, %v3646_v46  ;;  %v1553_v26 = vmul.f32 %v2473_v31, %v3668_v54  ;;  %v1554_v33 = vmul.f32 %v2473_v31, %v3671_v38 }
 0x119   : >> { %v1555_v55 = vadd.f32 %v1539_v16, %v1518_v41  ;;  %v1556_v19 = vadd.f32 %v1540_v22, %v1519_v17  ;;  %v1557_v8 = vadd.f32 %v1541_v12, %v1520_v3  ;;  %v1558_v14 = vadd.f32 %v1542_v11, %v1521_v28  ;;  %v3693_v17 = vld [vmem:[%s2777_s23 + $0x10c] sm:$0xff]  ;;  %v3696_v3 = vld [vmem:[%s2777_s23 + $0x114] sm:$0xff] }
 0x11a   : >> { %v1559_v29 = vadd.f32 %v1543_v30, %v1522_v39  ;;  %v1560_v27 = vadd.f32 %v1544_v23, %v1523_v44  ;;  %v1561_v34 = vadd.f32 %v1545_v24, %v1524_v45  ;;  %v1562_v36 = vadd.f32 %v1546_v51, %v1525_v15 }
 0x11b   : >> { %v1563_v9 = vadd.f32 %v1547_v32, %v1526_v37  ;;  %v1564_v35 = vadd.f32 %v1548_v63, %v1527_v13  ;;  %v1565_v40 = vadd.f32 %v1549_v42, %v1528_v1  ;;  %v1566_v5 = vadd.f32 %v1550_v58, %v1529_v56  ;;  %v2477_v32 = vld [vmem:[%s4210_s1 + $0x2c] ss:$0 sm:$0xff] }
 0x11c   : >> { %v1567_v50 = vadd.f32 %v1551_v52, %v1530_v6  ;;  %v1568_v21 = vadd.f32 %v1552_v53, %v1531_v20  ;;  %v1569_v48 = vadd.f32 %v1553_v26, %v1532_v4  ;;  %v1570_v41 = vadd.f32 %v1554_v33, %v1533_v2 }
 0x11d   : >> { %v1576_v28 = vmul.f32 %v2475_v47, %v3581_v25  ;;  %v1577_v39 = vmul.f32 %v2475_v47, %v3584_v62  ;;  %v1578_v44 = vmul.f32 %v2475_v47, %v3587_v7  ;;  %v1579_v45 = vmul.f32 %v2475_v47, %v3590_v43 }
 0x11e   : >> { %v1580_v15 = vmul.f32 %v2475_v47, %v3593_v57  ;;  %v1581_v31 = vmul.f32 %v2475_v47, %v3596_v59  ;;  %v1582_v37 = vmul.f32 %v2475_v47, %v3599_v60  ;;  %v1583_v13 = vmul.f32 %v2475_v47, %v3602_v18 }
 0x11f   : >> { %v1584_v1 = vmul.f32 %v2475_v47, %v3620_v61  ;;  %v1585_v56 = vmul.f32 %v2475_v47, %v3623_v49  ;;  %v1586_v25 = vmul.f32 %v2475_v47, %v3643_v10  ;;  %v1587_v62 = vmul.f32 %v2475_v47, %v3646_v46 }
 0x120   : >> { %v1588_v6 = vmul.f32 %v2475_v47, %v3668_v54  ;;  %v1589_v20 = vmul.f32 %v2475_v47, %v3671_v38  ;;  %v1590_v4 = vmul.f32 %v2475_v47, %v3693_v17  ;;  %v1591_v2 = vmul.f32 %v2475_v47, %v3696_v3 }
 0x121   : >> { %v1592_v16 = vadd.f32 %v1576_v28, %v1555_v55  ;;  %v1593_v22 = vadd.f32 %v1577_v39, %v1556_v19  ;;  %v1594_v12 = vadd.f32 %v1578_v44, %v1557_v8  ;;  %v1595_v11 = vadd.f32 %v1579_v45, %v1558_v14  ;;  %v1419_v19 = vld [vmem:[%s2777_s23 + $0x124] sm:$0xff]  ;;  %v1420_v8 = vld [vmem:[%s2777_s23 + $0x12c] sm:$0xff] }
 0x122   : >> { %v1596_v30 = vadd.f32 %v1580_v15, %v1559_v29  ;;  %v1597_v23 = vadd.f32 %v1581_v31, %v1560_v27  ;;  %v1598_v24 = vadd.f32 %v1582_v37, %v1561_v34  ;;  %v1599_v51 = vadd.f32 %v1583_v13, %v1562_v36 }
 0x123   : >> { %v1600_v63 = vadd.f32 %v1584_v1, %v1563_v9  ;;  %v1601_v42 = vadd.f32 %v1585_v56, %v1564_v35  ;;  %v1602_v58 = vadd.f32 %v1586_v25, %v1565_v40  ;;  %v1603_v52 = vadd.f32 %v1587_v62, %v1566_v5  ;;  %v2479_v1 = vld [vmem:[%s4210_s1 + $0x34] ss:$0 sm:$0xff] }
 0x124   : >> { %v1604_v53 = vadd.f32 %v1588_v6, %v1567_v50  ;;  %v1605_v26 = vadd.f32 %v1589_v20, %v1568_v21  ;;  %v1606_v33 = vadd.f32 %v1590_v4, %v1569_v48  ;;  %v1607_v55 = vadd.f32 %v1591_v2, %v1570_v41 }
 0x125   : >> { %v1613_v14 = vmul.f32 %v2477_v32, %v3587_v7  ;;  %v1614_v29 = vmul.f32 %v2477_v32, %v3590_v43  ;;  %v1615_v27 = vmul.f32 %v2477_v32, %v3593_v57  ;;  %v1616_v34 = vmul.f32 %v2477_v32, %v3596_v59 }
 0x126   : >> { %v1617_v36 = vmul.f32 %v2477_v32, %v3599_v60  ;;  %v1618_v47 = vmul.f32 %v2477_v32, %v3602_v18  ;;  %v1619_v9 = vmul.f32 %v2477_v32, %v3620_v61  ;;  %v1620_v35 = vmul.f32 %v2477_v32, %v3623_v49 }
 0x127   : >> { %v1621_v40 = vmul.f32 %v2477_v32, %v3643_v10  ;;  %v1622_v5 = vmul.f32 %v2477_v32, %v3646_v46  ;;  %v1623_v7 = vmul.f32 %v2477_v32, %v3668_v54  ;;  %v1624_v43 = vmul.f32 %v2477_v32, %v3671_v38 }
 0x128   : >> { %v1625_v50 = vmul.f32 %v2477_v32, %v3693_v17  ;;  %v1626_v21 = vmul.f32 %v2477_v32, %v3696_v3  ;;  %v1627_v48 = vmul.f32 %v2477_v32, %v1419_v19  ;;  %v1628_v41 = vmul.f32 %v2477_v32, %v1420_v8 }
 0x129   : >> { %v1629_v28 = vadd.f32 %v1613_v14, %v1592_v16  ;;  %v1630_v39 = vadd.f32 %v1614_v29, %v1593_v22  ;;  %v1631_v44 = vadd.f32 %v1615_v27, %v1594_v12  ;;  %v1632_v45 = vadd.f32 %v1616_v34, %v1595_v11  ;;  %v1421_v22 = vld [vmem:[%s2777_s23 + $0x13c] sm:$0xff]  ;;  %v1422_v12 = vld [vmem:[%s2777_s23 + $0x144] sm:$0xff]  ;;  %v3761_v27 = vld [vmem:[%s2777_s23 + $0x4d] sm:$0xff] }
 0x12a   : >> { %v1633_v15 = vadd.f32 %v1617_v36, %v1596_v30  ;;  %v1634_v31 = vadd.f32 %v1618_v47, %v1597_v23  ;;  %v1635_v37 = vadd.f32 %v1619_v9, %v1598_v24  ;;  %v1636_v13 = vadd.f32 %v1620_v35, %v1599_v51  ;;  %v3758_v29 = vld [vmem:[%s2777_s23 + $0x3d] sm:$0xff]  ;;  %v2480_v34 = vld [vmem:[%s4210_s1 + $0x5] ss:$0 sm:$0xff] }
 0x12b   : >> { %v1637_v56 = vadd.f32 %v1621_v40, %v1600_v63  ;;  %v1638_v25 = vadd.f32 %v1622_v5, %v1601_v42  ;;  %v1639_v62 = vadd.f32 %v1623_v7, %v1602_v58  ;;  %v1640_v6 = vadd.f32 %v1624_v43, %v1603_v52  ;;  %v3767_v40 = vld [vmem:[%s2777_s23 + $0x55] sm:$0xff]  ;;  %v3770_v5 = vld [vmem:[%s2777_s23 + $0x65] sm:$0xff]  ;;  %v3773_v7 = vld [vmem:[%s2777_s23 + $0x6d] sm:$0xff] }
 0x12c   : >> { %v1641_v20 = vadd.f32 %v1625_v50, %v1604_v53  ;;  %v1642_v4 = vadd.f32 %v1626_v21, %v1605_v26  ;;  %v1643_v2 = vadd.f32 %v1627_v48, %v1606_v33  ;;  %v1644_v16 = vadd.f32 %v1628_v41, %v1607_v55  ;;  %v1683_v53 = vld [vmem:[%s2777_s23 + $0xd] sm:$0xff]  ;;  %v1684_v55 = vld [vmem:[%s2777_s23 + $0x1d] sm:$0xff] }
 0x12d   : >> { %v1650_v11 = vmul.f32 %v2479_v1, %v3593_v57  ;;  %v1651_v30 = vmul.f32 %v2479_v1, %v3596_v59  ;;  %v1652_v23 = vmul.f32 %v2479_v1, %v3599_v60  ;;  %v1653_v24 = vmul.f32 %v2479_v1, %v3602_v18  ;;  %v3776_v41 = vld [vmem:[%s2777_s23 + $0x7d] sm:$0xff] }
 0x12e   : >> { %v1654_v51 = vmul.f32 %v2479_v1, %v3620_v61  ;;  %v1655_v32 = vmul.f32 %v2479_v1, %v3623_v49  ;;  %v1656_v63 = vmul.f32 %v2479_v1, %v3643_v10  ;;  %v1657_v42 = vmul.f32 %v2479_v1, %v3646_v46  ;;  %v1682_v10 = vld [vmem:[%s2777_s23 + $0x5] sm:$0xff] }
 0x12f   : >> { %v1658_v57 = vmul.f32 %v2479_v1, %v3668_v54  ;;  %v1659_v59 = vmul.f32 %v2479_v1, %v3671_v38  ;;  %v1660_v58 = vmul.f32 %v2479_v1, %v3693_v17  ;;  %v1661_v60 = vmul.f32 %v2479_v1, %v3696_v3  ;;  %v1685_v38 = vld [vmem:[%s2777_s23 + $0x25] sm:$0xff]  ;;  %v3755_v17 = vld [vmem:[%s2777_s23 + $0x35] sm:$0xff] }
 0x130   : >> { %v1662_v18 = vmul.f32 %v2479_v1, %v1419_v19  ;;  %v1663_v52 = vmul.f32 %v2479_v1, %v1420_v8  ;;  %v1664_v61 = vmul.f32 %v2479_v1, %v1421_v22  ;;  %v1665_v49 = vmul.f32 %v2479_v1, %v1422_v12 }
 0x131   : >> { %v1666_v26 = vadd.f32 %v1650_v11, %v1629_v28  ;;  %v1667_v46 = vadd.f32 %v1651_v30, %v1630_v39  ;;  %v1668_v33 = vadd.f32 %v1652_v23, %v1631_v44  ;;  %v1669_v54 = vadd.f32 %v1653_v24, %v1632_v45  ;;  %v3779_v28 = vld [vmem:[%s2777_s23 + $0x85] sm:$0xff]  ;;  %v3782_v39 = vld [vmem:[%s2777_s23 + $0x95] sm:$0xff]  ;;  %v3785_v44 = vld [vmem:[%s2777_s23 + $0x9d] sm:$0xff] }
 0x132   : >> { %v1670_v3 = vadd.f32 %v1654_v51, %v1633_v15  ;;  %v1671_v19 = vadd.f32 %v1655_v32, %v1634_v31  ;;  %v1672_v8 = vadd.f32 %v1656_v63, %v1635_v37  ;;  %v1673_v14 = vadd.f32 %v1657_v42, %v1636_v13  ;;  %v3788_v45 = vld [vmem:[%s2777_s23 + $0xad] sm:$0xff]  ;;  %v3791_v15 = vld [vmem:[%s2777_s23 + $0xb5] sm:$0xff] }
 0x133   : >> { %v1674_v36 = vadd.f32 %v1658_v57, %v1637_v56  ;;  %v1675_v47 = vadd.f32 %v1659_v59, %v1638_v25  ;;  %v1676_v9 = vadd.f32 %v1660_v58, %v1639_v62  ;;  %v1677_v35 = vadd.f32 %v1661_v60, %v1640_v6  ;;  %v2482_v58 = vld [vmem:[%s4210_s1 + $0xd] ss:$0 sm:$0xff] }
 0x134   : >> { %v1678_v43 = vadd.f32 %v1662_v18, %v1641_v20  ;;  %v1679_v50 = vadd.f32 %v1663_v52, %v1642_v4  ;;  %v1680_v21 = vadd.f32 %v1664_v61, %v1643_v2  ;;  %v1681_v48 = vadd.f32 %v1665_v49, %v1644_v16 }
 0x135   : >> { %v1715_v31 = vmul.f32 %v2480_v34, %v1682_v10  ;;  %v1716_v37 = vmul.f32 %v2480_v34, %v1683_v53  ;;  %v1717_v13 = vmul.f32 %v2480_v34, %v1684_v55  ;;  %v1718_v1 = vmul.f32 %v2480_v34, %v1685_v38 }
 0x136   : >> { %v1719_v56 = vmul.f32 %v2480_v34, %v3755_v17  ;;  %v1720_v25 = vmul.f32 %v2480_v34, %v3758_v29  ;;  %v1721_v62 = vmul.f32 %v2480_v34, %v3761_v27  ;;  %v1722_v6 = vmul.f32 %v2480_v34, %v3767_v40 }
 0x137   : >> { %v1723_v20 = vmul.f32 %v2480_v34, %v3770_v5  ;;  %v1724_v4 = vmul.f32 %v2480_v34, %v3773_v7  ;;  %v1725_v2 = vmul.f32 %v2480_v34, %v3776_v41  ;;  %v1726_v16 = vmul.f32 %v2480_v34, %v3779_v28 }
 0x138   : >> { %v1727_v22 = vmul.f32 %v2480_v34, %v3782_v39  ;;  %v1728_v12 = vmul.f32 %v2480_v34, %v3785_v44  ;;  %v1729_v11 = vmul.f32 %v2480_v34, %v3788_v45  ;;  %v1730_v30 = vmul.f32 %v2480_v34, %v3791_v15 }
 0x139   : >> { %v1731_v23 = vadd.f32 %v1715_v31, %v1666_v26  ;;  %v1732_v24 = vadd.f32 %v1716_v37, %v1667_v46  ;;  %v1733_v51 = vadd.f32 %v1717_v13, %v1668_v33  ;;  %v1734_v32 = vadd.f32 %v1718_v1, %v1669_v54  ;;  %v3809_v46 = vld [vmem:[%s2777_s23 + $0xc5] sm:$0xff]  ;;  %v3812_v33 = vld [vmem:[%s2777_s23 + $0xcd] sm:$0xff] }
 0x13a   : >> { %v1735_v63 = vadd.f32 %v1719_v56, %v1670_v3  ;;  %v1736_v42 = vadd.f32 %v1720_v25, %v1671_v19  ;;  %v1737_v57 = vadd.f32 %v1721_v62, %v1672_v8  ;;  %v1738_v59 = vadd.f32 %v1722_v6, %v1673_v14 }
 0x13b   : >> { %v1739_v60 = vadd.f32 %v1723_v20, %v1674_v36  ;;  %v1740_v18 = vadd.f32 %v1724_v4, %v1675_v47  ;;  %v1741_v52 = vadd.f32 %v1725_v2, %v1676_v9  ;;  %v1742_v61 = vadd.f32 %v1726_v16, %v1677_v35  ;;  %v2484_v20 = vld [vmem:[%s4210_s1 + $0x15] ss:$0 sm:$0xff] }
 0x13c   : >> { %v1743_v49 = vadd.f32 %v1727_v22, %v1678_v43  ;;  %v1744_v10 = vadd.f32 %v1728_v12, %v1679_v50  ;;  %v1745_v53 = vadd.f32 %v1729_v11, %v1680_v21  ;;  %v1746_v26 = vadd.f32 %v1730_v30, %v1681_v48 }
 0x13d   : >> { %v1752_v54 = vmul.f32 %v2482_v58, %v1684_v55  ;;  %v1753_v3 = vmul.f32 %v2482_v58, %v1685_v38  ;;  %v1754_v19 = vmul.f32 %v2482_v58, %v3755_v17  ;;  %v1755_v8 = vmul.f32 %v2482_v58, %v3758_v29 }
 0x13e   : >> { %v1756_v14 = vmul.f32 %v2482_v58, %v3761_v27  ;;  %v1757_v34 = vmul.f32 %v2482_v58, %v3767_v40  ;;  %v1758_v36 = vmul.f32 %v2482_v58, %v3770_v5  ;;  %v1759_v47 = vmul.f32 %v2482_v58, %v3773_v7 }
 0x13f   : >> { %v1760_v9 = vmul.f32 %v2482_v58, %v3776_v41  ;;  %v1761_v35 = vmul.f32 %v2482_v58, %v3779_v28  ;;  %v1762_v43 = vmul.f32 %v2482_v58, %v3782_v39  ;;  %v1763_v55 = vmul.f32 %v2482_v58, %v3785_v44 }
 0x140   : >> { %v1764_v38 = vmul.f32 %v2482_v58, %v3788_v45  ;;  %v1765_v50 = vmul.f32 %v2482_v58, %v3791_v15  ;;  %v1766_v21 = vmul.f32 %v2482_v58, %v3809_v46  ;;  %v1767_v48 = vmul.f32 %v2482_v58, %v3812_v33 }
 0x141   : >> { %v1768_v31 = vadd.f32 %v1752_v54, %v1731_v23  ;;  %v1769_v37 = vadd.f32 %v1753_v3, %v1732_v24  ;;  %v1770_v13 = vadd.f32 %v1754_v19, %v1733_v51  ;;  %v1771_v1 = vadd.f32 %v1755_v8, %v1734_v32  ;;  %v3832_v24 = vld [vmem:[%s2777_s23 + $0xdd] sm:$0xff]  ;;  %v3835_v51 = vld [vmem:[%s2777_s23 + $0xe5] sm:$0xff] }
 0x142   : >> { %v1772_v56 = vadd.f32 %v1756_v14, %v1735_v63  ;;  %v1773_v25 = vadd.f32 %v1757_v34, %v1736_v42  ;;  %v1774_v62 = vadd.f32 %v1758_v36, %v1737_v57  ;;  %v1775_v6 = vadd.f32 %v1759_v47, %v1738_v59 }
 0x143   : >> { %v1776_v4 = vadd.f32 %v1760_v9, %v1739_v60  ;;  %v1777_v2 = vadd.f32 %v1761_v35, %v1740_v18  ;;  %v1778_v16 = vadd.f32 %v1762_v43, %v1741_v52  ;;  %v1779_v22 = vadd.f32 %v1763_v55, %v1742_v61  ;;  %v2486_v9 = vld [vmem:[%s4210_s1 + $0x1d] ss:$0 sm:$0xff] }
 0x144   : >> { %v1780_v12 = vadd.f32 %v1764_v38, %v1743_v49  ;;  %v1781_v11 = vadd.f32 %v1765_v50, %v1744_v10  ;;  %v1782_v30 = vadd.f32 %v1766_v21, %v1745_v53  ;;  %v1783_v23 = vadd.f32 %v1767_v48, %v1746_v26 }
 0x145   : >> { %v1789_v32 = vmul.f32 %v2484_v20, %v3755_v17  ;;  %v1790_v63 = vmul.f32 %v2484_v20, %v3758_v29  ;;  %v1791_v42 = vmul.f32 %v2484_v20, %v3761_v27  ;;  %v1792_v57 = vmul.f32 %v2484_v20, %v3767_v40 }
 0x146   : >> { %v1793_v59 = vmul.f32 %v2484_v20, %v3770_v5  ;;  %v1794_v58 = vmul.f32 %v2484_v20, %v3773_v7  ;;  %v1795_v60 = vmul.f32 %v2484_v20, %v3776_v41  ;;  %v1796_v18 = vmul.f32 %v2484_v20, %v3779_v28 }
 0x147   : >> { %v1797_v52 = vmul.f32 %v2484_v20, %v3782_v39  ;;  %v1798_v61 = vmul.f32 %v2484_v20, %v3785_v44  ;;  %v1799_v17 = vmul.f32 %v2484_v20, %v3788_v45  ;;  %v1800_v29 = vmul.f32 %v2484_v20, %v3791_v15 }
 0x148   : >> { %v1801_v49 = vmul.f32 %v2484_v20, %v3809_v46  ;;  %v1802_v10 = vmul.f32 %v2484_v20, %v3812_v33  ;;  %v1803_v53 = vmul.f32 %v2484_v20, %v3832_v24  ;;  %v1804_v26 = vmul.f32 %v2484_v20, %v3835_v51 }
 0x149   : >> { %v1805_v54 = vadd.f32 %v1789_v32, %v1768_v31  ;;  %v1806_v3 = vadd.f32 %v1790_v63, %v1769_v37  ;;  %v1807_v19 = vadd.f32 %v1791_v42, %v1770_v13  ;;  %v1808_v8 = vadd.f32 %v1792_v57, %v1771_v1  ;;  %v3857_v37 = vld [vmem:[%s2777_s23 + $0xf5] sm:$0xff]  ;;  %v3860_v13 = vld [vmem:[%s2777_s23 + $0xfd] sm:$0xff] }
 0x14a   : >> { %v1809_v14 = vadd.f32 %v1793_v59, %v1772_v56  ;;  %v1810_v34 = vadd.f32 %v1794_v58, %v1773_v25  ;;  %v1811_v36 = vadd.f32 %v1795_v60, %v1774_v62  ;;  %v1812_v47 = vadd.f32 %v1796_v18, %v1775_v6 }
 0x14b   : >> { %v1813_v35 = vadd.f32 %v1797_v52, %v1776_v4  ;;  %v1814_v43 = vadd.f32 %v1798_v61, %v1777_v2  ;;  %v1815_v55 = vadd.f32 %v1799_v17, %v1778_v16  ;;  %v1816_v38 = vadd.f32 %v1800_v29, %v1779_v22  ;;  %v2488_v52 = vld [vmem:[%s4210_s1 + $0x25] ss:$0 sm:$0xff] }
 0x14c   : >> { %v1817_v50 = vadd.f32 %v1801_v49, %v1780_v12  ;;  %v1818_v21 = vadd.f32 %v1802_v10, %v1781_v11  ;;  %v1819_v48 = vadd.f32 %v1803_v53, %v1782_v30  ;;  %v1820_v31 = vadd.f32 %v1804_v26, %v1783_v23 }
 0x14d   : >> { %v1826_v1 = vmul.f32 %v2486_v9, %v3761_v27  ;;  %v1827_v56 = vmul.f32 %v2486_v9, %v3767_v40  ;;  %v1828_v25 = vmul.f32 %v2486_v9, %v3770_v5  ;;  %v1829_v62 = vmul.f32 %v2486_v9, %v3773_v7 }
 0x14e   : >> { %v1830_v6 = vmul.f32 %v2486_v9, %v3776_v41  ;;  %v1831_v20 = vmul.f32 %v2486_v9, %v3779_v28  ;;  %v1832_v4 = vmul.f32 %v2486_v9, %v3782_v39  ;;  %v1833_v2 = vmul.f32 %v2486_v9, %v3785_v44 }
 0x14f   : >> { %v1834_v16 = vmul.f32 %v2486_v9, %v3788_v45  ;;  %v1835_v22 = vmul.f32 %v2486_v9, %v3791_v15  ;;  %v1836_v27 = vmul.f32 %v2486_v9, %v3809_v46  ;;  %v1837_v40 = vmul.f32 %v2486_v9, %v3812_v33 }
 0x150   : >> { %v1838_v12 = vmul.f32 %v2486_v9, %v3832_v24  ;;  %v1839_v11 = vmul.f32 %v2486_v9, %v3835_v51  ;;  %v1840_v30 = vmul.f32 %v2486_v9, %v3857_v37  ;;  %v1841_v23 = vmul.f32 %v2486_v9, %v3860_v13 }
 0x151   : >> { %v1842_v32 = vadd.f32 %v1826_v1, %v1805_v54  ;;  %v1843_v63 = vadd.f32 %v1827_v56, %v1806_v3  ;;  %v1844_v42 = vadd.f32 %v1828_v25, %v1807_v19  ;;  %v1845_v57 = vadd.f32 %v1829_v62, %v1808_v8  ;;  %v3882_v3 = vld [vmem:[%s2777_s23 + $0x10d] sm:$0xff]  ;;  %v3885_v19 = vld [vmem:[%s2777_s23 + $0x115] sm:$0xff] }
 0x152   : >> { %v1846_v59 = vadd.f32 %v1830_v6, %v1809_v14  ;;  %v1847_v58 = vadd.f32 %v1831_v20, %v1810_v34  ;;  %v1848_v60 = vadd.f32 %v1832_v4, %v1811_v36  ;;  %v1849_v18 = vadd.f32 %v1833_v2, %v1812_v47 }
 0x153   : >> { %v1850_v61 = vadd.f32 %v1834_v16, %v1813_v35  ;;  %v1851_v17 = vadd.f32 %v1835_v22, %v1814_v43  ;;  %v1852_v29 = vadd.f32 %v1836_v27, %v1815_v55  ;;  %v1853_v49 = vadd.f32 %v1837_v40, %v1816_v38  ;;  %v2490_v16 = vld [vmem:[%s4210_s1 + $0x2d] ss:$0 sm:$0xff] }
 0x154   : >> { %v1854_v10 = vadd.f32 %v1838_v12, %v1817_v50  ;;  %v1855_v53 = vadd.f32 %v1839_v11, %v1818_v21  ;;  %v1856_v26 = vadd.f32 %v1840_v30, %v1819_v48  ;;  %v1857_v54 = vadd.f32 %v1841_v23, %v1820_v31 }
 0x155   : >> { %v1863_v8 = vmul.f32 %v2488_v52, %v3770_v5  ;;  %v1864_v14 = vmul.f32 %v2488_v52, %v3773_v7  ;;  %v1865_v34 = vmul.f32 %v2488_v52, %v3776_v41  ;;  %v1866_v36 = vmul.f32 %v2488_v52, %v3779_v28 }
 0x156   : >> { %v1867_v47 = vmul.f32 %v2488_v52, %v3782_v39  ;;  %v1868_v9 = vmul.f32 %v2488_v52, %v3785_v44  ;;  %v1869_v35 = vmul.f32 %v2488_v52, %v3788_v45  ;;  %v1870_v43 = vmul.f32 %v2488_v52, %v3791_v15 }
 0x157   : >> { %v1871_v55 = vmul.f32 %v2488_v52, %v3809_v46  ;;  %v1872_v38 = vmul.f32 %v2488_v52, %v3812_v33  ;;  %v1873_v5 = vmul.f32 %v2488_v52, %v3832_v24  ;;  %v1874_v7 = vmul.f32 %v2488_v52, %v3835_v51 }
 0x158   : >> { %v1875_v50 = vmul.f32 %v2488_v52, %v3857_v37  ;;  %v1876_v21 = vmul.f32 %v2488_v52, %v3860_v13  ;;  %v1877_v48 = vmul.f32 %v2488_v52, %v3882_v3  ;;  %v1878_v31 = vmul.f32 %v2488_v52, %v3885_v19 }
 0x159   : >> { %v1879_v1 = vadd.f32 %v1863_v8, %v1842_v32  ;;  %v1880_v56 = vadd.f32 %v1864_v14, %v1843_v63  ;;  %v1881_v25 = vadd.f32 %v1865_v34, %v1844_v42  ;;  %v1882_v62 = vadd.f32 %v1866_v36, %v1845_v57  ;;  %v1706_v63 = vld [vmem:[%s2777_s23 + $0x125] sm:$0xff]  ;;  %v1707_v42 = vld [vmem:[%s2777_s23 + $0x12d] sm:$0xff] }
 0x15a   : >> { %v1883_v6 = vadd.f32 %v1867_v47, %v1846_v59  ;;  %v1884_v20 = vadd.f32 %v1868_v9, %v1847_v58  ;;  %v1885_v4 = vadd.f32 %v1869_v35, %v1848_v60  ;;  %v1886_v2 = vadd.f32 %v1870_v43, %v1849_v18 }
 0x15b   : >> { %v1887_v22 = vadd.f32 %v1871_v55, %v1850_v61  ;;  %v1888_v27 = vadd.f32 %v1872_v38, %v1851_v17  ;;  %v1889_v40 = vadd.f32 %v1873_v5, %v1852_v29  ;;  %v1890_v12 = vadd.f32 %v1874_v7, %v1853_v49  ;;  %v2492_v55 = vld [vmem:[%s4210_s1 + $0x35] ss:$0 sm:$0xff] }
 0x15c   : >> { %v1891_v11 = vadd.f32 %v1875_v50, %v1854_v10  ;;  %v1892_v30 = vadd.f32 %v1876_v21, %v1855_v53  ;;  %v1893_v23 = vadd.f32 %v1877_v48, %v1856_v26  ;;  %v1894_v32 = vadd.f32 %v1878_v31, %v1857_v54 }
 0x15d   : >> { %v1900_v57 = vmul.f32 %v2490_v16, %v3776_v41  ;;  %v1901_v59 = vmul.f32 %v2490_v16, %v3779_v28  ;;  %v1902_v58 = vmul.f32 %v2490_v16, %v3782_v39  ;;  %v1903_v60 = vmul.f32 %v2490_v16, %v3785_v44 }
 0x15e   : >> { %v1904_v18 = vmul.f32 %v2490_v16, %v3788_v45  ;;  %v1905_v52 = vmul.f32 %v2490_v16, %v3791_v15  ;;  %v1906_v61 = vmul.f32 %v2490_v16, %v3809_v46  ;;  %v1907_v17 = vmul.f32 %v2490_v16, %v3812_v33 }
 0x15f   : >> { %v1908_v29 = vmul.f32 %v2490_v16, %v3832_v24  ;;  %v1909_v49 = vmul.f32 %v2490_v16, %v3835_v51  ;;  %v1910_v41 = vmul.f32 %v2490_v16, %v3857_v37  ;;  %v1911_v28 = vmul.f32 %v2490_v16, %v3860_v13 }
 0x160   : >> { %v1912_v10 = vmul.f32 %v2490_v16, %v3882_v3  ;;  %v1913_v53 = vmul.f32 %v2490_v16, %v3885_v19  ;;  %v1914_v26 = vmul.f32 %v2490_v16, %v1706_v63  ;;  %v1915_v54 = vmul.f32 %v2490_v16, %v1707_v42 }
 0x161   : >> { %v1916_v8 = vadd.f32 %v1900_v57, %v1879_v1  ;;  %v1917_v14 = vadd.f32 %v1901_v59, %v1880_v56  ;;  %v1918_v34 = vadd.f32 %v1902_v58, %v1881_v25  ;;  %v1919_v36 = vadd.f32 %v1903_v60, %v1882_v62  ;;  %v1708_v56 = vld [vmem:[%s2777_s23 + $0x13d] sm:$0xff]  ;;  %v1709_v25 = vld [vmem:[%s2777_s23 + $0x145] sm:$0xff]  ;;  %v3950_v58 = vld [vmem:[%s2777_s23 + $0x4e] sm:$0xff] }
 0x162   : >> { %v1920_v47 = vadd.f32 %v1904_v18, %v1883_v6  ;;  %v1921_v9 = vadd.f32 %v1905_v52, %v1884_v20  ;;  %v1922_v35 = vadd.f32 %v1906_v61, %v1885_v4  ;;  %v1923_v43 = vadd.f32 %v1907_v17, %v1886_v2  ;;  %v3947_v59 = vld [vmem:[%s2777_s23 + $0x3e] sm:$0xff]  ;;  %v2493_v60 = vld [vmem:[%s4210_s1 + $0x6] ss:$0 sm:$0xff] }
 0x163   : >> { %v1924_v38 = vadd.f32 %v1908_v29, %v1887_v22  ;;  %v1925_v5 = vadd.f32 %v1909_v49, %v1888_v27  ;;  %v1926_v7 = vadd.f32 %v1910_v41, %v1889_v40  ;;  %v1927_v50 = vadd.f32 %v1911_v28, %v1890_v12  ;;  %v3956_v29 = vld [vmem:[%s2777_s23 + $0x56] sm:$0xff]  ;;  %v3959_v49 = vld [vmem:[%s2777_s23 + $0x66] sm:$0xff]  ;;  %v3962_v41 = vld [vmem:[%s2777_s23 + $0x6e] sm:$0xff] }
 0x164   : >> { %v1928_v21 = vadd.f32 %v1912_v10, %v1891_v11  ;;  %v1929_v48 = vadd.f32 %v1913_v53, %v1892_v30  ;;  %v1930_v31 = vadd.f32 %v1914_v26, %v1893_v23  ;;  %v1931_v1 = vadd.f32 %v1915_v54, %v1894_v32  ;;  %v1970_v11 = vld [vmem:[%s2777_s23 + $0xe] sm:$0xff]  ;;  %v1971_v32 = vld [vmem:[%s2777_s23 + $0x1e] sm:$0xff] }
 0x165   : >> { %v1937_v62 = vmul.f32 %v2492_v55, %v3782_v39  ;;  %v1938_v6 = vmul.f32 %v2492_v55, %v3785_v44  ;;  %v1939_v20 = vmul.f32 %v2492_v55, %v3788_v45  ;;  %v1940_v4 = vmul.f32 %v2492_v55, %v3791_v15  ;;  %v3965_v54 = vld [vmem:[%s2777_s23 + $0x7e] sm:$0xff] }
 0x166   : >> { %v1941_v2 = vmul.f32 %v2492_v55, %v3809_v46  ;;  %v1942_v16 = vmul.f32 %v2492_v55, %v3812_v33  ;;  %v1943_v22 = vmul.f32 %v2492_v55, %v3832_v24  ;;  %v1944_v27 = vmul.f32 %v2492_v55, %v3835_v51  ;;  %v1969_v24 = vld [vmem:[%s2777_s23 + $0x6] sm:$0xff] }
 0x167   : >> { %v1945_v39 = vmul.f32 %v2492_v55, %v3857_v37  ;;  %v1946_v44 = vmul.f32 %v2492_v55, %v3860_v13  ;;  %v1947_v40 = vmul.f32 %v2492_v55, %v3882_v3  ;;  %v1948_v45 = vmul.f32 %v2492_v55, %v3885_v19  ;;  %v1972_v13 = vld [vmem:[%s2777_s23 + $0x26] sm:$0xff]  ;;  %v3944_v3 = vld [vmem:[%s2777_s23 + $0x36] sm:$0xff] }
 0x168   : >> { %v1949_v15 = vmul.f32 %v2492_v55, %v1706_v63  ;;  %v1950_v12 = vmul.f32 %v2492_v55, %v1707_v42  ;;  %v1951_v46 = vmul.f32 %v2492_v55, %v1708_v56  ;;  %v1952_v33 = vmul.f32 %v2492_v55, %v1709_v25 }
 0x169   : >> { %v1953_v30 = vadd.f32 %v1937_v62, %v1916_v8  ;;  %v1954_v51 = vadd.f32 %v1938_v6, %v1917_v14  ;;  %v1955_v23 = vadd.f32 %v1939_v20, %v1918_v34  ;;  %v1956_v37 = vadd.f32 %v1940_v4, %v1919_v36  ;;  %v3968_v8 = vld [vmem:[%s2777_s23 + $0x86] sm:$0xff]  ;;  %v3971_v14 = vld [vmem:[%s2777_s23 + $0x96] sm:$0xff]  ;;  %v3974_v34 = vld [vmem:[%s2777_s23 + $0x9e] sm:$0xff] }
 0x16a   : >> { %v1957_v19 = vadd.f32 %v1941_v2, %v1920_v47  ;;  %v1958_v63 = vadd.f32 %v1942_v16, %v1921_v9  ;;  %v1959_v42 = vadd.f32 %v1943_v22, %v1922_v35  ;;  %v1960_v57 = vadd.f32 %v1944_v27, %v1923_v43  ;;  %v3977_v36 = vld [vmem:[%s2777_s23 + $0xae] sm:$0xff]  ;;  %v3980_v47 = vld [vmem:[%s2777_s23 + $0xb6] sm:$0xff] }
 0x16b   : >> { %v1961_v18 = vadd.f32 %v1945_v39, %v1924_v38  ;;  %v1962_v52 = vadd.f32 %v1946_v44, %v1925_v5  ;;  %v1963_v61 = vadd.f32 %v1947_v40, %v1926_v7  ;;  %v1964_v17 = vadd.f32 %v1948_v45, %v1927_v50  ;;  %v2495_v40 = vld [vmem:[%s4210_s1 + $0xe] ss:$0 sm:$0xff] }
 0x16c   : >> { %v1965_v28 = vadd.f32 %v1949_v15, %v1928_v21  ;;  %v1966_v10 = vadd.f32 %v1950_v12, %v1929_v48  ;;  %v1967_v53 = vadd.f32 %v1951_v46, %v1930_v31  ;;  %v1968_v26 = vadd.f32 %v1952_v33, %v1931_v1 }
 0x16d   : >> { %v2002_v9 = vmul.f32 %v2493_v60, %v1969_v24  ;;  %v2003_v35 = vmul.f32 %v2493_v60, %v1970_v11  ;;  %v2004_v43 = vmul.f32 %v2493_v60, %v1971_v32  ;;  %v2005_v55 = vmul.f32 %v2493_v60, %v1972_v13 }
 0x16e   : >> { %v2006_v38 = vmul.f32 %v2493_v60, %v3944_v3  ;;  %v2007_v5 = vmul.f32 %v2493_v60, %v3947_v59  ;;  %v2008_v7 = vmul.f32 %v2493_v60, %v3950_v58  ;;  %v2009_v50 = vmul.f32 %v2493_v60, %v3956_v29 }
 0x16f   : >> { %v2010_v21 = vmul.f32 %v2493_v60, %v3959_v49  ;;  %v2011_v48 = vmul.f32 %v2493_v60, %v3962_v41  ;;  %v2012_v31 = vmul.f32 %v2493_v60, %v3965_v54  ;;  %v2013_v1 = vmul.f32 %v2493_v60, %v3968_v8 }
 0x170   : >> { %v2014_v56 = vmul.f32 %v2493_v60, %v3971_v14  ;;  %v2015_v25 = vmul.f32 %v2493_v60, %v3974_v34  ;;  %v2016_v62 = vmul.f32 %v2493_v60, %v3977_v36  ;;  %v2017_v6 = vmul.f32 %v2493_v60, %v3980_v47 }
 0x171   : >> { %v2018_v20 = vadd.f32 %v2002_v9, %v1953_v30  ;;  %v2019_v4 = vadd.f32 %v2003_v35, %v1954_v51  ;;  %v2020_v2 = vadd.f32 %v2004_v43, %v1955_v23  ;;  %v2021_v16 = vadd.f32 %v2005_v55, %v1956_v37  ;;  %v3998_v51 = vld [vmem:[%s2777_s23 + $0xc6] sm:$0xff]  ;;  %v4001_v23 = vld [vmem:[%s2777_s23 + $0xce] sm:$0xff] }
 0x172   : >> { %v2022_v22 = vadd.f32 %v2006_v38, %v1957_v19  ;;  %v2023_v27 = vadd.f32 %v2007_v5, %v1958_v63  ;;  %v2024_v39 = vadd.f32 %v2008_v7, %v1959_v42  ;;  %v2025_v44 = vadd.f32 %v2009_v50, %v1960_v57 }
 0x173   : >> { %v2026_v45 = vadd.f32 %v2010_v21, %v1961_v18  ;;  %v2027_v15 = vadd.f32 %v2011_v48, %v1962_v52  ;;  %v2028_v12 = vadd.f32 %v2012_v31, %v1963_v61  ;;  %v2029_v46 = vadd.f32 %v2013_v1, %v1964_v17  ;;  %v2497_v21 = vld [vmem:[%s4210_s1 + $0x16] ss:$0 sm:$0xff] }
 0x174   : >> { %v2030_v33 = vadd.f32 %v2014_v56, %v1965_v28  ;;  %v2031_v24 = vadd.f32 %v2015_v25, %v1966_v10  ;;  %v2032_v11 = vadd.f32 %v2016_v62, %v1967_v53  ;;  %v2033_v30 = vadd.f32 %v2017_v6, %v1968_v26 }
 0x175   : >> { %v2039_v37 = vmul.f32 %v2495_v40, %v1971_v32  ;;  %v2040_v19 = vmul.f32 %v2495_v40, %v1972_v13  ;;  %v2041_v63 = vmul.f32 %v2495_v40, %v3944_v3  ;;  %v2042_v42 = vmul.f32 %v2495_v40, %v3947_v59 }
 0x176   : >> { %v2043_v57 = vmul.f32 %v2495_v40, %v3950_v58  ;;  %v2044_v60 = vmul.f32 %v2495_v40, %v3956_v29  ;;  %v2045_v18 = vmul.f32 %v2495_v40, %v3959_v49  ;;  %v2046_v52 = vmul.f32 %v2495_v40, %v3962_v41 }
 0x177   : >> { %v2047_v61 = vmul.f32 %v2495_v40, %v3965_v54  ;;  %v2048_v17 = vmul.f32 %v2495_v40, %v3968_v8  ;;  %v2049_v28 = vmul.f32 %v2495_v40, %v3971_v14  ;;  %v2050_v32 = vmul.f32 %v2495_v40, %v3974_v34 }
 0x178   : >> { %v2051_v13 = vmul.f32 %v2495_v40, %v3977_v36  ;;  %v2052_v10 = vmul.f32 %v2495_v40, %v3980_v47  ;;  %v2053_v53 = vmul.f32 %v2495_v40, %v3998_v51  ;;  %v2054_v26 = vmul.f32 %v2495_v40, %v4001_v23 }
 0x179   : >> { %v2055_v9 = vadd.f32 %v2039_v37, %v2018_v20  ;;  %v2056_v35 = vadd.f32 %v2040_v19, %v2019_v4  ;;  %v2057_v43 = vadd.f32 %v2041_v63, %v2020_v2  ;;  %v2058_v55 = vadd.f32 %v2042_v42, %v2021_v16  ;;  %v4021_v4 = vld [vmem:[%s2777_s23 + $0xde] sm:$0xff]  ;;  %v4024_v2 = vld [vmem:[%s2777_s23 + $0xe6] sm:$0xff] }
 0x17a   : >> { %v2059_v38 = vadd.f32 %v2043_v57, %v2022_v22  ;;  %v2060_v5 = vadd.f32 %v2044_v60, %v2023_v27  ;;  %v2061_v7 = vadd.f32 %v2045_v18, %v2024_v39  ;;  %v2062_v50 = vadd.f32 %v2046_v52, %v2025_v44 }
 0x17b   : >> { %v2063_v48 = vadd.f32 %v2047_v61, %v2026_v45  ;;  %v2064_v31 = vadd.f32 %v2048_v17, %v2027_v15  ;;  %v2065_v1 = vadd.f32 %v2049_v28, %v2028_v12  ;;  %v2066_v56 = vadd.f32 %v2050_v32, %v2029_v46  ;;  %v2499_v61 = vld [vmem:[%s4210_s1 + $0x1e] ss:$0 sm:$0xff] }
 0x17c   : >> { %v2067_v25 = vadd.f32 %v2051_v13, %v2030_v33  ;;  %v2068_v62 = vadd.f32 %v2052_v10, %v2031_v24  ;;  %v2069_v6 = vadd.f32 %v2053_v53, %v2032_v11  ;;  %v2070_v20 = vadd.f32 %v2054_v26, %v2033_v30 }
 0x17d   : >> { %v2076_v16 = vmul.f32 %v2497_v21, %v3944_v3  ;;  %v2077_v22 = vmul.f32 %v2497_v21, %v3947_v59  ;;  %v2078_v27 = vmul.f32 %v2497_v21, %v3950_v58  ;;  %v2079_v39 = vmul.f32 %v2497_v21, %v3956_v29 }
 0x17e   : >> { %v2080_v44 = vmul.f32 %v2497_v21, %v3959_v49  ;;  %v2081_v40 = vmul.f32 %v2497_v21, %v3962_v41  ;;  %v2082_v45 = vmul.f32 %v2497_v21, %v3965_v54  ;;  %v2083_v15 = vmul.f32 %v2497_v21, %v3968_v8 }
 0x17f   : >> { %v2084_v12 = vmul.f32 %v2497_v21, %v3971_v14  ;;  %v2085_v46 = vmul.f32 %v2497_v21, %v3974_v34  ;;  %v2086_v3 = vmul.f32 %v2497_v21, %v3977_v36  ;;  %v2087_v59 = vmul.f32 %v2497_v21, %v3980_v47 }
 0x180   : >> { %v2088_v33 = vmul.f32 %v2497_v21, %v3998_v51  ;;  %v2089_v24 = vmul.f32 %v2497_v21, %v4001_v23  ;;  %v2090_v11 = vmul.f32 %v2497_v21, %v4021_v4  ;;  %v2091_v30 = vmul.f32 %v2497_v21, %v4024_v2 }
 0x181   : >> { %v2092_v37 = vadd.f32 %v2076_v16, %v2055_v9  ;;  %v2093_v19 = vadd.f32 %v2077_v22, %v2056_v35  ;;  %v2094_v63 = vadd.f32 %v2078_v27, %v2057_v43  ;;  %v2095_v42 = vadd.f32 %v2079_v39, %v2058_v55  ;;  %v4046_v35 = vld [vmem:[%s2777_s23 + $0xf6] sm:$0xff]  ;;  %v4049_v43 = vld [vmem:[%s2777_s23 + $0xfe] sm:$0xff] }
 0x182   : >> { %v2096_v57 = vadd.f32 %v2080_v44, %v2059_v38  ;;  %v2097_v60 = vadd.f32 %v2081_v40, %v2060_v5  ;;  %v2098_v18 = vadd.f32 %v2082_v45, %v2061_v7  ;;  %v2099_v52 = vadd.f32 %v2083_v15, %v2062_v50 }
 0x183   : >> { %v2100_v17 = vadd.f32 %v2084_v12, %v2063_v48  ;;  %v2101_v28 = vadd.f32 %v2085_v46, %v2064_v31  ;;  %v2102_v32 = vadd.f32 %v2086_v3, %v2065_v1  ;;  %v2103_v13 = vadd.f32 %v2087_v59, %v2066_v56  ;;  %v2501_v12 = vld [vmem:[%s4210_s1 + $0x26] ss:$0 sm:$0xff] }
 0x184   : >> { %v2104_v10 = vadd.f32 %v2088_v33, %v2067_v25  ;;  %v2105_v53 = vadd.f32 %v2089_v24, %v2068_v62  ;;  %v2106_v26 = vadd.f32 %v2090_v11, %v2069_v6  ;;  %v2107_v9 = vadd.f32 %v2091_v30, %v2070_v20 }
 0x185   : >> { %v2113_v55 = vmul.f32 %v2499_v61, %v3950_v58  ;;  %v2114_v38 = vmul.f32 %v2499_v61, %v3956_v29  ;;  %v2115_v5 = vmul.f32 %v2499_v61, %v3959_v49  ;;  %v2116_v7 = vmul.f32 %v2499_v61, %v3962_v41 }
 0x186   : >> { %v2117_v50 = vmul.f32 %v2499_v61, %v3965_v54  ;;  %v2118_v21 = vmul.f32 %v2499_v61, %v3968_v8  ;;  %v2119_v48 = vmul.f32 %v2499_v61, %v3971_v14  ;;  %v2120_v31 = vmul.f32 %v2499_v61, %v3974_v34 }
 0x187   : >> { %v2121_v1 = vmul.f32 %v2499_v61, %v3977_v36  ;;  %v2122_v56 = vmul.f32 %v2499_v61, %v3980_v47  ;;  %v2123_v58 = vmul.f32 %v2499_v61, %v3998_v51  ;;  %v2124_v29 = vmul.f32 %v2499_v61, %v4001_v23 }
 0x188   : >> { %v2125_v25 = vmul.f32 %v2499_v61, %v4021_v4  ;;  %v2126_v62 = vmul.f32 %v2499_v61, %v4024_v2  ;;  %v2127_v6 = vmul.f32 %v2499_v61, %v4046_v35  ;;  %v2128_v20 = vmul.f32 %v2499_v61, %v4049_v43 }
 0x189   : >> { %v2129_v16 = vadd.f32 %v2113_v55, %v2092_v37  ;;  %v2130_v22 = vadd.f32 %v2114_v38, %v2093_v19  ;;  %v2131_v27 = vadd.f32 %v2115_v5, %v2094_v63  ;;  %v2132_v39 = vadd.f32 %v2116_v7, %v2095_v42  ;;  %v4071_v19 = vld [vmem:[%s2777_s23 + $0x10e] sm:$0xff]  ;;  %v4074_v63 = vld [vmem:[%s2777_s23 + $0x116] sm:$0xff] }
 0x18a   : >> { %v2133_v44 = vadd.f32 %v2117_v50, %v2096_v57  ;;  %v2134_v40 = vadd.f32 %v2118_v21, %v2097_v60  ;;  %v2135_v45 = vadd.f32 %v2119_v48, %v2098_v18  ;;  %v2136_v15 = vadd.f32 %v2120_v31, %v2099_v52 }
 0x18b   : >> { %v2137_v46 = vadd.f32 %v2121_v1, %v2100_v17  ;;  %v2138_v3 = vadd.f32 %v2122_v56, %v2101_v28  ;;  %v2139_v59 = vadd.f32 %v2123_v58, %v2102_v32  ;;  %v2140_v33 = vadd.f32 %v2124_v29, %v2103_v13  ;;  %v2503_v1 = vld [vmem:[%s4210_s1 + $0x2e] ss:$0 sm:$0xff] }
 0x18c   : >> { %v2141_v24 = vadd.f32 %v2125_v25, %v2104_v10  ;;  %v2142_v11 = vadd.f32 %v2126_v62, %v2105_v53  ;;  %v2143_v30 = vadd.f32 %v2127_v6, %v2106_v26  ;;  %v2144_v37 = vadd.f32 %v2128_v20, %v2107_v9 }
 0x18d   : >> { %v2150_v42 = vmul.f32 %v2501_v12, %v3959_v49  ;;  %v2151_v57 = vmul.f32 %v2501_v12, %v3962_v41  ;;  %v2152_v60 = vmul.f32 %v2501_v12, %v3965_v54  ;;  %v2153_v18 = vmul.f32 %v2501_v12, %v3968_v8 }
 0x18e   : >> { %v2154_v52 = vmul.f32 %v2501_v12, %v3971_v14  ;;  %v2155_v61 = vmul.f32 %v2501_v12, %v3974_v34  ;;  %v2156_v17 = vmul.f32 %v2501_v12, %v3977_v36  ;;  %v2157_v28 = vmul.f32 %v2501_v12, %v3980_v47 }
 0x18f   : >> { %v2158_v32 = vmul.f32 %v2501_v12, %v3998_v51  ;;  %v2159_v13 = vmul.f32 %v2501_v12, %v4001_v23  ;;  %v2160_v49 = vmul.f32 %v2501_v12, %v4021_v4  ;;  %v2161_v41 = vmul.f32 %v2501_v12, %v4024_v2 }
 0x190   : >> { %v2162_v10 = vmul.f32 %v2501_v12, %v4046_v35  ;;  %v2163_v53 = vmul.f32 %v2501_v12, %v4049_v43  ;;  %v2164_v26 = vmul.f32 %v2501_v12, %v4071_v19  ;;  %v2165_v9 = vmul.f32 %v2501_v12, %v4074_v63 }
 0x191   : >> { %v2166_v55 = vadd.f32 %v2150_v42, %v2129_v16  ;;  %v2167_v38 = vadd.f32 %v2151_v57, %v2130_v22  ;;  %v2168_v5 = vadd.f32 %v2152_v60, %v2131_v27  ;;  %v2169_v7 = vadd.f32 %v2153_v18, %v2132_v39  ;;  %v1993_v22 = vld [vmem:[%s2777_s23 + $0x126] sm:$0xff]  ;;  %v1994_v27 = vld [vmem:[%s2777_s23 + $0x12e] sm:$0xff] }
 0x192   : >> { %v2170_v50 = vadd.f32 %v2154_v52, %v2133_v44  ;;  %v2171_v21 = vadd.f32 %v2155_v61, %v2134_v40  ;;  %v2172_v48 = vadd.f32 %v2156_v17, %v2135_v45  ;;  %v2173_v31 = vadd.f32 %v2157_v28, %v2136_v15 }
 0x193   : >> { %v2174_v56 = vadd.f32 %v2158_v32, %v2137_v46  ;;  %v2175_v58 = vadd.f32 %v2159_v13, %v2138_v3  ;;  %v2176_v29 = vadd.f32 %v2160_v49, %v2139_v59  ;;  %v2177_v25 = vadd.f32 %v2161_v41, %v2140_v33  ;;  %v2505_v32 = vld [vmem:[%s4210_s1 + $0x36] ss:$0 sm:$0xff] }
 0x194   : >> { %v2178_v62 = vadd.f32 %v2162_v10, %v2141_v24  ;;  %v2179_v6 = vadd.f32 %v2163_v53, %v2142_v11  ;;  %v2180_v20 = vadd.f32 %v2164_v26, %v2143_v30  ;;  %v2181_v16 = vadd.f32 %v2165_v9, %v2144_v37 }
 0x195   : >> { %v2187_v39 = vmul.f32 %v2503_v1, %v3965_v54  ;;  %v2188_v44 = vmul.f32 %v2503_v1, %v3968_v8  ;;  %v2189_v40 = vmul.f32 %v2503_v1, %v3971_v14  ;;  %v2190_v45 = vmul.f32 %v2503_v1, %v3974_v34 }
 0x196   : >> { %v2191_v15 = vmul.f32 %v2503_v1, %v3977_v36  ;;  %v2192_v12 = vmul.f32 %v2503_v1, %v3980_v47  ;;  %v2193_v46 = vmul.f32 %v2503_v1, %v3998_v51  ;;  %v2194_v3 = vmul.f32 %v2503_v1, %v4001_v23 }
 0x197   : >> { %v2195_v59 = vmul.f32 %v2503_v1, %v4021_v4  ;;  %v2196_v33 = vmul.f32 %v2503_v1, %v4024_v2  ;;  %v2197_v54 = vmul.f32 %v2503_v1, %v4046_v35  ;;  %v2198_v8 = vmul.f32 %v2503_v1, %v4049_v43 }
 0x198   : >> { %v2199_v24 = vmul.f32 %v2503_v1, %v4071_v19  ;;  %v2200_v11 = vmul.f32 %v2503_v1, %v4074_v63  ;;  %v2201_v30 = vmul.f32 %v2503_v1, %v1993_v22  ;;  %v2202_v37 = vmul.f32 %v2503_v1, %v1994_v27 }
 0x199   : >> { %v2203_v42 = vadd.f32 %v2187_v39, %v2166_v55  ;;  %v2204_v57 = vadd.f32 %v2188_v44, %v2167_v38  ;;  %v2205_v60 = vadd.f32 %v2189_v40, %v2168_v5  ;;  %v2206_v18 = vadd.f32 %v2190_v45, %v2169_v7  ;;  %v1995_v38 = vld [vmem:[%s2777_s23 + $0x13e] sm:$0xff]  ;;  %v1996_v5 = vld [vmem:[%s2777_s23 + $0x146] sm:$0xff]  ;;  %s4131_s23 = scalar_lea.vmem %s209_s8, %s2512_s10 [#allocation2] }
 0x19a   : >> { %v2207_v52 = vadd.f32 %v2191_v15, %v2170_v50  ;;  %v2208_v61 = vadd.f32 %v2192_v12, %v2171_v21  ;;  %v2209_v17 = vadd.f32 %v2193_v46, %v2172_v48  ;;  %v2210_v28 = vadd.f32 %v2194_v3, %v2173_v31 }
 0x19b   : >> { %v2211_v13 = vadd.f32 %v2195_v59, %v2174_v56  ;;  %v2212_v49 = vadd.f32 %v2196_v33, %v2175_v58  ;;  %v2213_v41 = vadd.f32 %v2197_v54, %v2176_v29  ;;  %v2214_v10 = vadd.f32 %v2198_v8, %v2177_v25 }
 0x19c   : >> { %v2215_v53 = vadd.f32 %v2199_v24, %v2178_v62  ;;  %v2216_v26 = vadd.f32 %v2200_v11, %v2179_v6  ;;  %v2217_v9 = vadd.f32 %v2201_v30, %v2180_v20  ;;  %v2218_v55 = vadd.f32 %v2202_v37, %v2181_v16 }
 0x19d   : >> { %v2224_v7 = vmul.f32 %v2505_v32, %v3971_v14  ;;  %v2225_v50 = vmul.f32 %v2505_v32, %v3974_v34  ;;  %v2226_v21 = vmul.f32 %v2505_v32, %v3977_v36  ;;  %v2227_v48 = vmul.f32 %v2505_v32, %v3980_v47 }
 0x19e   : >> { %v2228_v31 = vmul.f32 %v2505_v32, %v3998_v51  ;;  %v2229_v1 = vmul.f32 %v2505_v32, %v4001_v23  ;;  %v2230_v56 = vmul.f32 %v2505_v32, %v4021_v4  ;;  %v2231_v58 = vmul.f32 %v2505_v32, %v4024_v2 }
 0x19f   : >> { %v2232_v29 = vmul.f32 %v2505_v32, %v4046_v35  ;;  %v2233_v14 = vmul.f32 %v2505_v32, %v4049_v43  ;;  %v2234_v34 = vmul.f32 %v2505_v32, %v4071_v19  ;;  %v2235_v25 = vmul.f32 %v2505_v32, %v4074_v63 }
 0x1a0   : >> { %v2236_v36 = vmul.f32 %v2505_v32, %v1993_v22  ;;  %v2237_v62 = vmul.f32 %v2505_v32, %v1994_v27  ;;  %v2238_v47 = vmul.f32 %v2505_v32, %v1995_v38  ;;  %v2239_v6 = vmul.f32 %v2505_v32, %v1996_v5 }
 0x1a1   : >> { %v2240_v51 = vadd.f32 %v2224_v7, %v2203_v42  ;;  %v2241_v23 = vadd.f32 %v2225_v50, %v2204_v57  ;;  %v2242_v4 = vadd.f32 %v2226_v21, %v2205_v60  ;;  %v2243_v2 = vadd.f32 %v2227_v48, %v2206_v18 }
 0x1a2   : >> { %v2244_v35 = vadd.f32 %v2228_v31, %v2207_v52  ;;  %v2245_v43 = vadd.f32 %v2229_v1, %v2208_v61  ;;  %v2246_v19 = vadd.f32 %v2230_v56, %v2209_v17  ;;  %v2247_v63 = vadd.f32 %v2231_v58, %v2210_v28 }
 0x1a3   : >> { %v2248_v20 = vadd.f32 %v2232_v29, %v2211_v13  ;;  %v2249_v16 = vadd.f32 %v2233_v14, %v2212_v49  ;;  %v2250_v22 = vadd.f32 %v2234_v34, %v2213_v41  ;;  %v2251_v27 = vadd.f32 %v2235_v25, %v2214_v10  ;;  %2258 = vst [vmem:[%s4131_s23] sm:$0xff] %v2240_v51 }
 0x1a4   : >> { %2259 = vst [vmem:[%s4131_s23 + $0x8] sm:$0xff] %v2241_v23  ;;  %2260 = vst [vmem:[%s4131_s23 + $0x10] sm:$0xff] %v2242_v4  ;;  %v2252_v39 = vadd.f32 %v2236_v36, %v2215_v53  ;;  %v2253_v44 = vadd.f32 %v2237_v62, %v2216_v26  ;;  %v2254_v40 = vadd.f32 %v2238_v47, %v2217_v9 }
 0x1a5   : >> { %2261 = vst [vmem:[%s4131_s23 + $0x18] sm:$0xff] %v2243_v2  ;;  %v2255_v45 = vadd.f32 %v2239_v6, %v2218_v55  ;;  %2262 = vst [vmem:[%s4131_s23 + $0x20] sm:$0xff] %v2244_v35 }
 0x1a6   : >> { %2263 = vst [vmem:[%s4131_s23 + $0x28] sm:$0xff] %v2245_v43  ;;  %2264 = vst [vmem:[%s4131_s23 + $0x30] sm:$0xff] %v2246_v19 }
 0x1a7   : >> { %2265 = vst [vmem:[%s4131_s23 + $0x38] sm:$0xff] %v2247_v63  ;;  %2266 = vst [vmem:[%s4131_s23 + $0x40] sm:$0xff] %v2248_v20  ;;  %230 = sbr.rel (!%p228_p12) target bundleno = 25 (0x19), region = 88 }
 0x1a8   : >> { %2267 = vst [vmem:[%s4131_s23 + $0x48] sm:$0xff] %v2249_v16  ;;  %2268 = vst [vmem:[%s4131_s23 + $0x50] sm:$0xff] %v2250_v22 }
 0x1a9   : >> { %2269 = vst [vmem:[%s4131_s23 + $0x58] sm:$0xff] %v2251_v27  ;;  %2270 = vst [vmem:[%s4131_s23 + $0x60] sm:$0xff] %v2252_v39 }
 0x1aa   : >> { %2271 = vst [vmem:[%s4131_s23 + $0x68] sm:$0xff] %v2253_v44  ;;  %2272 = vst [vmem:[%s4131_s23 + $0x70] sm:$0xff] %v2254_v40 }
 0x1ab   : >> { %2273 = vst [vmem:[%s4131_s23 + $0x78] sm:$0xff] %v2255_v45 }
 0x1ac   : > { %2593 = shalt.err (!%p2590_p6)
}
 0x1ad   : > { %s2594_s26 = scalar_lea.hbm %s4156_s21, 4096  ;;  %s2598_s4 = scalar_lea.hbm %s4212_s3, 8192 }
 0x1ae   : > { %p2595_p7 = scmp.ne.s32.totalorder %s4156_s21, %s2594_s26  ;;  %p2599_p11 = scmp.lt.s32.totalorder %s4156_s21, %s4212_s3 }
 0x1af   : > { %p2600_p12 = scmp.lt.s32.totalorder %s2598_s4, %s2594_s26 }
 0x1b0   : > { %p2596_p9 = pnand %p2595_p7, %p2729_p4 }
 0x1b1   : > { %p2601_p13 = por %p2600_p12, %p2599_p11 }
 0x1b2   : > { %p2597_p10 = pneg %p2596_p9 }
 0x1b4   : > { %p2602_p0 = pnand %p2601_p13, %p2597_p10 }
 0x1b6   : > { %2605 = shalt.err (!%p2602_p0)
}
 0x1b7   : > { %s2667_s10 = smov 128   ;;  %s2668_s23 = smov 8  }
 0x1b8   : > { %2515 = dma.vmem_to_hbm [thread:$0]  (%p2729_p4), %s4160_s27, 4096, %s4156_s21, %s4164_s9, %s2667_s10, %s2667_s10, %s2668_s23  }
 0x1b9 PF: > { %p2521_p1 = scmp.ge.s32.totalorder %s2660_s17, 2  ;;  %s2304_s11 = sand.u32 1, %s2640_s12  }
 0x1ba   : > { %s2305_s18 = scalar_lea.sflag [#allocation3], %s2304_s11 }
 0x1bb   : > { %p2518_p2 = pnand %p2521_p1, %p2736_p8 }
 0x1bd   : > { %p2519_p3 = pneg %p2518_p2 }
 0x1bf   : > { %2635 = dma.done.wait (%p2519_p3), %s2305_s18, 4096  }
 0x1c0   : > { %2637 = vsyncadd (%p2519_p3), %s2305_s18, 4294963200  ;;  %s16_s17 = sadd.s32 1, %s2660_s17   ;;  %s4215_s12 = smov %s2644_s13 }
 0x1c1   : > { %p13_p5 = scmp.ge.s32.totalorder %s16_s17, 4   ;;  %s4216_s13 = smov %s2648_s14 }
 0x1c2   : > { %s4217_s14 = smov %s2742_s25  ;;  %s4218_s15 = smov %s2656_s16 }
 0x1c3   : > { %s4219_s16 = smov %s4221_s20  ;;  %15 = sbr.rel (!%p13_p5) target bundleno = 4 (0x4), region = 99 }
 0x1c8   :  { %2310 = vsyncpa [#allocation3], 1 }
 0x1c9   :  { %2312 = vsyncpa [#allocation3 + $0x1], 1 }

</bundles_post_ra>
